<compile_context>
chip_gen: v5e
topology: v5e:2x2
jax: 0.10.0
libtpu: 0.0.40
codegen_flags: <defaults>
</compile_context>

<pallas_src>
import functools

import jax
import jax.numpy as jnp
import numpy as np
from jax import lax
from jax.experimental import pallas as pl
from jax.experimental.pallas import tpu as pltpu


# --------------------------------------------------------------------------
# Pallas kernel: the sequential recurrence only.
# --------------------------------------------------------------------------
def _modgru_kernel(x_ref, m_ref, h0_ref, wx3_ref, bx3_ref, wh3_ref, bhn_ref,
                   hseq_ref, hxo_ref, *, unroll):
    """One (batch-block, time-chunk) tile of the GRU recurrence.

    x_ref   : [Tt, tb, D]  f32  raw inputs for this chunk
    m_ref   : [Tt, tb, 1]  f32  mask
    h0_ref  : [tb, H]      f32  initial hidden state for this batch block
    wx3_ref : [D, 3H]      bf16 fused (Wir | Wiz | Win)
    bx3_ref : [1, 3H]      f32  fused (bir+bhr | biz+bhz | bin)
    wh3_ref : [H, 3H]      bf16 fused (Whr | Whz | Whn)
    bhn_ref : [1, H]       f32  b_hn (must stay inside the r*(...) term)
    hseq_ref: [Tt, tb, H]  bf16 per-step mixed hidden state (com2 is hoisted
                                to the wrapper and consumes this in bf16)
    hxo_ref : [tb, H]      f32  hidden state; constant block index over the
                                time axis -> VMEM-resident across the whole
                                recurrence, written to HBM once.
    """
    i = pl.program_id(1)              # time-chunk index (sequential axis)
    Tt = x_ref.shape[0]
    tb = x_ref.shape[1]
    H = hxo_ref.shape[-1]

    @pl.when(i == 0)
    def _():
        hxo_ref[...] = h0_ref[...]

    wx3 = wx3_ref[...]
    wh3 = wh3_ref[...]
    mxu_dtype = wh3.dtype             # bf16 for MXU, f32 accumulation

    # Hoist all loop-invariant broadcasts out of the (unrolled) serial loop:
    # JAX does not CSE broadcast_in_dim, so doing it inside would emit Tt copies.
    bx3_b = jnp.broadcast_to(bx3_ref[...], (tb, 3 * H))
    bhn_b = jnp.broadcast_to(bhn_ref[...], (tb, H))

    def step(tt, h):
        # x-side gate pre-activation: independent of h -> off the critical
        # chain; the scheduler interleaves it under the serial h-matmul.
        xg = jnp.dot(x_ref[tt].astype(mxu_dtype), wx3,
                     preferred_element_type=jnp.float32) + bx3_b   # [tb, 3H]
        m = m_ref[tt]                                              # [tb, 1]
        # Single fused MXU call for all three h-side gate matmuls (the only
        # dependent MXU op per step).
        g = jnp.dot(h.astype(mxu_dtype), wh3,
                    preferred_element_type=jnp.float32)            # [tb, 3H]
        # One wide sigmoid for r and z (slices land on 128-lane multiples).
        rz = jax.nn.sigmoid(xg[:, :2 * H] + g[:, :2 * H])
        r = rz[:, :H]
        z = rz[:, H:]
        n = jnp.tanh(xg[:, 2 * H:] + r * (g[:, 2 * H:] + bhn_b))
        # h_new = (1-z)*n + z*h ; hx = h_new*m + h*(1-m)  ==  h + m*(1-z)*(n-h)
        h_mix = h + m * (1.0 - z) * (n - h)
        hseq_ref[tt] = h_mix.astype(hseq_ref.dtype)
        return h_mix

    hxo_ref[...] = lax.fori_loop(0, Tt, step, hxo_ref[...], unroll=unroll)


# --------------------------------------------------------------------------
# Wrapper
# --------------------------------------------------------------------------
def modgru_pallas(X, hx, mask, p, *, t_chunk=32, b_block=None, use_bf16=True):
    """X: [T,B,D], hx: [B,H], mask: [T,B] (float 0/1), p: param dict.

    Returns (output [T,B,H], hx_final [B,H]) with the same semantics as the
    PyTorch ModGRU.forward.
    """
    T, B, D = X.shape
    H = hx.shape[-1]
    X = X.astype(jnp.float32)
    hx = hx.astype(jnp.float32)

    mxu_dtype = jnp.bfloat16 if use_bf16 else jnp.float32
    # Fused x-side gate weights / foldable biases.
    wx3 = jnp.concatenate([p["wir"], p["wiz"], p["win"]], axis=1).astype(mxu_dtype)
    bx3 = jnp.concatenate([p["bir"] + p["bhr"], p["biz"] + p["bhz"],
                           p["bin"]], axis=1).astype(jnp.float32)
    # Fused h-side gate weights.
    wh3 = jnp.concatenate([p["whr"], p["whz"], p["whn"]], axis=1).astype(mxu_dtype)
    bhn = p["bhn"].astype(jnp.float32)
    mask3 = mask.reshape(T, B, 1).astype(jnp.float32)

    # Chunk the time axis; pad with mask=0 steps (hx unchanged, outputs sliced).
    Tt = min(t_chunk, T)
    nt = -(-T // Tt)
    T_pad = nt * Tt
    Xp = X
    if T_pad != T:
        Xp = jnp.pad(X, ((0, T_pad - T), (0, 0), (0, 0)))
        mask3 = jnp.pad(mask3, ((0, T_pad - T), (0, 0), (0, 0)))

    # Batch blocking: default tb = B (keep the per-step MXU M-dim as large as
    # possible).  Only pass b_block to split across v7x's two TensorCores
    # when each half still has a large M-dim.
    tb = B if b_block is None else min(b_block, B)
    assert B % tb == 0 and (tb == B or tb % 8 == 0), \
        "batch block must divide B and be sublane-aligned"
    nb = B // tb

    # Partial unroll once the chunk gets long (full unroll only for short Tt).
    unroll = 8 if (Tt > 8 and Tt % 8 == 0) else True

    # VMEM budget: double-buffered inputs + outputs, generous headroom,
    # clamped to v7x's 64 MiB physical VMEM.
    blk_bytes = (Tt * tb * D * 4 + Tt * tb * 4 + tb * H * 4
                 + D * 3 * H * 2 + 3 * H * 4 + H * 3 * H * 2 + H * 4
                 + Tt * tb * H * 2 + tb * H * 4)
    vmem_limit = int(min(max(4 * blk_bytes, 16 << 20), 64 << 20))
    # TODO(synk): for large H, pin wx3/wh3 single-buffered (pipeline_mode=
    # pl.Buffered(1)) — their index maps are constant so double-buffering
    # them only costs VMEM (matters on v7x's 64 MiB).

    grid_spec = pltpu.PrefetchScalarGridSpec(
        num_scalar_prefetch=0,
        grid=(nb, nt),                                    # (batch, time-chunks)
        in_specs=[
            pl.BlockSpec((Tt, tb, D), lambda b, i: (i, b, 0)),      # X chunk
            pl.BlockSpec((Tt, tb, 1), lambda b, i: (i, b, 0)),      # mask chunk
            pl.BlockSpec((tb, H),     lambda b, i: (b, 0)),         # h0
            pl.BlockSpec((D, 3 * H),  lambda b, i: (0, 0)),         # fused Wx
            pl.BlockSpec((1, 3 * H),  lambda b, i: (0, 0)),         # fused bx
            pl.BlockSpec((H, 3 * H),  lambda b, i: (0, 0)),         # fused Wh
            pl.BlockSpec((1, H),      lambda b, i: (0, 0)),         # b_hn
        ],
        out_specs=[
            pl.BlockSpec((Tt, tb, H), lambda b, i: (i, b, 0)),      # h sequence
            pl.BlockSpec((tb, H),     lambda b, i: (b, 0)),         # final hx
        ],
    )

    hseq, hx_final = pl.pallas_call(
        functools.partial(_modgru_kernel, unroll=unroll),
        out_shape=(jax.ShapeDtypeStruct((T_pad, B, H), mxu_dtype),
                   jax.ShapeDtypeStruct((B, H), jnp.float32)),
        grid_spec=grid_spec,
        compiler_params=pltpu.CompilerParams(
            # time axis is a true recurrence -> "arbitrary" (sequential);
            # batch blocks are independent -> "parallel" (megacore on v7x).
            dimension_semantics=("parallel", "arbitrary"),
            vmem_limit_bytes=vmem_limit,
        ),
    )(Xp, mask3, hx, wx3, bx3, wh3, bhn)

    hseq = hseq[:T]                                                 # [T,B,H] bf16

    # com2 hoisted out of the recurrence: one large T-parallel GEMM pair.
    # com2(cat([x, hx])) == x@W2x + hx@W2h + b2
    w2h = p["w2h"].astype(mxu_dtype)
    out = (jnp.einsum("tbd,dh->tbh", X, p["w2x"])
           + jnp.einsum("tbh,hk->tbk", hseq, w2h,
                        preferred_element_type=jnp.float32)
           + p["b2"])
    return out, hx_final


# --------------------------------------------------------------------------
# Pure-JAX references
# --------------------------------------------------------------------------
def modgru_ref_f32(X, hx, mask, p):
    """Literal per-step PyTorch-semantics reference, all f32."""
    T = X.shape[0]
    h = hx
    outs = []
    for i in range(T):
        x = X[i]
        r = jax.nn.sigmoid(x @ p["wir"] + p["bir"] + h @ p["whr"] + p["bhr"])
        z = jax.nn.sigmoid(x @ p["wiz"] + p["biz"] + h @ p["whz"] + p["bhz"])
        n = jnp.tanh(x @ p["win"] + p["bin"] + r * (h @ p["whn"] + p["bhn"]))
        h_new = (1.0 - z) * n + z * h
        m = mask[i][:, None]
        h = h_new * m + h * (1.0 - m)
        outs.append(x @ p["w2x"] + h @ p["w2h"] + p["b2"])
    return jnp.stack(outs), h


def modgru_ref_mirrored(X, hx, mask, p, use_bf16=True):
    """Mirrors the kernel's math exactly (bf16 MXU inputs / f32 accumulation,
    bf16 h-sequence feeding the hoisted com2 GEMM) for a tight tolerance."""
    T, B, D = X.shape
    H = hx.shape[-1]
    mdt = jnp.bfloat16 if use_bf16 else jnp.float32
    X = X.astype(jnp.float32)
    wx3 = jnp.concatenate([p["wir"], p["wiz"], p["win"]], axis=1).astype(mdt)
    bx3 = jnp.concatenate([p["bir"] + p["bhr"], p["biz"] + p["bhz"],
                           p["bin"]], axis=1)
    wh3 = jnp.concatenate([p["whr"], p["whz"], p["whn"]], axis=1).astype(mdt)
    w2h = p["w2h"].astype(mdt)
    xg = jnp.einsum("tbd,dh->tbh", X.astype(mdt), wx3,
                    preferred_element_type=jnp.float32) + bx3
    h = hx.astype(jnp.float32)
    hseq = []
    for t in range(T):
        g = jnp.dot(h.astype(mdt), wh3, preferred_element_type=jnp.float32)
        rz = jax.nn.sigmoid(xg[t, :, :2 * H] + g[:, :2 * H])
        r, z = rz[:, :H], rz[:, H:]
        n = jnp.tanh(xg[t, :, 2 * H:] + r * (g[:, 2 * H:] + p["bhn"]))
        m = mask[t][:, None]
        h = h + m * (1.0 - z) * (n - h)
        hseq.append(h.astype(mdt))
    hseq = jnp.stack(hseq)
    out = (jnp.einsum("tbd,dh->tbh", X, p["w2x"])
           + jnp.einsum("tbh,hk->tbk", hseq, w2h,
                        preferred_element_type=jnp.float32)
           + p["b2"])
    return out, h


def init_params(key, input_dim, h_dim):
    ks = jax.random.split(key, 20)
    s_cell = 1.0 / np.sqrt(h_dim)
    s_com2 = 1.0 / np.sqrt(input_dim + h_dim)
    s_comb = 1.0 / np.sqrt(input_dim)
    u = lambda k, shp, s: jax.random.uniform(k, shp, jnp.float32, -s, s)  # noqa: E731
    return {
        # GRUCell weight_ih (split, stored transposed as [D, H] for x @ W)
        "wir": u(ks[0], (input_dim, h_dim), s_cell),
        "wiz": u(ks[1], (input_dim, h_dim), s_cell),
        "win": u(ks[2], (input_dim, h_dim), s_cell),
        # GRUCell weight_hh (split, stored transposed as [H, H])
        "whr": u(ks[3], (h_dim, h_dim), s_cell),
        "whz": u(ks[4], (h_dim, h_dim), s_cell),
        "whn": u(ks[5], (h_dim, h_dim), s_cell),
        # GRUCell biases ([1, H] rows)
        "bir": u(ks[6], (1, h_dim), s_cell),
        "biz": u(ks[7], (1, h_dim), s_cell),
        "bin": u(ks[8], (1, h_dim), s_cell),
        "bhr": u(ks[9], (1, h_dim), s_cell),
        "bhz": u(ks[10], (1, h_dim), s_cell),
        "bhn": u(ks[11], (1, h_dim), s_cell),
        # com2: Linear(D+H, H), split as x-part and h-part (transposed)
        "w2x": u(ks[12], (input_dim, h_dim), s_com2),
        "w2h": u(ks[13], (h_dim, h_dim), s_com2),
        "b2": u(ks[14], (1, h_dim), s_com2),
        # comb: Linear(D, D) — defined in the PyTorch __init__ but unused in forward()
        "wcomb": u(ks[15], (input_dim, input_dim), s_comb),
        "bcomb": u(ks[16], (1, input_dim), s_comb),
    }


if __name__ == "__main__":
    # Small, lane/sublane-friendly shapes: H multiple of 128, B multiple of 8.
    # T=20 with t_chunk=8 exercises multi-chunk hx carry AND time padding.
    T, B, D, H = 20, 16, 32, 128
    key = jax.random.PRNGKey(0)
    kx, kh, km, kp = jax.random.split(key, 4)

    X = jax.random.normal(kx, (T, B, D), jnp.float32)
    hx = jax.random.normal(kh, (B, H), jnp.float32)
    mask = (jax.random.uniform(km, (T, B)) > 0.3).astype(jnp.float32)
    params = init_params(kp, D, H)

    out, hx_final = modgru_pallas(X, hx, mask, params,
                                  t_chunk=8, b_block=None, use_bf16=True)
    out = jax.block_until_ready(out)
    hx_final = jax.block_until_ready(hx_final)

    # Tight check vs a reference that mirrors the kernel's bf16-MXU math.
    out_m, hx_m = modgru_ref_mirrored(X, hx, mask, params, use_bf16=True)
    assert np.allclose(np.asarray(out), np.asarray(out_m), atol=5e-3, rtol=5e-3)
    assert np.allclose(np.asarray(hx_final), np.asarray(hx_m), atol=5e-3, rtol=5e-3)

    # Loose sanity check vs the full-f32 PyTorch-semantics reference
    # (bf16 MXU inputs with f32 accumulation introduce small drift).
    out_f, hx_f = modgru_ref_f32(X, hx, mask, params)
    assert np.allclose(np.asarray(out), np.asarray(out_f), atol=1e-1, rtol=1e-1)
    assert np.allclose(np.asarray(hx_final), np.asarray(hx_f), atol=1e-1, rtol=1e-1)

    print("KERNEL_OK")
</pallas_src>

<mosaic_0001>
module attributes {stable_mosaic.version = 11 : i64} {
  func.func @_modgru_kernel(%arg0: i32, %arg1: i32, %arg2: memref<8x16x32xf32, #tpu.memory_space<vmem>>, %arg3: memref<8x16x1xf32, #tpu.memory_space<vmem>>, %arg4: memref<16x128xf32, #tpu.memory_space<vmem>>, %arg5: memref<32x384xbf16, #tpu.memory_space<vmem>>, %arg6: memref<1x384xf32, #tpu.memory_space<vmem>>, %arg7: memref<128x384xbf16, #tpu.memory_space<vmem>>, %arg8: memref<1x128xf32, #tpu.memory_space<vmem>>, %arg9: memref<8x16x128xbf16, #tpu.memory_space<vmem>>, %arg10: memref<16x128xf32, #tpu.memory_space<vmem>>) attributes {dimension_semantics = [#tpu.dimension_semantics<parallel>, #tpu.dimension_semantics<arbitrary>], iteration_bounds = array<i64: 1, 3>, scalar_prefetch = 0 : i64, scratch_operands = 0 : i64, tpu.core_type = #tpu.core_type<tc>, window_params = [{transform_indices = @transform_0, window_bounds = array<i64: 8, 16, 32>}, {transform_indices = @transform_1, window_bounds = array<i64: 8, 16, 1>}, {transform_indices = @transform_2, window_bounds = array<i64: 16, 128>}, {pipeline_mode = #tpu.pipeline_mode<synchronous>, transform_indices = @transform_3, window_bounds = array<i64: 32, 384>}, {pipeline_mode = #tpu.pipeline_mode<synchronous>, transform_indices = @transform_4, window_bounds = array<i64: 1, 384>}, {pipeline_mode = #tpu.pipeline_mode<synchronous>, transform_indices = @transform_5, window_bounds = array<i64: 128, 384>}, {pipeline_mode = #tpu.pipeline_mode<synchronous>, transform_indices = @transform_6, window_bounds = array<i64: 1, 128>}, {transform_indices = @transform_7, window_bounds = array<i64: 8, 16, 128>}, {transform_indices = @transform_8, window_bounds = array<i64: 16, 128>}]} {
    %c0_i32 = arith.constant 0 : i32
    %0 = arith.cmpi eq, %arg1, %c0_i32 : i32
    %1 = arith.extui %0 : i1 to i32
    %c0_i32_0 = arith.constant 0 : i32
    %2 = arith.cmpi ne, %1, %c0_i32_0 : i32
    scf.if %2 {
      %c0_92 = arith.constant 0 : index
      %c0_93 = arith.constant 0 : index
      %325 = vector.load %arg4[%c0_92, %c0_93] : memref<16x128xf32, #tpu.memory_space<vmem>>, vector<16x128xf32>
      %c0_94 = arith.constant 0 : index
      %c0_95 = arith.constant 0 : index
      %326 = vector.load %arg10[%c0_94, %c0_95] : memref<16x128xf32, #tpu.memory_space<vmem>>, vector<16x128xf32>
      tpu.vector_store %arg10[%c0_94, %c0_95], %325 {strides = array<i32>} : memref<16x128xf32, #tpu.memory_space<vmem>>, vector<16x128xf32>,
    } else {
    }
    %c0 = arith.constant 0 : index
    %c0_1 = arith.constant 0 : index
    %3 = vector.load %arg5[%c0, %c0_1] : memref<32x384xbf16, #tpu.memory_space<vmem>>, vector<32x384xbf16>
    %c0_2 = arith.constant 0 : index
    %c0_3 = arith.constant 0 : index
    %4 = vector.load %arg7[%c0_2, %c0_3] : memref<128x384xbf16, #tpu.memory_space<vmem>>, vector<128x384xbf16>
    %c0_4 = arith.constant 0 : index
    %c0_5 = arith.constant 0 : index
    %5 = vector.load %arg6[%c0_4, %c0_5] : memref<1x384xf32, #tpu.memory_space<vmem>>, vector<1x384xf32>
    %6 = vector.shape_cast %5 : vector<1x384xf32> to vector<1x384xf32>
    %7 = vector.broadcast %6 : vector<1x384xf32> to vector<16x384xf32>
    %c0_6 = arith.constant 0 : index
    %c0_7 = arith.constant 0 : index
    %8 = vector.load %arg8[%c0_6, %c0_7] : memref<1x128xf32, #tpu.memory_space<vmem>>, vector<1x128xf32>
    %9 = vector.shape_cast %8 : vector<1x128xf32> to vector<1x128xf32>
    %10 = vector.broadcast %9 : vector<1x128xf32> to vector<16x128xf32>
    %c0_8 = arith.constant 0 : index
    %c0_9 = arith.constant 0 : index
    %11 = vector.load %arg10[%c0_8, %c0_9] : memref<16x128xf32, #tpu.memory_space<vmem>>, vector<16x128xf32>
    %c0_i32_10 = arith.constant 0 : i32
    %12 = arith.index_cast %c0_i32_10 : i32 to index
    %c0_11 = arith.constant 0 : index
    %c0_12 = arith.constant 0 : index
    %13 = vector.load %arg2[%12, %c0_11, %c0_12] : memref<8x16x32xf32, #tpu.memory_space<vmem>>, vector<1x16x32xf32>
    %14 = vector.shape_cast %13 : vector<1x16x32xf32> to vector<16x32xf32>
    %15 = arith.truncf %14 : vector<16x32xf32> to vector<16x32xbf16>
    %cst = arith.constant dense<0.000000e+00> : vector<16x384xf32>
    %16 = tpu.matmul %15, %3, %cst {dimension_numbers = #tpu.dot_dimension_numbers<[1], [0], [0], [1], [0, 0, 1, 1], [], []>} : vector<16x32xbf16>, vector<32x384xbf16>, vector<16x384xf32> -> vector<16x384xf32>
    %17 = arith.addf %16, %7 : vector<16x384xf32>
    %18 = arith.index_cast %c0_i32_10 : i32 to index
    %c0_13 = arith.constant 0 : index
    %c0_14 = arith.constant 0 : index
    %19 = vector.load %arg3[%18, %c0_13, %c0_14] : memref<8x16x1xf32, #tpu.memory_space<vmem>>, vector<1x16x1xf32>
    %20 = vector.shape_cast %19 : vector<1x16x1xf32> to vector<16x1xf32>
    %21 = arith.truncf %11 : vector<16x128xf32> to vector<16x128xbf16>
    %cst_15 = arith.constant dense<0.000000e+00> : vector<16x384xf32>
    %22 = tpu.matmul %21, %4, %cst_15 {dimension_numbers = #tpu.dot_dimension_numbers<[1], [0], [0], [1], [0, 0, 1, 1], [], []>} : vector<16x128xbf16>, vector<128x384xbf16>, vector<16x384xf32> -> vector<16x384xf32>
    %23 = vector.extract_strided_slice %17 {offsets = [0, 0], sizes = [16, 256], strides = [1, 1]} : vector<16x384xf32> to vector<16x256xf32>
    %24 = vector.extract_strided_slice %22 {offsets = [0, 0], sizes = [16, 256], strides = [1, 1]} : vector<16x384xf32> to vector<16x256xf32>
    %25 = arith.addf %23, %24 : vector<16x256xf32>
    %26 = arith.negf %25 : vector<16x256xf32>
    %27 = math.exp %26 : vector<16x256xf32>
    %cst_16 = arith.constant 1.000000e+00 : f32
    %28 = vector.broadcast %cst_16 : f32 to vector<16x256xf32>
    %29 = arith.addf %28, %27 : vector<16x256xf32>
    %30 = arith.divf %28, %29 : vector<16x256xf32>
    %31 = vector.extract_strided_slice %30 {offsets = [0, 0], sizes = [16, 128], strides = [1, 1]} : vector<16x256xf32> to vector<16x128xf32>
    %32 = vector.extract_strided_slice %30 {offsets = [0, 128], sizes = [16, 128], strides = [1, 1]} : vector<16x256xf32> to vector<16x128xf32>
    %33 = vector.extract_strided_slice %17 {offsets = [0, 256], sizes = [16, 128], strides = [1, 1]} : vector<16x384xf32> to vector<16x128xf32>
    %34 = vector.extract_strided_slice %22 {offsets = [0, 256], sizes = [16, 128], strides = [1, 1]} : vector<16x384xf32> to vector<16x128xf32>
    %35 = arith.addf %34, %10 : vector<16x128xf32>
    %36 = arith.mulf %31, %35 : vector<16x128xf32>
    %37 = arith.addf %33, %36 : vector<16x128xf32>
    %38 = math.tanh %37 : vector<16x128xf32>
    %cst_17 = arith.constant 1.000000e+00 : f32
    %39 = vector.broadcast %cst_17 : f32 to vector<16x128xf32>
    %40 = arith.subf %39, %32 : vector<16x128xf32>
    %41 = vector.broadcast %20 : vector<16x1xf32> to vector<16x128xf32>
    %42 = arith.mulf %41, %40 : vector<16x128xf32>
    %43 = arith.subf %38, %11 : vector<16x128xf32>
    %44 = arith.mulf %42, %43 : vector<16x128xf32>
    %45 = arith.addf %11, %44 : vector<16x128xf32>
    %46 = arith.truncf %45 : vector<16x128xf32> to vector<16x128xbf16>
    %47 = arith.index_cast %c0_i32_10 : i32 to index
    %c0_18 = arith.constant 0 : index
    %c0_19 = arith.constant 0 : index
    %48 = vector.load %arg9[%47, %c0_18, %c0_19] : memref<8x16x128xbf16, #tpu.memory_space<vmem>>, vector<1x16x128xbf16>
    %49 = vector.shape_cast %48 : vector<1x16x128xbf16> to vector<16x128xbf16>
    %50 = vector.shape_cast %46 : vector<16x128xbf16> to vector<1x16x128xbf16>
    tpu.vector_store %arg9[%47, %c0_18, %c0_19], %50 {strides = array<i32>} : memref<8x16x128xbf16, #tpu.memory_space<vmem>>, vector<1x16x128xbf16>,
    %c1_i32 = arith.constant 1 : i32
    %51 = arith.index_cast %c1_i32 : i32 to index
    %c0_20 = arith.constant 0 : index
    %c0_21 = arith.constant 0 : index
    %52 = vector.load %arg2[%51, %c0_20, %c0_21] : memref<8x16x32xf32, #tpu.memory_space<vmem>>, vector<1x16x32xf32>
    %53 = vector.shape_cast %52 : vector<1x16x32xf32> to vector<16x32xf32>
    %54 = arith.truncf %53 : vector<16x32xf32> to vector<16x32xbf16>
    %cst_22 = arith.constant dense<0.000000e+00> : vector<16x384xf32>
    %55 = tpu.matmul %54, %3, %cst_22 {dimension_numbers = #tpu.dot_dimension_numbers<[1], [0], [0], [1], [0, 0, 1, 1], [], []>} : vector<16x32xbf16>, vector<32x384xbf16>, vector<16x384xf32> -> vector<16x384xf32>
    %56 = arith.addf %55, %7 : vector<16x384xf32>
    %57 = arith.index_cast %c1_i32 : i32 to index
    %c0_23 = arith.constant 0 : index
    %c0_24 = arith.constant 0 : index
    %58 = vector.load %arg3[%57, %c0_23, %c0_24] : memref<8x16x1xf32, #tpu.memory_space<vmem>>, vector<1x16x1xf32>
    %59 = vector.shape_cast %58 : vector<1x16x1xf32> to vector<16x1xf32>
    %60 = arith.truncf %45 : vector<16x128xf32> to vector<16x128xbf16>
    %cst_25 = arith.constant dense<0.000000e+00> : vector<16x384xf32>
    %61 = tpu.matmul %60, %4, %cst_25 {dimension_numbers = #tpu.dot_dimension_numbers<[1], [0], [0], [1], [0, 0, 1, 1], [], []>} : vector<16x128xbf16>, vector<128x384xbf16>, vector<16x384xf32> -> vector<16x384xf32>
    %62 = vector.extract_strided_slice %56 {offsets = [0, 0], sizes = [16, 256], strides = [1, 1]} : vector<16x384xf32> to vector<16x256xf32>
    %63 = vector.extract_strided_slice %61 {offsets = [0, 0], sizes = [16, 256], strides = [1, 1]} : vector<16x384xf32> to vector<16x256xf32>
    %64 = arith.addf %62, %63 : vector<16x256xf32>
    %65 = arith.negf %64 : vector<16x256xf32>
    %66 = math.exp %65 : vector<16x256xf32>
    %cst_26 = arith.constant 1.000000e+00 : f32
    %67 = vector.broadcast %cst_26 : f32 to vector<16x256xf32>
    %68 = arith.addf %67, %66 : vector<16x256xf32>
    %69 = arith.divf %67, %68 : vector<16x256xf32>
    %70 = vector.extract_strided_slice %69 {offsets = [0, 0], sizes = [16, 128], strides = [1, 1]} : vector<16x256xf32> to vector<16x128xf32>
    %71 = vector.extract_strided_slice %69 {offsets = [0, 128], sizes = [16, 128], strides = [1, 1]} : vector<16x256xf32> to vector<16x128xf32>
    %72 = vector.extract_strided_slice %56 {offsets = [0, 256], sizes = [16, 128], strides = [1, 1]} : vector<16x384xf32> to vector<16x128xf32>
    %73 = vector.extract_strided_slice %61 {offsets = [0, 256], sizes = [16, 128], strides = [1, 1]} : vector<16x384xf32> to vector<16x128xf32>
    %74 = arith.addf %73, %10 : vector<16x128xf32>
    %75 = arith.mulf %70, %74 : vector<16x128xf32>
    %76 = arith.addf %72, %75 : vector<16x128xf32>
    %77 = math.tanh %76 : vector<16x128xf32>
    %cst_27 = arith.constant 1.000000e+00 : f32
    %78 = vector.broadcast %cst_27 : f32 to vector<16x128xf32>
    %79 = arith.subf %78, %71 : vector<16x128xf32>
    %80 = vector.broadcast %59 : vector<16x1xf32> to vector<16x128xf32>
    %81 = arith.mulf %80, %79 : vector<16x128xf32>
    %82 = arith.subf %77, %45 : vector<16x128xf32>
    %83 = arith.mulf %81, %82 : vector<16x128xf32>
    %84 = arith.addf %45, %83 : vector<16x128xf32>
    %85 = arith.truncf %84 : vector<16x128xf32> to vector<16x128xbf16>
    %86 = arith.index_cast %c1_i32 : i32 to index
    %c0_28 = arith.constant 0 : index
    %c0_29 = arith.constant 0 : index
    %87 = vector.load %arg9[%86, %c0_28, %c0_29] : memref<8x16x128xbf16, #tpu.memory_space<vmem>>, vector<1x16x128xbf16>
    %88 = vector.shape_cast %87 : vector<1x16x128xbf16> to vector<16x128xbf16>
    %89 = vector.shape_cast %85 : vector<16x128xbf16> to vector<1x16x128xbf16>
    tpu.vector_store %arg9[%86, %c0_28, %c0_29], %89 {strides = array<i32>} : memref<8x16x128xbf16, #tpu.memory_space<vmem>>, vector<1x16x128xbf16>,
    %c2_i32 = arith.constant 2 : i32
    %90 = arith.index_cast %c2_i32 : i32 to index
    %c0_30 = arith.constant 0 : index
    %c0_31 = arith.constant 0 : index
    %91 = vector.load %arg2[%90, %c0_30, %c0_31] : memref<8x16x32xf32, #tpu.memory_space<vmem>>, vector<1x16x32xf32>
    %92 = vector.shape_cast %91 : vector<1x16x32xf32> to vector<16x32xf32>
    %93 = arith.truncf %92 : vector<16x32xf32> to vector<16x32xbf16>
    %cst_32 = arith.constant dense<0.000000e+00> : vector<16x384xf32>
    %94 = tpu.matmul %93, %3, %cst_32 {dimension_numbers = #tpu.dot_dimension_numbers<[1], [0], [0], [1], [0, 0, 1, 1], [], []>} : vector<16x32xbf16>, vector<32x384xbf16>, vector<16x384xf32> -> vector<16x384xf32>
    %95 = arith.addf %94, %7 : vector<16x384xf32>
    %96 = arith.index_cast %c2_i32 : i32 to index
    %c0_33 = arith.constant 0 : index
    %c0_34 = arith.constant 0 : index
    %97 = vector.load %arg3[%96, %c0_33, %c0_34] : memref<8x16x1xf32, #tpu.memory_space<vmem>>, vector<1x16x1xf32>
    %98 = vector.shape_cast %97 : vector<1x16x1xf32> to vector<16x1xf32>
    %99 = arith.truncf %84 : vector<16x128xf32> to vector<16x128xbf16>
    %cst_35 = arith.constant dense<0.000000e+00> : vector<16x384xf32>
    %100 = tpu.matmul %99, %4, %cst_35 {dimension_numbers = #tpu.dot_dimension_numbers<[1], [0], [0], [1], [0, 0, 1, 1], [], []>} : vector<16x128xbf16>, vector<128x384xbf16>, vector<16x384xf32> -> vector<16x384xf32>
    %101 = vector.extract_strided_slice %95 {offsets = [0, 0], sizes = [16, 256], strides = [1, 1]} : vector<16x384xf32> to vector<16x256xf32>
    %102 = vector.extract_strided_slice %100 {offsets = [0, 0], sizes = [16, 256], strides = [1, 1]} : vector<16x384xf32> to vector<16x256xf32>
    %103 = arith.addf %101, %102 : vector<16x256xf32>
    %104 = arith.negf %103 : vector<16x256xf32>
    %105 = math.exp %104 : vector<16x256xf32>
    %cst_36 = arith.constant 1.000000e+00 : f32
    %106 = vector.broadcast %cst_36 : f32 to vector<16x256xf32>
    %107 = arith.addf %106, %105 : vector<16x256xf32>
    %108 = arith.divf %106, %107 : vector<16x256xf32>
    %109 = vector.extract_strided_slice %108 {offsets = [0, 0], sizes = [16, 128], strides = [1, 1]} : vector<16x256xf32> to vector<16x128xf32>
    %110 = vector.extract_strided_slice %108 {offsets = [0, 128], sizes = [16, 128], strides = [1, 1]} : vector<16x256xf32> to vector<16x128xf32>
    %111 = vector.extract_strided_slice %95 {offsets = [0, 256], sizes = [16, 128], strides = [1, 1]} : vector<16x384xf32> to vector<16x128xf32>
    %112 = vector.extract_strided_slice %100 {offsets = [0, 256], sizes = [16, 128], strides = [1, 1]} : vector<16x384xf32> to vector<16x128xf32>
    %113 = arith.addf %112, %10 : vector<16x128xf32>
    %114 = arith.mulf %109, %113 : vector<16x128xf32>
    %115 = arith.addf %111, %114 : vector<16x128xf32>
    %116 = math.tanh %115 : vector<16x128xf32>
    %cst_37 = arith.constant 1.000000e+00 : f32
    %117 = vector.broadcast %cst_37 : f32 to vector<16x128xf32>
    %118 = arith.subf %117, %110 : vector<16x128xf32>
    %119 = vector.broadcast %98 : vector<16x1xf32> to vector<16x128xf32>
    %120 = arith.mulf %119, %118 : vector<16x128xf32>
    %121 = arith.subf %116, %84 : vector<16x128xf32>
    %122 = arith.mulf %120, %121 : vector<16x128xf32>
    %123 = arith.addf %84, %122 : vector<16x128xf32>
    %124 = arith.truncf %123 : vector<16x128xf32> to vector<16x128xbf16>
    %125 = arith.index_cast %c2_i32 : i32 to index
    %c0_38 = arith.constant 0 : index
    %c0_39 = arith.constant 0 : index
    %126 = vector.load %arg9[%125, %c0_38, %c0_39] : memref<8x16x128xbf16, #tpu.memory_space<vmem>>, vector<1x16x128xbf16>
    %127 = vector.shape_cast %126 : vector<1x16x128xbf16> to vector<16x128xbf16>
    %128 = vector.shape_cast %124 : vector<16x128xbf16> to vector<1x16x128xbf16>
    tpu.vector_store %arg9[%125, %c0_38, %c0_39], %128 {strides = array<i32>} : memref<8x16x128xbf16, #tpu.memory_space<vmem>>, vector<1x16x128xbf16>,
    %c3_i32 = arith.constant 3 : i32
    %129 = arith.index_cast %c3_i32 : i32 to index
    %c0_40 = arith.constant 0 : index
    %c0_41 = arith.constant 0 : index
    %130 = vector.load %arg2[%129, %c0_40, %c0_41] : memref<8x16x32xf32, #tpu.memory_space<vmem>>, vector<1x16x32xf32>
    %131 = vector.shape_cast %130 : vector<1x16x32xf32> to vector<16x32xf32>
    %132 = arith.truncf %131 : vector<16x32xf32> to vector<16x32xbf16>
    %cst_42 = arith.constant dense<0.000000e+00> : vector<16x384xf32>
    %133 = tpu.matmul %132, %3, %cst_42 {dimension_numbers = #tpu.dot_dimension_numbers<[1], [0], [0], [1], [0, 0, 1, 1], [], []>} : vector<16x32xbf16>, vector<32x384xbf16>, vector<16x384xf32> -> vector<16x384xf32>
    %134 = arith.addf %133, %7 : vector<16x384xf32>
    %135 = arith.index_cast %c3_i32 : i32 to index
    %c0_43 = arith.constant 0 : index
    %c0_44 = arith.constant 0 : index
    %136 = vector.load %arg3[%135, %c0_43, %c0_44] : memref<8x16x1xf32, #tpu.memory_space<vmem>>, vector<1x16x1xf32>
    %137 = vector.shape_cast %136 : vector<1x16x1xf32> to vector<16x1xf32>
    %138 = arith.truncf %123 : vector<16x128xf32> to vector<16x128xbf16>
    %cst_45 = arith.constant dense<0.000000e+00> : vector<16x384xf32>
    %139 = tpu.matmul %138, %4, %cst_45 {dimension_numbers = #tpu.dot_dimension_numbers<[1], [0], [0], [1], [0, 0, 1, 1], [], []>} : vector<16x128xbf16>, vector<128x384xbf16>, vector<16x384xf32> -> vector<16x384xf32>
    %140 = vector.extract_strided_slice %134 {offsets = [0, 0], sizes = [16, 256], strides = [1, 1]} : vector<16x384xf32> to vector<16x256xf32>
    %141 = vector.extract_strided_slice %139 {offsets = [0, 0], sizes = [16, 256], strides = [1, 1]} : vector<16x384xf32> to vector<16x256xf32>
    %142 = arith.addf %140, %141 : vector<16x256xf32>
    %143 = arith.negf %142 : vector<16x256xf32>
    %144 = math.exp %143 : vector<16x256xf32>
    %cst_46 = arith.constant 1.000000e+00 : f32
    %145 = vector.broadcast %cst_46 : f32 to vector<16x256xf32>
    %146 = arith.addf %145, %144 : vector<16x256xf32>
    %147 = arith.divf %145, %146 : vector<16x256xf32>
    %148 = vector.extract_strided_slice %147 {offsets = [0, 0], sizes = [16, 128], strides = [1, 1]} : vector<16x256xf32> to vector<16x128xf32>
    %149 = vector.extract_strided_slice %147 {offsets = [0, 128], sizes = [16, 128], strides = [1, 1]} : vector<16x256xf32> to vector<16x128xf32>
    %150 = vector.extract_strided_slice %134 {offsets = [0, 256], sizes = [16, 128], strides = [1, 1]} : vector<16x384xf32> to vector<16x128xf32>
    %151 = vector.extract_strided_slice %139 {offsets = [0, 256], sizes = [16, 128], strides = [1, 1]} : vector<16x384xf32> to vector<16x128xf32>
    %152 = arith.addf %151, %10 : vector<16x128xf32>
    %153 = arith.mulf %148, %152 : vector<16x128xf32>
    %154 = arith.addf %150, %153 : vector<16x128xf32>
    %155 = math.tanh %154 : vector<16x128xf32>
    %cst_47 = arith.constant 1.000000e+00 : f32
    %156 = vector.broadcast %cst_47 : f32 to vector<16x128xf32>
    %157 = arith.subf %156, %149 : vector<16x128xf32>
    %158 = vector.broadcast %137 : vector<16x1xf32> to vector<16x128xf32>
    %159 = arith.mulf %158, %157 : vector<16x128xf32>
    %160 = arith.subf %155, %123 : vector<16x128xf32>
    %161 = arith.mulf %159, %160 : vector<16x128xf32>
    %162 = arith.addf %123, %161 : vector<16x128xf32>
    %163 = arith.truncf %162 : vector<16x128xf32> to vector<16x128xbf16>
    %164 = arith.index_cast %c3_i32 : i32 to index
    %c0_48 = arith.constant 0 : index
    %c0_49 = arith.constant 0 : index
    %165 = vector.load %arg9[%164, %c0_48, %c0_49] : memref<8x16x128xbf16, #tpu.memory_space<vmem>>, vector<1x16x128xbf16>
    %166 = vector.shape_cast %165 : vector<1x16x128xbf16> to vector<16x128xbf16>
    %167 = vector.shape_cast %163 : vector<16x128xbf16> to vector<1x16x128xbf16>
    tpu.vector_store %arg9[%164, %c0_48, %c0_49], %167 {strides = array<i32>} : memref<8x16x128xbf16, #tpu.memory_space<vmem>>, vector<1x16x128xbf16>,
    %c4_i32 = arith.constant 4 : i32
    %168 = arith.index_cast %c4_i32 : i32 to index
    %c0_50 = arith.constant 0 : index
    %c0_51 = arith.constant 0 : index
    %169 = vector.load %arg2[%168, %c0_50, %c0_51] : memref<8x16x32xf32, #tpu.memory_space<vmem>>, vector<1x16x32xf32>
    %170 = vector.shape_cast %169 : vector<1x16x32xf32> to vector<16x32xf32>
    %171 = arith.truncf %170 : vector<16x32xf32> to vector<16x32xbf16>
    %cst_52 = arith.constant dense<0.000000e+00> : vector<16x384xf32>
    %172 = tpu.matmul %171, %3, %cst_52 {dimension_numbers = #tpu.dot_dimension_numbers<[1], [0], [0], [1], [0, 0, 1, 1], [], []>} : vector<16x32xbf16>, vector<32x384xbf16>, vector<16x384xf32> -> vector<16x384xf32>
    %173 = arith.addf %172, %7 : vector<16x384xf32>
    %174 = arith.index_cast %c4_i32 : i32 to index
    %c0_53 = arith.constant 0 : index
    %c0_54 = arith.constant 0 : index
    %175 = vector.load %arg3[%174, %c0_53, %c0_54] : memref<8x16x1xf32, #tpu.memory_space<vmem>>, vector<1x16x1xf32>
    %176 = vector.shape_cast %175 : vector<1x16x1xf32> to vector<16x1xf32>
    %177 = arith.truncf %162 : vector<16x128xf32> to vector<16x128xbf16>
    %cst_55 = arith.constant dense<0.000000e+00> : vector<16x384xf32>
    %178 = tpu.matmul %177, %4, %cst_55 {dimension_numbers = #tpu.dot_dimension_numbers<[1], [0], [0], [1], [0, 0, 1, 1], [], []>} : vector<16x128xbf16>, vector<128x384xbf16>, vector<16x384xf32> -> vector<16x384xf32>
    %179 = vector.extract_strided_slice %173 {offsets = [0, 0], sizes = [16, 256], strides = [1, 1]} : vector<16x384xf32> to vector<16x256xf32>
    %180 = vector.extract_strided_slice %178 {offsets = [0, 0], sizes = [16, 256], strides = [1, 1]} : vector<16x384xf32> to vector<16x256xf32>
    %181 = arith.addf %179, %180 : vector<16x256xf32>
    %182 = arith.negf %181 : vector<16x256xf32>
    %183 = math.exp %182 : vector<16x256xf32>
    %cst_56 = arith.constant 1.000000e+00 : f32
    %184 = vector.broadcast %cst_56 : f32 to vector<16x256xf32>
    %185 = arith.addf %184, %183 : vector<16x256xf32>
    %186 = arith.divf %184, %185 : vector<16x256xf32>
    %187 = vector.extract_strided_slice %186 {offsets = [0, 0], sizes = [16, 128], strides = [1, 1]} : vector<16x256xf32> to vector<16x128xf32>
    %188 = vector.extract_strided_slice %186 {offsets = [0, 128], sizes = [16, 128], strides = [1, 1]} : vector<16x256xf32> to vector<16x128xf32>
    %189 = vector.extract_strided_slice %173 {offsets = [0, 256], sizes = [16, 128], strides = [1, 1]} : vector<16x384xf32> to vector<16x128xf32>
    %190 = vector.extract_strided_slice %178 {offsets = [0, 256], sizes = [16, 128], strides = [1, 1]} : vector<16x384xf32> to vector<16x128xf32>
    %191 = arith.addf %190, %10 : vector<16x128xf32>
    %192 = arith.mulf %187, %191 : vector<16x128xf32>
    %193 = arith.addf %189, %192 : vector<16x128xf32>
    %194 = math.tanh %193 : vector<16x128xf32>
    %cst_57 = arith.constant 1.000000e+00 : f32
    %195 = vector.broadcast %cst_57 : f32 to vector<16x128xf32>
    %196 = arith.subf %195, %188 : vector<16x128xf32>
    %197 = vector.broadcast %176 : vector<16x1xf32> to vector<16x128xf32>
    %198 = arith.mulf %197, %196 : vector<16x128xf32>
    %199 = arith.subf %194, %162 : vector<16x128xf32>
    %200 = arith.mulf %198, %199 : vector<16x128xf32>
    %201 = arith.addf %162, %200 : vector<16x128xf32>
    %202 = arith.truncf %201 : vector<16x128xf32> to vector<16x128xbf16>
    %203 = arith.index_cast %c4_i32 : i32 to index
    %c0_58 = arith.constant 0 : index
    %c0_59 = arith.constant 0 : index
    %204 = vector.load %arg9[%203, %c0_58, %c0_59] : memref<8x16x128xbf16, #tpu.memory_space<vmem>>, vector<1x16x128xbf16>
    %205 = vector.shape_cast %204 : vector<1x16x128xbf16> to vector<16x128xbf16>
    %206 = vector.shape_cast %202 : vector<16x128xbf16> to vector<1x16x128xbf16>
    tpu.vector_store %arg9[%203, %c0_58, %c0_59], %206 {strides = array<i32>} : memref<8x16x128xbf16, #tpu.memory_space<vmem>>, vector<1x16x128xbf16>,
    %c5_i32 = arith.constant 5 : i32
    %207 = arith.index_cast %c5_i32 : i32 to index
    %c0_60 = arith.constant 0 : index
    %c0_61 = arith.constant 0 : index
    %208 = vector.load %arg2[%207, %c0_60, %c0_61] : memref<8x16x32xf32, #tpu.memory_space<vmem>>, vector<1x16x32xf32>
    %209 = vector.shape_cast %208 : vector<1x16x32xf32> to vector<16x32xf32>
    %210 = arith.truncf %209 : vector<16x32xf32> to vector<16x32xbf16>
    %cst_62 = arith.constant dense<0.000000e+00> : vector<16x384xf32>
    %211 = tpu.matmul %210, %3, %cst_62 {dimension_numbers = #tpu.dot_dimension_numbers<[1], [0], [0], [1], [0, 0, 1, 1], [], []>} : vector<16x32xbf16>, vector<32x384xbf16>, vector<16x384xf32> -> vector<16x384xf32>
    %212 = arith.addf %211, %7 : vector<16x384xf32>
    %213 = arith.index_cast %c5_i32 : i32 to index
    %c0_63 = arith.constant 0 : index
    %c0_64 = arith.constant 0 : index
    %214 = vector.load %arg3[%213, %c0_63, %c0_64] : memref<8x16x1xf32, #tpu.memory_space<vmem>>, vector<1x16x1xf32>
    %215 = vector.shape_cast %214 : vector<1x16x1xf32> to vector<16x1xf32>
    %216 = arith.truncf %201 : vector<16x128xf32> to vector<16x128xbf16>
    %cst_65 = arith.constant dense<0.000000e+00> : vector<16x384xf32>
    %217 = tpu.matmul %216, %4, %cst_65 {dimension_numbers = #tpu.dot_dimension_numbers<[1], [0], [0], [1], [0, 0, 1, 1], [], []>} : vector<16x128xbf16>, vector<128x384xbf16>, vector<16x384xf32> -> vector<16x384xf32>
    %218 = vector.extract_strided_slice %212 {offsets = [0, 0], sizes = [16, 256], strides = [1, 1]} : vector<16x384xf32> to vector<16x256xf32>
    %219 = vector.extract_strided_slice %217 {offsets = [0, 0], sizes = [16, 256], strides = [1, 1]} : vector<16x384xf32> to vector<16x256xf32>
    %220 = arith.addf %218, %219 : vector<16x256xf32>
    %221 = arith.negf %220 : vector<16x256xf32>
    %222 = math.exp %221 : vector<16x256xf32>
    %cst_66 = arith.constant 1.000000e+00 : f32
    %223 = vector.broadcast %cst_66 : f32 to vector<16x256xf32>
    %224 = arith.addf %223, %222 : vector<16x256xf32>
    %225 = arith.divf %223, %224 : vector<16x256xf32>
    %226 = vector.extract_strided_slice %225 {offsets = [0, 0], sizes = [16, 128], strides = [1, 1]} : vector<16x256xf32> to vector<16x128xf32>
    %227 = vector.extract_strided_slice %225 {offsets = [0, 128], sizes = [16, 128], strides = [1, 1]} : vector<16x256xf32> to vector<16x128xf32>
    %228 = vector.extract_strided_slice %212 {offsets = [0, 256], sizes = [16, 128], strides = [1, 1]} : vector<16x384xf32> to vector<16x128xf32>
    %229 = vector.extract_strided_slice %217 {offsets = [0, 256], sizes = [16, 128], strides = [1, 1]} : vector<16x384xf32> to vector<16x128xf32>
    %230 = arith.addf %229, %10 : vector<16x128xf32>
    %231 = arith.mulf %226, %230 : vector<16x128xf32>
    %232 = arith.addf %228, %231 : vector<16x128xf32>
    %233 = math.tanh %232 : vector<16x128xf32>
    %cst_67 = arith.constant 1.000000e+00 : f32
    %234 = vector.broadcast %cst_67 : f32 to vector<16x128xf32>
    %235 = arith.subf %234, %227 : vector<16x128xf32>
    %236 = vector.broadcast %215 : vector<16x1xf32> to vector<16x128xf32>
    %237 = arith.mulf %236, %235 : vector<16x128xf32>
    %238 = arith.subf %233, %201 : vector<16x128xf32>
    %239 = arith.mulf %237, %238 : vector<16x128xf32>
    %240 = arith.addf %201, %239 : vector<16x128xf32>
    %241 = arith.truncf %240 : vector<16x128xf32> to vector<16x128xbf16>
    %242 = arith.index_cast %c5_i32 : i32 to index
    %c0_68 = arith.constant 0 : index
    %c0_69 = arith.constant 0 : index
    %243 = vector.load %arg9[%242, %c0_68, %c0_69] : memref<8x16x128xbf16, #tpu.memory_space<vmem>>, vector<1x16x128xbf16>
    %244 = vector.shape_cast %243 : vector<1x16x128xbf16> to vector<16x128xbf16>
    %245 = vector.shape_cast %241 : vector<16x128xbf16> to vector<1x16x128xbf16>
    tpu.vector_store %arg9[%242, %c0_68, %c0_69], %245 {strides = array<i32>} : memref<8x16x128xbf16, #tpu.memory_space<vmem>>, vector<1x16x128xbf16>,
    %c6_i32 = arith.constant 6 : i32
    %246 = arith.index_cast %c6_i32 : i32 to index
    %c0_70 = arith.constant 0 : index
    %c0_71 = arith.constant 0 : index
    %247 = vector.load %arg2[%246, %c0_70, %c0_71] : memref<8x16x32xf32, #tpu.memory_space<vmem>>, vector<1x16x32xf32>
    %248 = vector.shape_cast %247 : vector<1x16x32xf32> to vector<16x32xf32>
    %249 = arith.truncf %248 : vector<16x32xf32> to vector<16x32xbf16>
    %cst_72 = arith.constant dense<0.000000e+00> : vector<16x384xf32>
    %250 = tpu.matmul %249, %3, %cst_72 {dimension_numbers = #tpu.dot_dimension_numbers<[1], [0], [0], [1], [0, 0, 1, 1], [], []>} : vector<16x32xbf16>, vector<32x384xbf16>, vector<16x384xf32> -> vector<16x384xf32>
    %251 = arith.addf %250, %7 : vector<16x384xf32>
    %252 = arith.index_cast %c6_i32 : i32 to index
    %c0_73 = arith.constant 0 : index
    %c0_74 = arith.constant 0 : index
    %253 = vector.load %arg3[%252, %c0_73, %c0_74] : memref<8x16x1xf32, #tpu.memory_space<vmem>>, vector<1x16x1xf32>
    %254 = vector.shape_cast %253 : vector<1x16x1xf32> to vector<16x1xf32>
    %255 = arith.truncf %240 : vector<16x128xf32> to vector<16x128xbf16>
    %cst_75 = arith.constant dense<0.000000e+00> : vector<16x384xf32>
    %256 = tpu.matmul %255, %4, %cst_75 {dimension_numbers = #tpu.dot_dimension_numbers<[1], [0], [0], [1], [0, 0, 1, 1], [], []>} : vector<16x128xbf16>, vector<128x384xbf16>, vector<16x384xf32> -> vector<16x384xf32>
    %257 = vector.extract_strided_slice %251 {offsets = [0, 0], sizes = [16, 256], strides = [1, 1]} : vector<16x384xf32> to vector<16x256xf32>
    %258 = vector.extract_strided_slice %256 {offsets = [0, 0], sizes = [16, 256], strides = [1, 1]} : vector<16x384xf32> to vector<16x256xf32>
    %259 = arith.addf %257, %258 : vector<16x256xf32>
    %260 = arith.negf %259 : vector<16x256xf32>
    %261 = math.exp %260 : vector<16x256xf32>
    %cst_76 = arith.constant 1.000000e+00 : f32
    %262 = vector.broadcast %cst_76 : f32 to vector<16x256xf32>
    %263 = arith.addf %262, %261 : vector<16x256xf32>
    %264 = arith.divf %262, %263 : vector<16x256xf32>
    %265 = vector.extract_strided_slice %264 {offsets = [0, 0], sizes = [16, 128], strides = [1, 1]} : vector<16x256xf32> to vector<16x128xf32>
    %266 = vector.extract_strided_slice %264 {offsets = [0, 128], sizes = [16, 128], strides = [1, 1]} : vector<16x256xf32> to vector<16x128xf32>
    %267 = vector.extract_strided_slice %251 {offsets = [0, 256], sizes = [16, 128], strides = [1, 1]} : vector<16x384xf32> to vector<16x128xf32>
    %268 = vector.extract_strided_slice %256 {offsets = [0, 256], sizes = [16, 128], strides = [1, 1]} : vector<16x384xf32> to vector<16x128xf32>
    %269 = arith.addf %268, %10 : vector<16x128xf32>
    %270 = arith.mulf %265, %269 : vector<16x128xf32>
    %271 = arith.addf %267, %270 : vector<16x128xf32>
    %272 = math.tanh %271 : vector<16x128xf32>
    %cst_77 = arith.constant 1.000000e+00 : f32
    %273 = vector.broadcast %cst_77 : f32 to vector<16x128xf32>
    %274 = arith.subf %273, %266 : vector<16x128xf32>
    %275 = vector.broadcast %254 : vector<16x1xf32> to vector<16x128xf32>
    %276 = arith.mulf %275, %274 : vector<16x128xf32>
    %277 = arith.subf %272, %240 : vector<16x128xf32>
    %278 = arith.mulf %276, %277 : vector<16x128xf32>
    %279 = arith.addf %240, %278 : vector<16x128xf32>
    %280 = arith.truncf %279 : vector<16x128xf32> to vector<16x128xbf16>
    %281 = arith.index_cast %c6_i32 : i32 to index
    %c0_78 = arith.constant 0 : index
    %c0_79 = arith.constant 0 : index
    %282 = vector.load %arg9[%281, %c0_78, %c0_79] : memref<8x16x128xbf16, #tpu.memory_space<vmem>>, vector<1x16x128xbf16>
    %283 = vector.shape_cast %282 : vector<1x16x128xbf16> to vector<16x128xbf16>
    %284 = vector.shape_cast %280 : vector<16x128xbf16> to vector<1x16x128xbf16>
    tpu.vector_store %arg9[%281, %c0_78, %c0_79], %284 {strides = array<i32>} : memref<8x16x128xbf16, #tpu.memory_space<vmem>>, vector<1x16x128xbf16>,
    %c7_i32 = arith.constant 7 : i32
    %285 = arith.index_cast %c7_i32 : i32 to index
    %c0_80 = arith.constant 0 : index
    %c0_81 = arith.constant 0 : index
    %286 = vector.load %arg2[%285, %c0_80, %c0_81] : memref<8x16x32xf32, #tpu.memory_space<vmem>>, vector<1x16x32xf32>
    %287 = vector.shape_cast %286 : vector<1x16x32xf32> to vector<16x32xf32>
    %288 = arith.truncf %287 : vector<16x32xf32> to vector<16x32xbf16>
    %cst_82 = arith.constant dense<0.000000e+00> : vector<16x384xf32>
    %289 = tpu.matmul %288, %3, %cst_82 {dimension_numbers = #tpu.dot_dimension_numbers<[1], [0], [0], [1], [0, 0, 1, 1], [], []>} : vector<16x32xbf16>, vector<32x384xbf16>, vector<16x384xf32> -> vector<16x384xf32>
    %290 = arith.addf %289, %7 : vector<16x384xf32>
    %291 = arith.index_cast %c7_i32 : i32 to index
    %c0_83 = arith.constant 0 : index
    %c0_84 = arith.constant 0 : index
    %292 = vector.load %arg3[%291, %c0_83, %c0_84] : memref<8x16x1xf32, #tpu.memory_space<vmem>>, vector<1x16x1xf32>
    %293 = vector.shape_cast %292 : vector<1x16x1xf32> to vector<16x1xf32>
    %294 = arith.truncf %279 : vector<16x128xf32> to vector<16x128xbf16>
    %cst_85 = arith.constant dense<0.000000e+00> : vector<16x384xf32>
    %295 = tpu.matmul %294, %4, %cst_85 {dimension_numbers = #tpu.dot_dimension_numbers<[1], [0], [0], [1], [0, 0, 1, 1], [], []>} : vector<16x128xbf16>, vector<128x384xbf16>, vector<16x384xf32> -> vector<16x384xf32>
    %296 = vector.extract_strided_slice %290 {offsets = [0, 0], sizes = [16, 256], strides = [1, 1]} : vector<16x384xf32> to vector<16x256xf32>
    %297 = vector.extract_strided_slice %295 {offsets = [0, 0], sizes = [16, 256], strides = [1, 1]} : vector<16x384xf32> to vector<16x256xf32>
    %298 = arith.addf %296, %297 : vector<16x256xf32>
    %299 = arith.negf %298 : vector<16x256xf32>
    %300 = math.exp %299 : vector<16x256xf32>
    %cst_86 = arith.constant 1.000000e+00 : f32
    %301 = vector.broadcast %cst_86 : f32 to vector<16x256xf32>
    %302 = arith.addf %301, %300 : vector<16x256xf32>
    %303 = arith.divf %301, %302 : vector<16x256xf32>
    %304 = vector.extract_strided_slice %303 {offsets = [0, 0], sizes = [16, 128], strides = [1, 1]} : vector<16x256xf32> to vector<16x128xf32>
    %305 = vector.extract_strided_slice %303 {offsets = [0, 128], sizes = [16, 128], strides = [1, 1]} : vector<16x256xf32> to vector<16x128xf32>
    %306 = vector.extract_strided_slice %290 {offsets = [0, 256], sizes = [16, 128], strides = [1, 1]} : vector<16x384xf32> to vector<16x128xf32>
    %307 = vector.extract_strided_slice %295 {offsets = [0, 256], sizes = [16, 128], strides = [1, 1]} : vector<16x384xf32> to vector<16x128xf32>
    %308 = arith.addf %307, %10 : vector<16x128xf32>
    %309 = arith.mulf %304, %308 : vector<16x128xf32>
    %310 = arith.addf %306, %309 : vector<16x128xf32>
    %311 = math.tanh %310 : vector<16x128xf32>
    %cst_87 = arith.constant 1.000000e+00 : f32
    %312 = vector.broadcast %cst_87 : f32 to vector<16x128xf32>
    %313 = arith.subf %312, %305 : vector<16x128xf32>
    %314 = vector.broadcast %293 : vector<16x1xf32> to vector<16x128xf32>
    %315 = arith.mulf %314, %313 : vector<16x128xf32>
    %316 = arith.subf %311, %279 : vector<16x128xf32>
    %317 = arith.mulf %315, %316 : vector<16x128xf32>
    %318 = arith.addf %279, %317 : vector<16x128xf32>
    %319 = arith.truncf %318 : vector<16x128xf32> to vector<16x128xbf16>
    %320 = arith.index_cast %c7_i32 : i32 to index
    %c0_88 = arith.constant 0 : index
    %c0_89 = arith.constant 0 : index
    %321 = vector.load %arg9[%320, %c0_88, %c0_89] : memref<8x16x128xbf16, #tpu.memory_space<vmem>>, vector<1x16x128xbf16>
    %322 = vector.shape_cast %321 : vector<1x16x128xbf16> to vector<16x128xbf16>
    %323 = vector.shape_cast %319 : vector<16x128xbf16> to vector<1x16x128xbf16>
    tpu.vector_store %arg9[%320, %c0_88, %c0_89], %323 {strides = array<i32>} : memref<8x16x128xbf16, #tpu.memory_space<vmem>>, vector<1x16x128xbf16>,
    %c8_i32 = arith.constant 8 : i32
    %c0_90 = arith.constant 0 : index
    %c0_91 = arith.constant 0 : index
    %324 = vector.load %arg10[%c0_90, %c0_91] : memref<16x128xf32, #tpu.memory_space<vmem>>, vector<16x128xf32>
    tpu.vector_store %arg10[%c0_90, %c0_91], %318 {strides = array<i32>} : memref<16x128xf32, #tpu.memory_space<vmem>>, vector<16x128xf32>,
    return
  }
  func.func @transform_0(%arg0: i32, %arg1: i32) -> (i32, i32, i32) {
    %c0_i32 = arith.constant 0 : i32
    %c0_i32_0 = arith.constant 0 : i32
    return %arg1, %arg0, %c0_i32 : i32, i32, i32
  }
  func.func @transform_1(%arg0: i32, %arg1: i32) -> (i32, i32, i32) {
    %c0_i32 = arith.constant 0 : i32
    %c0_i32_0 = arith.constant 0 : i32
    return %arg1, %arg0, %c0_i32 : i32, i32, i32
  }
  func.func @transform_2(%arg0: i32, %arg1: i32) -> (i32, i32) {
    %c0_i32 = arith.constant 0 : i32
    %c0_i32_0 = arith.constant 0 : i32
    return %arg0, %c0_i32 : i32, i32
  }
  func.func @transform_3(%arg0: i32, %arg1: i32) -> (i32, i32) {
    %c0_i32 = arith.constant 0 : i32
    %c0_i32_0 = arith.constant 0 : i32
    %c0_i32_1 = arith.constant 0 : i32
    return %c0_i32, %c0_i32_0 : i32, i32
  }
  func.func @transform_4(%arg0: i32, %arg1: i32) -> (i32, i32) {
    %c0_i32 = arith.constant 0 : i32
    %c0_i32_0 = arith.constant 0 : i32
    %c0_i32_1 = arith.constant 0 : i32
    return %c0_i32, %c0_i32_0 : i32, i32
  }
  func.func @transform_5(%arg0: i32, %arg1: i32) -> (i32, i32) {
    %c0_i32 = arith.constant 0 : i32
    %c0_i32_0 = arith.constant 0 : i32
    %c0_i32_1 = arith.constant 0 : i32
    return %c0_i32, %c0_i32_0 : i32, i32
  }
  func.func @transform_6(%arg0: i32, %arg1: i32) -> (i32, i32) {
    %c0_i32 = arith.constant 0 : i32
    %c0_i32_0 = arith.constant 0 : i32
    %c0_i32_1 = arith.constant 0 : i32
    return %c0_i32, %c0_i32_0 : i32, i32
  }
  func.func @transform_7(%arg0: i32, %arg1: i32) -> (i32, i32, i32) {
    %c0_i32 = arith.constant 0 : i32
    %c0_i32_0 = arith.constant 0 : i32
    return %arg1, %arg0, %c0_i32 : i32, i32, i32
  }
  func.func @transform_8(%arg0: i32, %arg1: i32) -> (i32, i32) {
    %c0_i32 = arith.constant 0 : i32
    %c0_i32_0 = arith.constant 0 : i32
    return %arg0, %c0_i32 : i32, i32
  }
}

</mosaic_0001>

<bundles_post_ra>
// kernel: tpu_custom_call.1
= control target key start
LH: loop header
LB: loop body
LE: loop exit
PB: predicated region body
PF: predicated region fallthrough
CT: control target
= control target key end

     0   :  { %s4389_s0 = inlined_call_operand.vmem [shape: f32[24,16,32], index: 0, kind: input, shape index: {}]   ;;  %s4390_s1 = inlined_call_operand.vmem [shape: f32[24,16,1], index: 1, kind: input, shape index: {}]   ;;  %s4391_s2 = inlined_call_operand.vmem [shape: f32[16,128], index: 2, kind: input, shape index: {}]   ;;  %s4392_s3 = inlined_call_operand.hbm [shape: bf16[32,384], index: 3, kind: input, shape index: {}]   ;;  %s4393_s4 = inlined_call_operand.hbm [shape: f32[1,384], index: 4, kind: input, shape index: {}]   ;;  %s4394_s5 = inlined_call_operand.hbm [shape: bf16[128,384], index: 5, kind: input, shape index: {}]   ;;  %s4395_s6 = inlined_call_operand.vmem [shape: f32[1,128], index: 6, kind: input, shape index: {}]   ;;  %s4396_s7 = inlined_call_operand.hbm [shape: bf16[24,16,128], index: 7, kind: output, shape index: {0}]   ;;  %s4397_s8 = inlined_call_operand.hbm [shape: f32[16,128], index: 8, kind: output, shape index: {1}]  }
   0x1   :  { %4402 = sst [smem:[#allocation20_spill]] %s4393_s4 }
   0x2   :  { %14 = vsyncpa [#allocation3], 0 }
   0x3   :  { %15 = vsyncpa [#allocation6], 0 }
   0x4   :  { %16 = vsyncpa [#allocation4], 0 }
   0x5   :  { %18 = vsyncpa [#allocation4 + $0x1], 0 }
   0x6   :  { %19 = vsyncpa [#allocation10], 0  ;;  %s3431_s27 = smov 0   ;;  %s3433_s28 = smov 0  }
   0x7   :  { %s3435_s29 = smov 0   ;;  %s3437_s30 = smov 0  }
   0x8   :  { %s3439_s9 = smov 0   ;;  %s3441_s10 = smov 0  }
   0x9 LB: > { %4403 = sst [smem:[#allocation15_spill]] %s3361_s29  ;;  %s2572_s11 = sadd.s32 4294967295, %s3373_s10   ;;  %s3373_s10 = sphi %s3441_s10, %s25_s10   ;;  %s3369_s9 = sphi %s3439_s9, %s4433_s9   ;;  %s3365_s30 = sphi %s3437_s30, %s4432_s30   ;;  %s3361_s29 = sphi %s3435_s29, %s4431_s29   ;;  %s3357_s28 = sphi %s3433_s28, %s4435_s28   ;;  %s3353_s27 = sphi %s3431_s27, %s4434_s27  }
   0xa   : > { %4404 = sst [smem:[#allocation16_spill]] %s3369_s9  ;;  %s2573_s12 = sadd.s32 4294967294, %s3373_s10  }
   0xb   : > { %s34_s13 = sadd.s32 1, %s3369_s9  ;;  %s212_s14 = sadd.s32 1, %s3361_s29 }
   0xc   : > { %p35_p0 = scmp.ge.s32.totalorder %s34_s13, 3  ;;  %p222_p1 = scmp.ne.s32.totalorder %s3361_s29, %s3357_s28 }
   0xd   : > { %p3467_p2 = scmp.eq.s32.totalorder %s2572_s11, 2  ;;  %p228_p3 = scmp.ne.s32.totalorder %s3357_s28, %s3353_s27 }
   0xe   : > { %s4437_s13 = smov (%p35_p0, %s34_s13), 0  ;;  %p229_p5 = scmp.eq.s32.totalorder %s2573_s12, 2 }
   0xf   : > { %4406 = sst [smem:[#allocation17_spill]] %s4437_s13  ;;  %p3477_p4 = por %p3467_p2, %p222_p1 }
  0x10   : > { %s207_s17 = ssub.s32 %s3369_s9, %s4437_s13  ;;  %p2574_p6 = scmp.ge.s32.totalorder %s3373_s10, 1 }
  0x11   : > { %p210_p7 = scmp.eq.s32.totalorder %s207_s17, 0  ;;  %p3484_p8 = por %p229_p5, %p228_p3 }
  0x12   : > { %p262_p9 = scmp.lt.s32.totalorder %s3373_s10, 4  ;;  %p3496_p11 = scmp.eq.s32.totalorder %s2572_s11, 0 }
  0x13   : > { %s4408_s18 = scalar_select %p3484_p8, 1, 0 }
  0x14   : > { %s3490_s19 = scalar_select %p210_p7, %s3361_s29, %s212_s14  }
  0x15   : > { %4409 = sst [smem:[#allocation18_spill]] %s4408_s18  ;;  %p3492_p10 = pnand %p2574_p6, %p262_p9 }
  0x16   : > { %4410 = sst [smem:[#allocation19_spill]] %s3490_s19  ;;  %s3375_s25 = smov [#allocation5]  }
  0x17   : > { %s4413_s4 = sld [smem:[#allocation20_spill]]  ;;  %p2917_p12 = pneg %p3492_p10 }
  0x18   : > { %s299_s26 = sshll.u32 %s3375_s25, 4  ;;  %s282_s17 = sshll.u32 %s4392_s3, 4  ;;  %s300_s26 = int_to_ptr.vmem [resolvable:$true] %s299_s26  ;;  %s283_s17 = int_to_ptr.hbm [resolvable:$true] %s282_s17 }
  0x19   : > { %p3507_p13 = pnand %p3496_p11, %p2917_p12  ;;  %s3376_s22 = smov [#allocation2]  }
  0x1a   : > { %s284_s23 = sshll.u32 %s3376_s22, 4  ;;  %s308_s13 = sshll.u32 %s4394_s5, 4  ;;  %s285_s23 = int_to_ptr.vmem [resolvable:$true] %s284_s23  ;;  %s309_s13 = int_to_ptr.hbm [resolvable:$true] %s308_s13 }
  0x1b   : > { %s3377_s9 = smov 192   ;;  %s3378_s19 = smov 12  }
  0x1c   : > { %2920 = dma.hbm_to_vmem [thread:$0]  (!%p3507_p13), %s283_s17, 768, %s285_s23, [#allocation3], %s3377_s9, %s3377_s9, %s3378_s19  }
  0x1d   : > { %s297_s24 = sshll.u32 %s4413_s4, 4  ;;  %s3379_s29 = smov [#allocation7]   ;;  %s298_s24 = int_to_ptr.hbm [resolvable:$true] %s297_s24 }
  0x1e   : > { %2923 = dma.hbm_to_vmem [thread:$0]  (!%p3507_p13), %s298_s24, 48, %s300_s26, [#allocation6]  }
  0x1f   : > { %s310_s18 = sshll.u32 %s3379_s29, 4  ;;  %359 = sbr.rel (%p3492_p10) target bundleno = 1611 (0x64b), region = 48  ;;  %s311_s18 = int_to_ptr.vmem [resolvable:$true] %s310_s18 }
  0x20   : > { %2926 = dma.hbm_to_vmem [thread:$0]  (!%p3507_p13), %s309_s13, 3072, %s311_s18, [#allocation6], %s3377_s9, %s3377_s9, %s3378_s19  }
  0x24   : > { %3336 = dma.done.wait (%p3496_p11), [#allocation3], 768  }
  0x25   : > { %3338 = vsyncadd (%p3496_p11), [#allocation3], 4294966528 }
  0x26   : > { %3340 = dma.done.wait (%p3496_p11), [#allocation6], 3120  }
  0x27   : > { %3342 = vsyncadd (%p3496_p11), [#allocation6], 4294964176  ;;  %s419_s4 = sand.u32 1, %s3357_s28   ;;  %s2585_s29 = sshll.u32 %s3365_s30, 3 }
  0x28   : > { %s2584_s9 = sshll.u32 %s419_s4, 6  ;;  %p426_p0 = scmp.lt.s32.totalorder %s2585_s29, 23 }
  0x29   : > { %s3547_s12 = scalar_lea.vmem [#allocation8], %s2584_s9  ;;  %p2591_p1 = scmp.ne.s32.totalorder %s3365_s30, 0 }
  0x2a   : > { %s4439_s29 = smov (!%p426_p0, %s2585_s29), 23 }
  0x2b   : > { %s2818_s13 = sshll.u32 %s4439_s29, 4  ;;  %461 = sbr.rel (%p2591_p1) target bundleno = 51 (0x33), region = 64 }
  0x2c   : > { %s3540_s20 = scalar_lea.vmem %s4389_s0, %s2818_s13  ;;  %s3545_s21 = scalar_lea.vmem %s4390_s1, %s2818_s13 }
  0x30   : > { %v462_v0 = vld [vmem:[%s4391_s2] sm:$0xff]  ;;  %v463_v1 = vld [vmem:[%s4391_s2 + $0x8] sm:$0xff] }
  0x31   : > { %464 = vst [vmem:[#allocation9] sm:$0xff] %v462_v0 }
  0x32   : > { %465 = vst [vmem:[#allocation9 + $0x8] sm:$0xff] %v463_v1 }
  0x33 PF: > { %v2606_v2 = vld [vmem:[#allocation2 + $0x18] sm:$0xf]  ;;  %v2824_v3 = vld [vmem:[#allocation2 + $0x20] sm:$0xf0]  ;;  %v2705_v4 = vld [vmem:[#allocation7 + $0xa8] sm:$0xf] }
  0x34   : > { %v3556_v5 = vor.u32 %v2824_v3, %v2606_v2  ;;  %v2848_v6 = vld [vmem:[#allocation7 + $0xb0] sm:$0xf0]  ;;  %v2594_v7 = vld [vmem:[#allocation2] sm:$0xf]  ;;  %v2821_v8 = vld [vmem:[#allocation2 + $0x8] sm:$0xf0] }
  0x35   : > { %v3558_v9 = vor.u32 %v2848_v6, %v2705_v4  ;;  %v2693_v10 = vld [vmem:[#allocation7 + $0x90] sm:$0xf]  ;;  %v2845_v11 = vld [vmem:[#allocation7 + $0x98] sm:$0xf0]  ;;  %v2847_v12 = vld [vmem:[#allocation7 + $0xac] sm:$0xf]  ;;  %v3561_v13 = vor.u32 %v2821_v8, %v2594_v7 }
  0x36   : > { %565 = vmatpush.bf16.msra.mxu0 %v3556_v5  ;;  %v2707_v14 = vld [vmem:[#allocation7 + $0xb4] sm:$0xf0]  ;;  %v3564_v15 = vor.u32 %v2845_v11, %v2693_v10  ;;  %v2842_v18 = vld [vmem:[#allocation7 + $0x80] sm:$0xf0]  ;;  %v2844_v19 = vld [vmem:[#allocation7 + $0x94] sm:$0xf] }
  0x37   : > { %732 = vmatpush.bf16.msra.mxu3 %v3558_v9  ;;  %v3566_v16 = vor.u32 %v2847_v12, %v2707_v14  ;;  %v2681_v17 = vld [vmem:[#allocation7 + $0x78] sm:$0xf]  ;;  %v2695_v20 = vld [vmem:[#allocation7 + $0x9c] sm:$0xf0]  ;;  %v520_v21 = vld [vmem:[%s3540_s20] sm:$0xff]  ;;  %vm555_vm0 = vcmask 261120  }
  0x38   : > { %v521_v22 = vld [vmem:[%s3540_s20 + $0x8] sm:$0xff]  ;;  %v3573_v23 = vor.u32 %v2842_v18, %v2681_v17  ;;  %v3575_v24 = vor.u32 %v2844_v19, %v2695_v20  ;;  %v2669_v25 = vld [vmem:[#allocation7 + $0x60] sm:$0xf]  ;;  %v2839_v26 = vld [vmem:[#allocation7 + $0x68] sm:$0xf0]  ;;  %v3380_v32 = vmov 0  }
  0x39   : > { %v3577_v27 = vpack.c.bf16 %v521_v22, %v520_v21  ;;  %v2823_v28 = vld [vmem:[#allocation2 + $0x1c] sm:$0xf]  ;;  %v2841_v29 = vld [vmem:[#allocation7 + $0x7c] sm:$0xf]  ;;  %v2608_v31 = vld [vmem:[#allocation2 + $0x24] sm:$0xf0]  ;;  %2999 = vset.pattern.permute.xlu0 %v3380_v32  ;;  %3000 = vset.pattern.permute.xlu1 %v3380_v32  ;;  %v3585_v36 = vor.u32 %v2839_v26, %v2669_v25 }
  0x3a   : > { %566 = vmatpush.bf16.msra.mxu0 %v3561_v13  ;;  %v2683_v30 = vld [vmem:[#allocation7 + $0x84] sm:$0xf0]  ;;  %v3581_v33 = vor.u32 %v2823_v28, %v2608_v31  ;;  %v2820_v34 = vld [vmem:[#allocation2 + $0x4] sm:$0xf]  ;;  %3001 = vset.pattern.permute.xlu2 %v3380_v32  ;;  %v2596_v35 = vld [vmem:[#allocation2 + $0xc] sm:$0xf0] }
  0x3b   : > { %733 = vmatpush.bf16.msra.mxu3 %v3564_v15  ;;  %v3587_v37 = vor.u32 %v2841_v29, %v2683_v30  ;;  %v2657_v38 = vld [vmem:[#allocation7 + $0x48] sm:$0xf]  ;;  %v2713_v39 = vld [vmem:[#allocation7 + $0xb0] sm:$0xf]  ;;  %v2849_v40 = vld [vmem:[#allocation7 + $0xb8] sm:$0xf0]  ;;  %v3590_v44 = vor.u32 %v2820_v34, %v2596_v35 }
  0x3c   : > { %v2836_v41 = vld [vmem:[#allocation7 + $0x50] sm:$0xf0]  ;;  %v2838_v42 = vld [vmem:[#allocation7 + $0x64] sm:$0xf]  ;;  %v2671_v43 = vld [vmem:[#allocation7 + $0x6c] sm:$0xf0]  ;;  %579 = vmatpush.bf16.msra.mxu1 %v3581_v33  ;;  %v3592_v45 = vor.u32 %v2849_v40, %v2713_v39 }
  0x3d   : > { %2616 = vmatmul.msk.bf16.vlgmr.msra.gmra.mxu0 %vm555_vm0, %v3577_v27  ;;  %v2701_v46 = vld [vmem:[#allocation7 + $0x98] sm:$0xf]  ;;  %v2846_v47 = vld [vmem:[#allocation7 + $0xa0] sm:$0xf0]  ;;  %v3596_v48 = vor.u32 %v2836_v41, %v2657_v38  ;;  %v3598_v49 = vor.u32 %v2838_v42, %v2671_v43  ;;  %v2645_v50 = vld [vmem:[#allocation7 + $0x30] sm:$0xf] }
  0x3e   : > { %746 = vmatpush.bf16.msrb.mxu0 %v3566_v16  ;;  %v2833_v51 = vld [vmem:[#allocation7 + $0x38] sm:$0xf0]  ;;  %v2835_v52 = vld [vmem:[#allocation7 + $0x4c] sm:$0xf]  ;;  %v2659_v53 = vld [vmem:[#allocation7 + $0x54] sm:$0xf0]  ;;  %v3602_v54 = vor.u32 %v2846_v47, %v2701_v46 }
  0x3f   : > { %734 = vmatpush.bf16.msra.mxu3 %v3573_v23  ;;  %v2689_v55 = vld [vmem:[#allocation7 + $0x80] sm:$0xf]  ;;  %v2614_v56 = vld [vmem:[#allocation2 + $0x20] sm:$0xf]  ;;  %v2825_v57 = vld [vmem:[#allocation2 + $0x28] sm:$0xf0]  ;;  %v3609_v62 = vor.u32 %v2833_v51, %v2645_v50  ;;  %v3611_v63 = vor.u32 %v2835_v52, %v2659_v53 }
  0x40   : > { %580 = vmatpush.bf16.msra.mxu1 %v3590_v44  ;;  %v2843_v58 = vld [vmem:[#allocation7 + $0x88] sm:$0xf0]  ;;  %v3604_v59 = vor.u32 %v2825_v57, %v2614_v56  ;;  %v2602_v61 = vld [vmem:[#allocation2 + $0x8] sm:$0xf]  ;;  %v2633_v0 = vld [vmem:[#allocation7 + $0x18] sm:$0xf] }
  0x41   : > { %v601_v60 = vld [vmem:[%s3545_s21] sm:$0xff]  ;;  %v2822_v1 = vld [vmem:[#allocation2 + $0x10] sm:$0xf0]  ;;  %v2830_v2 = vld [vmem:[#allocation7 + $0x20] sm:$0xf0]  ;;  %v3619_v7 = vor.u32 %v2843_v58, %v2689_v55  ;;  %s2851_s19 = sshll.u32 %s3365_s30, 6 }
  0x42   : > { %747 = vmatpush.bf16.msrb.mxu0 %v3575_v24  ;;  %v2832_v3 = vld [vmem:[#allocation7 + $0x34] sm:$0xf]  ;;  %v2647_v4 = vld [vmem:[#allocation7 + $0x3c] sm:$0xf0]  ;;  %593 = vmatpush.bf16.msra.mxu2 %v3604_v59  ;;  %v3616_v6 = vor.u32 %v2822_v1, %v2602_v61  ;;  %v2677_v8 = vld [vmem:[#allocation7 + $0x68] sm:$0xf]  ;;  %v3623_v11 = vor.u32 %v2830_v2, %v2633_v0  ;;  %s2394_s26 = scalar_lea.hbm %s4396_s7, %s2851_s19 }
  0x43   : > { %735 = vmatpush.bf16.msra.mxu3 %v3585_v36  ;;  %2617 = vmatmul.msk.bf16.vlgmr.msra.gmra.mxu1 %vm555_vm0, %v3577_v27  ;;  %v2840_v10 = vld [vmem:[#allocation7 + $0x70] sm:$0xf0]  ;;  %v3625_v12 = vor.u32 %v2832_v3, %v2647_v4  ;;  %v2621_v14 = vld [vmem:[#allocation7] sm:$0xf]  ;;  %v2827_v17 = vld [vmem:[#allocation7 + $0x8] sm:$0xf0] }
  0x44   : > { %760 = vmatpush.bf16.msrb.mxu1 %v3592_v45  ;;  %866 = vperm.xlu0 %2999, %v601_v60   ;;  %v2829_v18 = vld [vmem:[#allocation7 + $0x1c] sm:$0xf]  ;;  %v2635_v19 = vld [vmem:[#allocation7 + $0x24] sm:$0xf0]  ;;  %v3629_v20 = vor.u32 %v2840_v10, %v2677_v8  ;;  %v2665_v21 = vld [vmem:[#allocation7 + $0x50] sm:$0xf]  ;;  %v3635_v26 = vor.u32 %v2827_v17, %v2621_v14 }
  0x45   : > { %v2837_v22 = vld [vmem:[#allocation7 + $0x58] sm:$0xf0]  ;;  %v602_v25 = vld [vmem:[%s3545_s21 + $0x8] sm:$0xff]  ;;  %v3637_v28 = vor.u32 %v2829_v18, %v2635_v19  ;;  %v3639_v29 = vld [vmem:[#allocation9] sm:$0xff]  ;;  %s2414_s30 = sshll.u32 %s4397_s8, 4  ;;  %s2395_s22 = sshll.u32 %s3547_s12, 4  ;;  %s2415_s30 = int_to_ptr.hbm [resolvable:$true] %s2414_s30  ;;  %s2396_s22 = int_to_ptr.vmem [resolvable:$true] %s2395_s22 }
  0x46   : > { %748 = vmatpush.bf16.msrb.mxu0 %v3587_v37  ;;  %594 = vmatpush.bf16.msra.mxu2 %v3616_v6  ;;  %v3641_v30 = vld [vmem:[#allocation9 + $0x8] sm:$0xff]  ;;  %v2826_v31 = vld [vmem:[#allocation7 + $0x4] sm:$0xf]  ;;  %v2623_v32 = vld [vmem:[#allocation7 + $0xc] sm:$0xf0]  ;;  %v3646_v34 = vor.u32 %v2837_v22, %v2665_v21  ;;  %s2397_s23 = sshll.u32 %s2394_s26, 4  ;;  %s2398_s23 = int_to_ptr.hbm [resolvable:$true] %s2397_s23 }
  0x47   : > { %736 = vmatpush.bf16.msra.mxu3 %v3596_v48  ;;  %v603_v35 = vpack.c.bf16 %v3641_v30, %v3639_v29  ;;  %v2653_v38 = vld [vmem:[#allocation7 + $0x38] sm:$0xf]  ;;  %v2834_v39 = vld [vmem:[#allocation7 + $0x40] sm:$0xf0]  ;;  %v3653_v40 = vor.u32 %v2826_v31, %v2623_v32  ;;  %v2641_v41 = vld [vmem:[#allocation7 + $0x20] sm:$0xf] }
  0x48   : > { %761 = vmatpush.bf16.msrb.mxu1 %v3602_v54  ;;  %v2831_v42 = vld [vmem:[#allocation7 + $0x28] sm:$0xf0]  ;;  %v2750_v43 = vld [vmem:[%s3545_s21 + $0x30] sm:$0xff]  ;;  %v2629_v47 = vld [vmem:[#allocation7 + $0x8] sm:$0xf]  ;;  %s3382_s25 = smov 128  }
  0x49   : > { %2618 = vmatmul.msk.bf16.vlgmr.msra.gmra.mxu2 %vm555_vm0, %v3577_v27  ;;  %v3658_v27 = vor.u32 %v2834_v39, %v2653_v38  ;;  %v3665_v46 = vor.u32 %v2831_v42, %v2641_v41  ;;  %v2828_v50 = vld [vmem:[#allocation7 + $0x10] sm:$0xf0]  ;;  %v2789_v53 = vld [vmem:[%s3545_s21 + $0x60] sm:$0xff]  ;;  %v2803_v55 = vld [vmem:[%s3545_s21 + $0x78] sm:$0xff]  ;;  %s3383_s29 = smov 8   ;;  %s2380_s9 = scalar_lea.sflag [#allocation4], %s419_s4 }
  0x4a   : > { %749 = vmatpush.bf16.msrb.mxu0 %v3598_v49  ;;  %899 = vmatpush.bf16.msrb.mxu2 %v3556_v5  ;;  %v3671_v51 = vor.u32 %v2828_v50, %v2629_v47  ;;  %v2764_v52 = vld [vmem:[%s3545_s21 + $0x48] sm:$0xff]  ;;  %v506_v58 = vld [vmem:[#allocation5] sm:$0x7]  ;;  %v2720_v3 = vld [vmem:[%s3540_s20 + $0x18] sm:$0xff]  ;;  %s3297_s13 = sshra.s32 %s2398_s23, 4  ;;  %s3303_s24 = scalar_lea.hbm %s4396_s7, 192  ;;  %s3298_s13 = int_to_ptr.hbm [resolvable:$true] %s3297_s13 }
  0x4b   : > { %737 = vmatpush.bf16.msra.mxu3 %v3609_v62  ;;  %v3696_v61 = vperm.slane %v506_v58, 1  ;;  %v3698_v0 = vperm.slane %v506_v58, 0  ;;  %v2719_v2 = vld [vmem:[%s3540_s20 + $0x10] sm:$0xff]  ;;  %s3299_s18 = scalar_lea.hbm %s3298_s13, 64  ;;  %p3304_p7 = scmp.lt.s32.totalorder %s3298_s13, %s4396_s7 }
  0x4c   : > { %762 = vmatpush.bf16.msrb.mxu1 %v3619_v7  ;;  %871 = vperm.xlu0 %2999, %v602_v25   ;;  %v889_v4 = vpack.c.bf16 %v2720_v3, %v2719_v2  ;;  %p3300_p3 = scmp.ne.s32.totalorder %s3298_s13, %s3299_s18  ;;  %p3305_p9 = scmp.lt.s32.totalorder %s3303_s24, %s3299_s18 }
  0x4e   : > { %750 = vmatpush.bf16.msrb.mxu0 %v3611_v63  ;;  %900 = vmatpush.bf16.msrb.mxu2 %v3561_v13  ;;  %p3301_p5 = pnand %p3300_p3, %p3477_p4  ;;  %p3306_p10 = por %p3305_p9, %p3304_p7 }
  0x4f   : > { %738 = vmatpush.bf16.msra.mxu3 %v3623_v11 }
  0x50   : > { %763 = vmatpush.bf16.msrb.mxu1 %v3629_v20  ;;  %p3302_p6 = pneg %p3301_p5 }
  0x52   : > { %751 = vmatpush.bf16.msrb.mxu0 %v3625_v12  ;;  %913 = vmatpush.bf16.msra.mxu2 %v3581_v33  ;;  %p3307_p11 = pnand %p3306_p10, %p3302_p6 }
  0x53   : > { %739 = vmatpush.bf16.msra.mxu3 %v3635_v26 }
  0x54   : > { %764 = vmatpush.bf16.msrb.mxu1 %v3646_v34  ;;  %1504 = vperm.xlu0 %2999, %v2750_v43  }
  0x56   : > { %752 = vmatpush.bf16.msrb.mxu0 %v3637_v28  ;;  %740 = vmatmul.bf16.vlgmr.msra.gmra.mxu3 %v603_v35 }
  0x57   : > { %927 = vmatpush.bf16.msrb.mxu3 %v3604_v59  ;;  %914 = vmatpush.bf16.msra.mxu2 %v3590_v44 }
  0x58   : > { %765 = vmatpush.bf16.msrb.mxu1 %v3658_v27 }
  0x59   : > { %2721 = vmatmul.msk.bf16.vlgmr.msrb.gmra.mxu2 %vm555_vm0, %v889_v4 }
  0x5a   : > { %753 = vmatpush.bf16.msrb.mxu0 %v3653_v40 }
  0x5b   : > { %928 = vmatpush.bf16.msrb.mxu3 %v3616_v6  ;;  %972 = vmatpush.bf16.msrb.mxu2 %v3592_v45 }
  0x5c   : > { %766 = vmatpush.bf16.msrb.mxu1 %v3665_v46  ;;  %1722 = vperm.xlu0 %2999, %v2764_v52  }
  0x5d   : > { %754 = vmatmul.bf16.vlgmr.msrb.gmra.mxu0 %v603_v35 }
  0x5e   : > { %944 = vmatpush.bf16.msra.mxu0 %v3558_v9 }
  0x5f   : > { %1112 = vmatpush.bf16.msra.mxu3 %v3556_v5  ;;  %973 = vmatpush.bf16.msrb.mxu2 %v3602_v54 }
  0x60   : > { %767 = vmatpush.bf16.msrb.mxu1 %v3671_v51 }
  0x62   : > { %945 = vmatpush.bf16.msra.mxu0 %v3564_v15 }
  0x63   : > { %1113 = vmatpush.bf16.msra.mxu3 %v3561_v13  ;;  %768 = vmatmul.bf16.vlgmr.msrb.gmra.mxu1 %v603_v35 }
  0x64   : > { %958 = vmatpush.bf16.msra.mxu1 %v3566_v16  ;;  %2143 = vperm.xlu0 %2999, %v2789_v53  }
  0x65   : > { %974 = vmatpush.bf16.msrb.mxu2 %v3619_v7 }
  0x66   : > { %946 = vmatpush.bf16.msra.mxu0 %v3573_v23  ;;  %2723 = vmatmul.msk.bf16.vlgmr.msrb.gmra.mxu3 %vm555_vm0, %v889_v4 }
  0x67   : > { %1126 = vmatpush.bf16.msrb.mxu3 %v3581_v33 }
  0x68   : > { %959 = vmatpush.bf16.msra.mxu1 %v3575_v24 }
  0x69   : > { %975 = vmatpush.bf16.msrb.mxu2 %v3629_v20 }
  0x6a   : > { %947 = vmatpush.bf16.msra.mxu0 %v3585_v36  ;;  %2722 = vmatmul.msk.bf16.vlgmr.msra.gmra.mxu2 %vm555_vm0, %v889_v4 }
  0x6b   : > { %1127 = vmatpush.bf16.msrb.mxu3 %v3590_v44 }
  0x6c   : > { %960 = vmatpush.bf16.msra.mxu1 %v3587_v37  ;;  %2361 = vperm.xlu0 %2999, %v2803_v55  }
  0x6d   : > { %976 = vmatpush.bf16.msrb.mxu2 %v3646_v34 }
  0x6e   : > { %948 = vmatpush.bf16.msra.mxu0 %v3596_v48 }
  0x70   : > { %961 = vmatpush.bf16.msra.mxu1 %v3598_v49 }
  0x71   : > { %977 = vmatpush.bf16.msrb.mxu2 %v3658_v27 }
  0x72   : > { %949 = vmatpush.bf16.msra.mxu0 %v3609_v62 }
  0x74   : > { %962 = vmatpush.bf16.msra.mxu1 %v3611_v63 }
  0x75   : > { %978 = vmatpush.bf16.msrb.mxu2 %v3665_v46 }
  0x76   : > { %950 = vmatpush.bf16.msra.mxu0 %v3623_v11 }
  0x78   : > { %963 = vmatpush.bf16.msra.mxu1 %v3625_v12 }
  0x79   : > { %979 = vmatpush.bf16.msrb.mxu2 %v3671_v51 }
  0x7a   : > { %951 = vmatpush.bf16.msra.mxu0 %v3635_v26 }
  0x7c   : > { %964 = vmatpush.bf16.msra.mxu1 %v3637_v28 }
  0x7d   : > { %1171 = vmatpush.bf16.msra.mxu2 %v3566_v16 }
  0x7e   : > { %1325 = vmatpush.bf16.msrb.mxu0 %v3556_v5 }
  0x80   : > { %965 = vmatpush.bf16.msra.mxu1 %v3653_v40 }
  0x81   : > { %1172 = vmatpush.bf16.msra.mxu2 %v3575_v24 }
  0x82   : > { %1326 = vmatpush.bf16.msrb.mxu0 %v3561_v13 }
  0x84   : > { %1140 = vmatpush.bf16.msrb.mxu1 %v3604_v59 }
  0x85   : > { %1173 = vmatpush.bf16.msra.mxu2 %v3587_v37 }
  0x88   : > { %1141 = vmatpush.bf16.msrb.mxu1 %v3616_v6 }
  0x89   : > { %1174 = vmatpush.bf16.msra.mxu2 %v3598_v49 }
  0x8d   : > { %1175 = vmatpush.bf16.msra.mxu2 %v3611_v63 }
  0x91   : > { %1176 = vmatpush.bf16.msra.mxu2 %v3625_v12 }
  0x95   : > { %1177 = vmatpush.bf16.msra.mxu2 %v3637_v28 }
  0x99   : > { %1178 = vmatpush.bf16.msra.mxu2 %v3653_v40 }
  0xba   : > { %v568_v56 = vpop.f32.mrf.mxu0 }
  0xbb   : > { %v569_v10 = vadd.f32 %v568_v56, %v3698_v0 }
  0xc0   : > { %v582_v60 = vpop.f32.mrf.mxu1 }
  0xc1   : > { %v583_v1 = vadd.f32 %v582_v60, %v3696_v61 }
  0xc2   : > { %v570_v57 = vpop.f32.mrf.mxu0 }
  0xc3   : > { %v571_v32 = vadd.f32 %v570_v57, %v3698_v0 }
  0xc8   : > { %v584_v18 = vpop.f32.mrf.mxu1 }
  0xc9   : > { %v585_v25 = vadd.f32 %v584_v18, %v3696_v61  ;;  %v3735_v18 = vperm.slane %v506_v58, 2 }
  0xd9   : > { %v741_v17 = vpop.f32.mrf.mxu3 }
  0xda   : > { %v755_v8 = vpop.f32.mrf.mxu0  ;;  %v774_v21 = vadd.f32 %v741_v17, %v569_v10 }
  0xdb   : > { %v775_v14 = vadd.f32 %v755_v8, %v583_v1  ;;  %v3733_v8 = vld [vmem:[%s4395_s6] ss:$0 sm:$0xff] }
  0xdc   : > { %v2715_v22 = vmul.f32 -1.442695, %v774_v21 }
  0xdd   : > { %v2716_v19 = vmul.f32 -1.442695, %v775_v14 }
  0xdf   : > { %3003 = vpow2.f32 %v2716_v19 }
  0xe0   : > { %3005 = vpow2.f32 %v2715_v22  ;;  %v769_v10 = vpop.f32.mrf.mxu1 }
  0xe1   : > { %v743_v38 = vpop.f32.mrf.mxu3 }
  0xe2   : > { %v757_v31 = vpop.f32.mrf.mxu0  ;;  %v776_v42 = vadd.f32 %v743_v38, %v571_v32  ;;  %v854_v38 = vadd.f32 %v3733_v8, %v769_v10  ;;  %v2724_v10 = vld [vmem:[%s3545_s21 + $0x10] sm:$0xff] }
  0xe3   : > { %v777_v35 = vadd.f32 %v757_v31, %v585_v25  ;;  %v596_v31 = vpop.f32.mrf.mxu2  ;;  %1078 = vperm.xlu1 %3000, %v2724_v10  }
  0xe4   : > { %v2717_v50 = vmul.f32 -1.442695, %v776_v42 }
  0xe5   : > { %v3004_v39 = vpop.eup %3003  ;;  %v2718_v41 = vmul.f32 -1.442695, %v777_v35 }
  0xe6   : > { %v3713_v43 = vadd.f32 1.0, %v3004_v39  ;;  %v3006_v47 = vpop.eup %3005 }
  0xe7   : > { %3007 = vpow2.f32 %v2718_v41  ;;  %v790_v52 = vadd.f32 1.0, %v3006_v47  ;;  %v597_v41 = vadd.f32 %v596_v31, %v3735_v18 }
  0xe8   : > { %3009 = vrcp.f32 %v3713_v43  ;;  %vm814_vm3 = vweird.f32 %v3713_v43 }
  0xe9   : > { %3011 = vpow2.f32 %v2717_v50  ;;  %v805_v17 = vand.u32 2147483648, %v790_v52  ;;  %v803_v21 = vand.u32 2147483647, %v790_v52  ;;  %vm799_vm2 = vweird.f32 %v790_v52 }
  0xea   : > { %3013 = vrcp.f32 %v790_v52 }
  0xeb   : > { %v806_v58 = vor.u32 1.1754944e-38, %v805_v17  ;;  %vm804_vm5 = vcmp.eq.f32.partialorder %v803_v21, 8.507059e+37  ;;  %v771_v21 = vpop.f32.mrf.mxu1 }
  0xed   : > { %v3008_v53 = vpop.eup %3007 }
  0xee   : > { %v3719_v55 = vpop.eup %3009  ;;  %v3721_v56 = vadd.f32 1.0, %v3008_v53  ;;  %v818_v53 = vand.u32 2147483647, %v3713_v43 }
  0xef   : > { %v3012_v57 = vpop.eup %3011  ;;  %v810_v60 = vmul.f32 %v3719_v55, %v3713_v43  ;;  %vm815_vm6 = vweird.f32 %v3719_v55 }
  0xf0   : > { %v3014_v1 = vpop.eup %3013  ;;  %3015 = vrcp.f32 %v3721_v56  ;;  %v3726_v2 = vadd.f32 1.0, %v3012_v57  ;;  %vm3758_vm7 = vmor %vm814_vm3, %vm815_vm6  ;;  %vm819_vm9 = vcmp.eq.f32.partialorder %v818_v53, 8.507059e+37  ;;  %vm844_vm14 = vweird.f32 %v3721_v56 }
  0xf1   : > { %v795_v3 = vmul.f32 %v3014_v1, %v790_v52  ;;  %v811_v4 = vsub.f32 1.0, %v810_v60  ;;  %vm800_vm1 = vweird.f32 %v3014_v1  ;;  %v820_v60 = vand.u32 2147483648, %v3713_v43 }
  0xf2   : > { %3017 = vrcp.f32 %v3726_v2  ;;  %vm801_vm4 = vmor %vm799_vm2, %vm800_vm1  ;;  %v833_v31 = vand.u32 2147483647, %v3726_v2  ;;  %vm829_vm10 = vweird.f32 %v3726_v2 }
  0xf3   : > { %v796_v14 = vsub.f32 1.0, %v795_v3  ;;  %v812_v25 = vmul.f32 %v3719_v55, %v811_v4 }
  0xf4   : > { %vm834_vm13 = vcmp.eq.f32.partialorder %v833_v31, 8.507059e+37 }
  0xf5   : > { %v797_v19 = vmul.f32 %v3014_v1, %v796_v14  ;;  %v813_v52 = vadd.f32 %v3719_v55, %v812_v25 }
  0xf6   : > { %v3738_v22 = vpop.eup %3015 }
  0xf7   : > { %v840_v32 = vmul.f32 %v3738_v22, %v3721_v56  ;;  %v798_v35 = vadd.f32 %v3014_v1, %v797_v19  ;;  %vm845_vm11 = vweird.f32 %v3738_v22 }
  0xf8   : > { %v3018_v39 = vpop.eup %3017  ;;  %vm846_vm15 = vmor %vm844_vm14, %vm845_vm11 }
  0xf9   : > { %v841_v42 = vsub.f32 1.0, %v840_v32  ;;  %v802_v47 = vsel %vm801_vm4, %v3014_v1, %v798_v35  ;;  %v825_v50 = vmul.f32 %v3018_v39, %v3726_v2  ;;  %v835_v1 = vand.u32 2147483648, %v3726_v2 }
  0xfa   : > { %v807_v57 = vsel %vm804_vm5, %v806_v58, %v802_v47  ;;  %vm830_vm8 = vweird.f32 %v3018_v39  ;;  %v817_v32 = vsel %vm3758_vm7, %v3719_v55, %v813_v52  ;;  %v821_v35 = vor.u32 1.1754944e-38, %v820_v60  ;;  %v2725_v52 = vld [vmem:[%s3545_s21 + $0x18] sm:$0xff] }
  0xfb   : > { %v856_v3 = vmul.f32 %v854_v38, %v807_v57  ;;  %v826_v4 = vsub.f32 1.0, %v825_v50  ;;  %v842_v14 = vmul.f32 %v3738_v22, %v841_v42  ;;  %vm831_vm12 = vmor %vm829_vm10, %vm830_vm8  ;;  %v836_v58 = vor.u32 1.1754944e-38, %v835_v1  ;;  %v598_v42 = vpop.f32.mrf.mxu2  ;;  %v867_v57 = vpop.permute.xlu0 %866  ;;  %1083 = vperm.xlu1 %3000, %v2725_v52  }
  0xfc   : > { %v822_v47 = vsel %vm819_vm9, %v821_v35, %v817_v32  ;;  %v850_v50 = vand.u32 2147483648, %v3721_v56  ;;  %v848_v2 = vand.u32 2147483647, %v3721_v56 }
  0xfd   : > { %v858_v19 = vadd.f32 %v856_v3, %v597_v41  ;;  %v827_v25 = vmul.f32 %v3018_v39, %v826_v4  ;;  %v843_v38 = vadd.f32 %v3738_v22, %v842_v14  ;;  %v855_v41 = vadd.f32 %v3733_v8, %v771_v21  ;;  %v2751_v21 = vld [vmem:[%s3545_s21 + $0x38] sm:$0xff] }
  0xfe   : > { %v599_v3 = vadd.f32 %v598_v42, %v3735_v18  ;;  %v862_v4 = vsub.f32 1.0, %v822_v47  ;;  %v851_v14 = vor.u32 1.1754944e-38, %v850_v50  ;;  %vm849_vm1 = vcmp.eq.f32.partialorder %v848_v2, 8.507059e+37 }
  0xff   : > { %3019 = vtanh.f32 %v858_v19  ;;  %v828_v43 = vadd.f32 %v3018_v39, %v827_v25 }
 0x100   : > { %v874_v19 = vmul.f32 %v867_v57, %v862_v4 }
 0x101   : > { %v832_v55 = vsel %vm831_vm12, %v3018_v39, %v828_v43  ;;  %v847_v39 = vsel %vm846_vm15, %v3738_v22, %v843_v38 }
 0x102   : > { %v837_v53 = vsel %vm834_vm13, %v836_v58, %v832_v55  ;;  %v852_v17 = vsel %vm849_vm1, %v851_v14, %v847_v39  ;;  %v2732_v39 = vld [vmem:[%s3540_s20 + $0x20] sm:$0xff] }
 0x103   : > { %v857_v60 = vmul.f32 %v855_v41, %v837_v53  ;;  %v863_v25 = vsub.f32 1.0, %v852_v17  ;;  %1509 = vperm.xlu1 %3000, %v2751_v21   ;;  %v872_v32 = vpop.permute.xlu0 %871  ;;  %v2776_v41 = vld [vmem:[%s3545_s21 + $0x50] sm:$0xff]  ;;  %v2790_v53 = vld [vmem:[%s3545_s21 + $0x68] sm:$0xff] }
 0x105   : > { %v3020_v10 = vpop.eup %3019  ;;  %v859_v1 = vadd.f32 %v857_v60, %v599_v3  ;;  %v875_v35 = vmul.f32 %v872_v32, %v863_v25 }
 0x106   : > { %v876_v56 = vsub.f32 %v3020_v10, %v3639_v29  ;;  %v2733_v10 = vld [vmem:[%s3540_s20 + $0x28] sm:$0xff] }
 0x107   : > { %3021 = vtanh.f32 %v859_v1 }
 0x108   : > { %v878_v31 = vmul.f32 %v876_v56, %v874_v19  ;;  %v1102_v56 = vpack.c.bf16 %v2733_v10, %v2732_v39 }
 0x10a   : > { %v3786_v43 = vadd.f32 %v878_v31, %v3639_v29  ;;  %2734 = vmatmul.msk.bf16.vlgmr.msra.gmra.mxu3 %vm555_vm0, %v1102_v56 }
 0x10b   : > { %1930 = vperm.xlu1 %3000, %v2776_v41   ;;  %1185 = vmatpush.bf16.msra.mxu3 %v3592_v45 }
 0x10c   : > { %v882_v47 = vpack.c.bf16 %v3786_v43, %v3786_v43 }
 0x10d   : > { %v3022_v22 = vpop.eup %3021 }
 0x10e   : > { %v877_v38 = vsub.f32 %v3022_v22, %v3641_v30  ;;  %v940_v29 = vunpack.c.l.b16 %v882_v47 }
 0x10f   : > { %1186 = vmatpush.bf16.msra.mxu3 %v3602_v54 }
 0x110   : > { %v879_v58 = vmul.f32 %v877_v38, %v875_v35 }
 0x112   : > { %v3792_v42 = vadd.f32 %v879_v58, %v3641_v30  ;;  %v902_v30 = vpop.f32.mrf.mxu2 }
 0x113   : > { %2148 = vperm.xlu1 %3000, %v2790_v53   ;;  %v903_v4 = vadd.f32 %v902_v30, %v3698_v0  ;;  %1187 = vmatpush.bf16.msra.mxu3 %v3619_v7 }
 0x114   : > { %v2855_v50 = vpack.c.bf16 %v3792_v42, %v3786_v43  ;;  %v883_v55 = vpack.c.bf16 %v3792_v42, %v3792_v42 }
 0x116   : > { %2856 = vst [vmem:[%s3547_s12] sm:$0xff] %v2855_v50   ;;  %v941_v52 = vunpack.c.l.b16 %v883_v55 }
 0x117   : > { %1188 = vmatpush.bf16.msra.mxu3 %v3629_v20 }
 0x118   : > { %v942_v2 = vpack.c.b16 %v941_v52, %v940_v29 }
 0x11a   : > { %952 = vmatmul.bf16.vlgmr.msra.gmra.mxu0 %v942_v2  ;;  %966 = vmatmul.bf16.vlgmr.msra.gmra.mxu1 %v942_v2  ;;  %v904_v57 = vpop.f32.mrf.mxu2 }
 0x11b   : > { %980 = vmatmul.bf16.vlgmr.msrb.gmra.mxu2 %v942_v2  ;;  %1157 = vmatpush.bf16.msra.mxu1 %v3558_v9  ;;  %v905_v32 = vadd.f32 %v904_v57, %v3698_v0 }
 0x11c   : > { %1339 = vmatpush.bf16.msra.mxu0 %v3581_v33  ;;  %1370 = vmatpush.bf16.msrb.mxu2 %v3558_v9 }
 0x11d   : > { %2735 = vmatmul.msk.bf16.vlgmr.msrb.gmra.mxu3 %vm555_vm0, %v1102_v56 }
 0x11e   : > { %1189 = vmatpush.bf16.msra.mxu3 %v3646_v34 }
 0x11f   : > { %1158 = vmatpush.bf16.msra.mxu1 %v3564_v15 }
 0x120   : > { %1340 = vmatpush.bf16.msra.mxu0 %v3590_v44  ;;  %1371 = vmatpush.bf16.msrb.mxu2 %v3564_v15 }
 0x122   : > { %v916_v60 = vpop.f32.mrf.mxu2  ;;  %1190 = vmatpush.bf16.msra.mxu3 %v3658_v27 }
 0x123   : > { %1159 = vmatpush.bf16.msra.mxu1 %v3573_v23  ;;  %v917_v3 = vadd.f32 %v916_v60, %v3696_v61 }
 0x124   : > { %1372 = vmatpush.bf16.msrb.mxu2 %v3573_v23 }
 0x126   : > { %1191 = vmatpush.bf16.msra.mxu3 %v3665_v46 }
 0x127   : > { %1160 = vmatpush.bf16.msra.mxu1 %v3585_v36 }
 0x128   : > { %1373 = vmatpush.bf16.msrb.mxu2 %v3585_v36 }
 0x12a   : > { %2736 = vmatmul.msk.bf16.vlgmr.msrb.gmra.mxu1 %vm555_vm0, %v1102_v56  ;;  %v918_v31 = vpop.f32.mrf.mxu2  ;;  %1192 = vmatpush.bf16.msra.mxu3 %v3671_v51 }
 0x12b   : > { %1161 = vmatpush.bf16.msra.mxu1 %v3596_v48  ;;  %v919_v22 = vadd.f32 %v918_v31, %v3696_v61  ;;  %v930_v31 = vpop.f32.mrf.mxu3 }
 0x12c   : > { %1374 = vmatpush.bf16.msrb.mxu2 %v3596_v48 }
 0x12e   : > { %1384 = vmatpush.bf16.msrb.mxu3 %v3566_v16 }
 0x12f   : > { %1162 = vmatpush.bf16.msra.mxu1 %v3609_v62 }
 0x130   : > { %1375 = vmatpush.bf16.msrb.mxu2 %v3609_v62 }
 0x132   : > { %1385 = vmatpush.bf16.msrb.mxu3 %v3575_v24 }
 0x133   : > { %1163 = vmatpush.bf16.msra.mxu1 %v3623_v11 }
 0x134   : > { %1376 = vmatpush.bf16.msrb.mxu2 %v3623_v11 }
 0x136   : > { %1386 = vmatpush.bf16.msrb.mxu3 %v3587_v37 }
 0x137   : > { %1164 = vmatpush.bf16.msra.mxu1 %v3635_v26 }
 0x138   : > { %1377 = vmatpush.bf16.msrb.mxu2 %v3635_v26 }
 0x13a   : > { %1387 = vmatpush.bf16.msrb.mxu3 %v3598_v49 }
 0x13b   : > { %1353 = vmatpush.bf16.msrb.mxu1 %v3604_v59 }
 0x13e   : > { %1388 = vmatpush.bf16.msrb.mxu3 %v3611_v63 }
 0x13f   : > { %1354 = vmatpush.bf16.msrb.mxu1 %v3616_v6 }
 0x142   : > { %1389 = vmatpush.bf16.msrb.mxu3 %v3625_v12 }
 0x146   : > { %1390 = vmatpush.bf16.msrb.mxu3 %v3637_v28 }
 0x14a   : > { %1391 = vmatpush.bf16.msrb.mxu3 %v3653_v40 }
 0x197   : > { %v953_v14 = vpop.f32.mrf.mxu0  ;;  %v967_v1 = vpop.f32.mrf.mxu1 }
 0x198   : > { %v986_v17 = vadd.f32 %v953_v14, %v903_v4  ;;  %v987_v19 = vadd.f32 %v967_v1, %v917_v3 }
 0x19a   : > { %v2726_v21 = vmul.f32 -1.442695, %v986_v17  ;;  %v2727_v25 = vmul.f32 -1.442695, %v987_v19 }
 0x19c   : > { %3023 = vpow2.f32 %v2726_v21 }
 0x19d   : > { %3025 = vpow2.f32 %v2727_v25 }
 0x19e   : > { %v981_v3 = vpop.f32.mrf.mxu2 }
 0x19f   : > { %v955_v35 = vpop.f32.mrf.mxu0  ;;  %v969_v38 = vpop.f32.mrf.mxu1 }
 0x1a0   : > { %v988_v58 = vadd.f32 %v955_v35, %v905_v32  ;;  %v989_v41 = vadd.f32 %v969_v38, %v919_v22  ;;  %v931_v38 = vadd.f32 %v930_v31, %v3735_v18 }
 0x1a2   : > { %v3024_v47 = vpop.eup %3023  ;;  %v2728_v50 = vmul.f32 -1.442695, %v988_v58  ;;  %v2729_v52 = vmul.f32 -1.442695, %v989_v41  ;;  %v1066_v41 = vadd.f32 %v3733_v8, %v981_v3 }
 0x1a3   : > { %v3026_v55 = vpop.eup %3025  ;;  %v1002_v29 = vadd.f32 1.0, %v3024_v47 }
 0x1a4   : > { %v3834_v2 = vadd.f32 1.0, %v3026_v55  ;;  %3027 = vpow2.f32 %v2728_v50 }
 0x1a5   : > { %3029 = vrcp.f32 %v1002_v29  ;;  %v1017_v56 = vand.u32 2147483648, %v1002_v29  ;;  %v1015_v21 = vand.u32 2147483647, %v1002_v29  ;;  %vm1011_vm3 = vweird.f32 %v1002_v29 }
 0x1a6   : > { %3031 = vrcp.f32 %v3834_v2  ;;  %vm1026_vm7 = vweird.f32 %v3834_v2 }
 0x1a7   : > { %3033 = vpow2.f32 %v2729_v52  ;;  %v1018_v35 = vor.u32 1.1754944e-38, %v1017_v56  ;;  %vm1016_vm5 = vcmp.eq.f32.partialorder %v1015_v21, 8.507059e+37 }
 0x1aa   : > { %v3028_v53 = vpop.eup %3027 }
 0x1ab   : > { %v3030_v30 = vpop.eup %3029  ;;  %v3840_v57 = vadd.f32 1.0, %v3028_v53  ;;  %v1032_v53 = vand.u32 2147483648, %v3834_v2 }
 0x1ac   : > { %v3842_v60 = vpop.eup %3031  ;;  %v1007_v4 = vmul.f32 %v3030_v30, %v1002_v29  ;;  %vm1012_vm2 = vweird.f32 %v3030_v30 }
 0x1ad   : > { %v3034_v39 = vpop.eup %3033  ;;  %3035 = vrcp.f32 %v3840_v57  ;;  %v1022_v10 = vmul.f32 %v3842_v60, %v3834_v2  ;;  %vm1013_vm4 = vmor %vm1011_vm3, %vm1012_vm2  ;;  %vm1027_vm6 = vweird.f32 %v3842_v60  ;;  %v1047_v3 = vand.u32 2147483648, %v3840_v57 }
 0x1ae   : > { %v1008_v14 = vsub.f32 1.0, %v1007_v4  ;;  %v3847_v1 = vadd.f32 1.0, %v3034_v39  ;;  %v983_v4 = vpop.f32.mrf.mxu2  ;;  %vm3866_vm8 = vmor %vm1026_vm7, %vm1027_vm6  ;;  %vm1041_vm10 = vweird.f32 %v3840_v57 }
 0x1af   : > { %v1023_v17 = vsub.f32 1.0, %v1022_v10  ;;  %v2737_v10 = vld [vmem:[%s3545_s21 + $0x20] sm:$0xff] }
 0x1b0   : > { %v1009_v19 = vmul.f32 %v3030_v30, %v1008_v14  ;;  %3037 = vrcp.f32 %v3847_v1  ;;  %1291 = vperm.xlu2 %3001, %v2737_v10   ;;  %vm1056_vm15 = vweird.f32 %v3847_v1 }
 0x1b1   : > { %v1024_v25 = vmul.f32 %v3842_v60, %v1023_v17 }
 0x1b2   : > { %v1010_v22 = vadd.f32 %v3030_v30, %v1009_v19  ;;  %v1045_v19 = vand.u32 2147483647, %v3840_v57 }
 0x1b3   : > { %v3036_v32 = vpop.eup %3035  ;;  %v1025_v55 = vadd.f32 %v3842_v60, %v1024_v25  ;;  %v1067_v25 = vadd.f32 %v3733_v8, %v983_v4  ;;  %v1079_v4 = vpop.permute.xlu1 %1078 }
 0x1b4   : > { %v1014_v58 = vsel %vm1013_vm4, %v3030_v30, %v1010_v22  ;;  %v1037_v47 = vmul.f32 %v3036_v32, %v3840_v57  ;;  %v1030_v30 = vand.u32 2147483647, %v3834_v2  ;;  %vm1042_vm9 = vweird.f32 %v3036_v32 }
 0x1b5   : > { %v1019_v50 = vsel %vm1016_vm5, %v1018_v35, %v1014_v58  ;;  %v1029_v2 = vsel %vm3866_vm8, %v3842_v60, %v1025_v55  ;;  %v1033_v22 = vor.u32 1.1754944e-38, %v1032_v53  ;;  %vm1043_vm12 = vmor %vm1041_vm10, %vm1042_vm9  ;;  %v1048_v58 = vor.u32 1.1754944e-38, %v1047_v3  ;;  %v2738_v55 = vld [vmem:[%s3545_s21 + $0x28] sm:$0xff] }
 0x1b6   : > { %v3038_v29 = vpop.eup %3037  ;;  %v1068_v52 = vmul.f32 %v1066_v41, %v1019_v50  ;;  %v1038_v39 = vsub.f32 1.0, %v1037_v47  ;;  %vm1031_vm11 = vcmp.eq.f32.partialorder %v1030_v30, 8.507059e+37  ;;  %v932_v47 = vpop.f32.mrf.mxu3  ;;  %vm1046_vm14 = vcmp.eq.f32.partialorder %v1045_v19, 8.507059e+37 }
 0x1b7   : > { %v1052_v14 = vmul.f32 %v3038_v29, %v3847_v1  ;;  %vm1057_vm13 = vweird.f32 %v3038_v29  ;;  %v1062_v60 = vand.u32 2147483648, %v3847_v1  ;;  %v1060_v57 = vand.u32 2147483647, %v3847_v1 }
 0x1b8   : > { %v1039_v17 = vmul.f32 %v3036_v32, %v1038_v39  ;;  %v1070_v21 = vadd.f32 %v1068_v52, %v931_v38  ;;  %v1034_v38 = vsel %vm1031_vm11, %v1033_v22, %v1029_v2  ;;  %vm1058_vm1 = vmor %vm1056_vm15, %vm1057_vm13  ;;  %v933_v10 = vadd.f32 %v932_v47, %v3735_v18  ;;  %1296 = vperm.xlu2 %3001, %v2738_v55   ;;  %v2777_v47 = vld [vmem:[%s3545_s21 + $0x58] sm:$0xff] }
 0x1b9   : > { %v1053_v31 = vsub.f32 1.0, %v1052_v14  ;;  %v1074_v30 = vsub.f32 1.0, %v1034_v38  ;;  %v1063_v14 = vor.u32 1.1754944e-38, %v1062_v60  ;;  %vm1061_vm2 = vcmp.eq.f32.partialorder %v1060_v57, 8.507059e+37 }
 0x1ba   : > { %v1040_v35 = vadd.f32 %v3036_v32, %v1039_v17  ;;  %3039 = vtanh.f32 %v1070_v21  ;;  %v2763_v21 = vld [vmem:[%s3545_s21 + $0x40] sm:$0xff] }
 0x1bb   : > { %v1054_v41 = vmul.f32 %v3038_v29, %v1053_v31  ;;  %v1086_v1 = vmul.f32 %v1079_v4, %v1074_v30  ;;  %v1084_v31 = vpop.permute.xlu1 %1083  ;;  %v3918_v4 = vpop.f32.mrf.mxu1 }
 0x1bc   : > { %v1044_v50 = vsel %vm1043_vm12, %v3036_v32, %v1040_v35 }
 0x1bd   : > { %v1049_v52 = vsel %vm1046_vm14, %v1048_v58, %v1044_v50  ;;  %v1055_v53 = vadd.f32 %v3038_v29, %v1054_v41 }
 0x1be   : > { %v1069_v39 = vmul.f32 %v1067_v25, %v1049_v52  ;;  %v1115_v57 = vpop.f32.mrf.mxu3 }
 0x1bf   : > { %v1059_v3 = vsel %vm1058_vm1, %v3038_v29, %v1055_v53  ;;  %v1116_v30 = vadd.f32 %v1115_v57, %v3698_v0 }
 0x1c0   : > { %v3040_v32 = vpop.eup %3039  ;;  %v1071_v56 = vadd.f32 %v1069_v39, %v933_v10  ;;  %v1064_v19 = vsel %vm1061_vm2, %v1063_v14, %v1059_v3  ;;  %1717 = vperm.xlu2 %3001, %v2763_v21   ;;  %v2745_v3 = vld [vmem:[%s3540_s20 + $0x30] sm:$0xff] }
 0x1c1   : > { %v1088_v17 = vsub.f32 %v3040_v32, %v3786_v43  ;;  %v1075_v2 = vsub.f32 1.0, %v1064_v19  ;;  %v2746_v32 = vld [vmem:[%s3540_s20 + $0x38] sm:$0xff] }
 0x1c2   : > { %3041 = vtanh.f32 %v1071_v56  ;;  %v1315_v56 = vpack.c.bf16 %v2746_v32, %v2745_v3 }
 0x1c3   : > { %v1090_v25 = vmul.f32 %v1088_v17, %v1086_v1  ;;  %v1087_v22 = vmul.f32 %v1084_v31, %v1075_v2  ;;  %v3920_v10 = vpop.f32.mrf.mxu1 }
 0x1c4   : > { %2747 = vmatmul.msk.bf16.vlgmr.msrb.gmra.mxu0 %vm555_vm0, %v1315_v56 }
 0x1c5   : > { %v3888_v35 = vadd.f32 %v1090_v25, %v3786_v43  ;;  %1398 = vmatpush.bf16.msrb.mxu0 %v3592_v45 }
 0x1c6   : > { %v1117_v39 = vpop.f32.mrf.mxu3 }
 0x1c7   : > { %v1094_v50 = vpack.c.bf16 %v3888_v35, %v3888_v35  ;;  %v1118_v25 = vadd.f32 %v1117_v39, %v3698_v0 }
 0x1c8   : > { %v3042_v29 = vpop.eup %3041  ;;  %1935 = vperm.xlu2 %3001, %v2777_v47  }
 0x1c9   : > { %v1089_v58 = vsub.f32 %v3042_v29, %v3792_v42  ;;  %v1153_v55 = vunpack.c.l.b16 %v1094_v50  ;;  %1399 = vmatpush.bf16.msrb.mxu0 %v3602_v54 }
 0x1cb   : > { %v1091_v41 = vmul.f32 %v1089_v58, %v1087_v22 }
 0x1cd   : > { %v3894_v38 = vadd.f32 %v1091_v41, %v3792_v42  ;;  %v2802_v42 = vld [vmem:[%s3545_s21 + $0x70] sm:$0xff]  ;;  %1400 = vmatpush.bf16.msrb.mxu0 %v3619_v7  ;;  %s3381_s21 = smov [#allocation9]  }
 0x1ce   : > { %v1129_v19 = vpop.f32.mrf.mxu3  ;;  %s2412_s11 = sshll.u32 %s3381_s21, 4  ;;  %s2413_s11 = int_to_ptr.vmem [resolvable:$true] %s2412_s11 }
 0x1cf   : > { %v2860_v60 = vpack.c.bf16 %v3894_v38, %v3888_v35  ;;  %v1095_v43 = vpack.c.bf16 %v3894_v38, %v3894_v38  ;;  %v1130_v1 = vadd.f32 %v1129_v19, %v3696_v61 }
 0x1d0   : > { %2356 = vperm.xlu2 %3001, %v2802_v42  }
 0x1d1   : > { %2892 = vst [vmem:[%s3547_s12 + $0x8] sm:$0xff] %v2860_v60   ;;  %v1154_v52 = vunpack.c.l.b16 %v1095_v43  ;;  %1401 = vmatpush.bf16.msrb.mxu0 %v3629_v20 }
 0x1d3   : > { %v1155_v53 = vpack.c.b16 %v1154_v52, %v1153_v55 }
 0x1d4   : > { %2748 = vmatmul.msk.bf16.vlgmr.msra.gmra.mxu0 %vm555_vm0, %v1315_v56 }
 0x1d5   : > { %1165 = vmatmul.bf16.vlgmr.msra.gmra.mxu1 %v1155_v53  ;;  %1179 = vmatmul.bf16.vlgmr.msra.gmra.mxu2 %v1155_v53 }
 0x1d6   : > { %1193 = vmatmul.bf16.vlgmr.msra.gmra.mxu3 %v1155_v53  ;;  %1538 = vmatpush.bf16.msra.mxu1 %v3556_v5  ;;  %v1131_v50 = vpop.f32.mrf.mxu3 }
 0x1d7   : > { %1583 = vmatpush.bf16.msra.mxu3 %v3558_v9  ;;  %1566 = vmatpush.bf16.msra.mxu2 %v3604_v59  ;;  %v1132_v43 = vadd.f32 %v1131_v50, %v3696_v61 }
 0x1d8   : > { %1402 = vmatpush.bf16.msrb.mxu0 %v3646_v34 }
 0x1da   : > { %1539 = vmatpush.bf16.msra.mxu1 %v3561_v13 }
 0x1db   : > { %1584 = vmatpush.bf16.msra.mxu3 %v3564_v15  ;;  %1567 = vmatpush.bf16.msra.mxu2 %v3616_v6 }
 0x1dc   : > { %1403 = vmatpush.bf16.msrb.mxu0 %v3658_v27 }
 0x1df   : > { %1585 = vmatpush.bf16.msra.mxu3 %v3573_v23 }
 0x1e0   : > { %1404 = vmatpush.bf16.msrb.mxu0 %v3665_v46 }
 0x1e3   : > { %1586 = vmatpush.bf16.msra.mxu3 %v3585_v36 }
 0x1e4   : > { %1405 = vmatpush.bf16.msrb.mxu0 %v3671_v51 }
 0x1e5   : > { %2749 = vmatmul.msk.bf16.vlgmr.msrb.gmra.mxu1 %vm555_vm0, %v1315_v56 }
 0x1e6   : > { %1552 = vmatpush.bf16.msrb.mxu1 %v3581_v33 }
 0x1e7   : > { %1587 = vmatpush.bf16.msra.mxu3 %v3596_v48 }
 0x1e8   : > { %1597 = vmatpush.bf16.msra.mxu0 %v3566_v16 }
 0x1ea   : > { %1553 = vmatpush.bf16.msrb.mxu1 %v3590_v44 }
 0x1eb   : > { %1588 = vmatpush.bf16.msra.mxu3 %v3609_v62 }
 0x1ec   : > { %1598 = vmatpush.bf16.msra.mxu0 %v3575_v24 }
 0x1ef   : > { %1589 = vmatpush.bf16.msra.mxu3 %v3623_v11 }
 0x1f0   : > { %1599 = vmatpush.bf16.msra.mxu0 %v3587_v37 }
 0x1f3   : > { %1590 = vmatpush.bf16.msra.mxu3 %v3635_v26 }
 0x1f4   : > { %1600 = vmatpush.bf16.msra.mxu0 %v3598_v49 }
 0x1f8   : > { %1601 = vmatpush.bf16.msra.mxu0 %v3611_v63 }
 0x1fc   : > { %1602 = vmatpush.bf16.msra.mxu0 %v3625_v12 }
 0x200   : > { %1603 = vmatpush.bf16.msra.mxu0 %v3637_v28 }
 0x204   : > { %1604 = vmatpush.bf16.msra.mxu0 %v3653_v40 }
 0x252   : > { %v1166_v14 = vpop.f32.mrf.mxu1 }
 0x253   : > { %v1199_v17 = vadd.f32 %v1166_v14, %v1116_v30 }
 0x255   : > { %v2739_v21 = vmul.f32 -1.442695, %v1199_v17 }
 0x257   : > { %3043 = vpow2.f32 %v2739_v21 }
 0x258   : > { %v1180_v2 = vpop.f32.mrf.mxu2 }
 0x259   : > { %v1200_v29 = vadd.f32 %v1180_v2, %v1130_v1  ;;  %v1194_v14 = vpop.f32.mrf.mxu3 }
 0x25a   : > { %v1168_v31 = vpop.f32.mrf.mxu1 }
 0x25b   : > { %v2740_v22 = vmul.f32 -1.442695, %v1200_v29  ;;  %v1201_v58 = vadd.f32 %v1168_v31, %v1118_v25 }
 0x25d   : > { %v3044_v41 = vpop.eup %3043  ;;  %3045 = vpow2.f32 %v2740_v22  ;;  %v2741_v47 = vmul.f32 -1.442695, %v1201_v58 }
 0x25e   : > { %v1215_v60 = vadd.f32 1.0, %v3044_v41  ;;  %v1279_v41 = vadd.f32 %v3733_v8, %v1194_v14 }
 0x25f   : > { %3047 = vpow2.f32 %v2741_v47 }
 0x260   : > { %3049 = vrcp.f32 %v1215_v60  ;;  %v1182_v55 = vpop.f32.mrf.mxu2  ;;  %v1230_v19 = vand.u32 2147483648, %v1215_v60  ;;  %v1228_v2 = vand.u32 2147483647, %v1215_v60  ;;  %vm1224_vm4 = vweird.f32 %v1215_v60 }
 0x261   : > { %v1202_v52 = vadd.f32 %v1182_v55, %v1132_v43  ;;  %v1144_v55 = vadd.f32 %v3918_v4, %v3735_v18 }
 0x262   : > { %v1231_v58 = vor.u32 1.1754944e-38, %v1230_v19  ;;  %vm1229_vm6 = vcmp.eq.f32.partialorder %v1228_v2, 8.507059e+37 }
 0x263   : > { %v3046_v53 = vpop.eup %3045  ;;  %v2742_v42 = vmul.f32 -1.442695, %v1202_v52 }
 0x264   : > { %v1216_v57 = vadd.f32 1.0, %v3046_v53 }
 0x265   : > { %v3048_v39 = vpop.eup %3047  ;;  %3051 = vpow2.f32 %v2742_v42 }
 0x266   : > { %v3050_v30 = vpop.eup %3049  ;;  %3053 = vrcp.f32 %v1216_v57  ;;  %v1217_v3 = vadd.f32 1.0, %v3048_v39  ;;  %v1245_v53 = vand.u32 2147483648, %v1216_v57  ;;  %vm1239_vm8 = vweird.f32 %v1216_v57 }
 0x267   : > { %v1220_v32 = vmul.f32 %v3050_v30, %v1215_v60  ;;  %vm1225_vm3 = vweird.f32 %v3050_v30 }
 0x268   : > { %3055 = vrcp.f32 %v1217_v3  ;;  %vm1226_vm5 = vmor %vm1224_vm4, %vm1225_vm3  ;;  %v1258_v14 = vand.u32 2147483647, %v1217_v3  ;;  %v1246_v2 = vor.u32 1.1754944e-38, %v1245_v53  ;;  %vm1254_vm11 = vweird.f32 %v1217_v3 }
 0x269   : > { %v1221_v17 = vsub.f32 1.0, %v1220_v32  ;;  %v1243_v32 = vand.u32 2147483647, %v1216_v57 }
 0x26a   : > { %vm1259_vm14 = vcmp.eq.f32.partialorder %v1258_v14, 8.507059e+37 }
 0x26b   : > { %v3052_v1 = vpop.eup %3051  ;;  %v1222_v21 = vmul.f32 %v3050_v30, %v1221_v17  ;;  %v1260_v17 = vand.u32 2147483648, %v1217_v3  ;;  %vm1244_vm12 = vcmp.eq.f32.partialorder %v1243_v32, 8.507059e+37 }
 0x26c   : > { %v3054_v25 = vpop.eup %3053  ;;  %v3939_v56 = vadd.f32 1.0, %v3052_v1  ;;  %v1196_v1 = vpop.f32.mrf.mxu3 }
 0x26d   : > { %v1223_v29 = vadd.f32 %v3050_v30, %v1222_v21  ;;  %v1235_v31 = vmul.f32 %v3054_v25, %v1216_v57  ;;  %vm1240_vm7 = vweird.f32 %v3054_v25  ;;  %v1261_v57 = vor.u32 1.1754944e-38, %v1260_v17 }
 0x26e   : > { %v3056_v22 = vpop.eup %3055  ;;  %3057 = vrcp.f32 %v3939_v56  ;;  %vm1241_vm10 = vmor %vm1239_vm8, %vm1240_vm7  ;;  %vm1269_vm1 = vweird.f32 %v3939_v56 }
 0x26f   : > { %v1227_v47 = vsel %vm1226_vm5, %v3050_v30, %v1223_v29  ;;  %v1236_v50 = vsub.f32 1.0, %v1235_v31  ;;  %v1250_v43 = vmul.f32 %v3056_v22, %v1217_v3  ;;  %vm1255_vm9 = vweird.f32 %v3056_v22 }
 0x270   : > { %v1232_v52 = vsel %vm1229_vm6, %v1231_v58, %v1227_v47  ;;  %vm1256_vm13 = vmor %vm1254_vm11, %vm1255_vm9 }
 0x271   : > { %v1281_v60 = vmul.f32 %v1279_v41, %v1232_v52  ;;  %v1237_v42 = vmul.f32 %v3054_v25, %v1236_v50  ;;  %v1251_v39 = vsub.f32 1.0, %v1250_v43  ;;  %v1280_v41 = vadd.f32 %v3733_v8, %v1196_v1  ;;  %v1292_v52 = vpop.permute.xlu2 %1291 }
 0x273   : > { %v1283_v30 = vadd.f32 %v1281_v60, %v1144_v55  ;;  %v1238_v19 = vadd.f32 %v3054_v25, %v1237_v42  ;;  %v1252_v21 = vmul.f32 %v3056_v22, %v1251_v39  ;;  %v1146_v55 = vadd.f32 %v3920_v10, %v3735_v18 }
 0x274   : > { %v3058_v4 = vpop.eup %3057  ;;  %v1273_v42 = vand.u32 2147483647, %v3939_v56 }
 0x275   : > { %3059 = vtanh.f32 %v1283_v30  ;;  %v1242_v29 = vsel %vm1241_vm10, %v3054_v25, %v1238_v19  ;;  %v1253_v31 = vadd.f32 %v3056_v22, %v1252_v21  ;;  %v1265_v58 = vmul.f32 %v3058_v4, %v3939_v56 }
 0x276   : > { %v1247_v47 = vsel %vm1244_vm12, %v1246_v2, %v1242_v29  ;;  %v1275_v25 = vand.u32 2147483648, %v3939_v56  ;;  %vm1270_vm15 = vweird.f32 %v3058_v4  ;;  %vm1274_vm3 = vcmp.eq.f32.partialorder %v1273_v42, 8.507059e+37  ;;  %v2759_v42 = vld [vmem:[%s3540_s20 + $0x48] sm:$0xff] }
 0x277   : > { %v1257_v50 = vsel %vm1256_vm13, %v3056_v22, %v1253_v31  ;;  %v1266_v43 = vsub.f32 1.0, %v1265_v58  ;;  %v1287_v39 = vsub.f32 1.0, %v1247_v47  ;;  %vm1271_vm2 = vmor %vm1269_vm1, %vm1270_vm15 }
 0x278   : > { %v1262_v3 = vsel %vm1259_vm14, %v1261_v57, %v1257_v50  ;;  %v1276_v10 = vor.u32 1.1754944e-38, %v1275_v25 }
 0x279   : > { %v1282_v53 = vmul.f32 %v1280_v41, %v1262_v3  ;;  %v1267_v60 = vmul.f32 %v3058_v4, %v1266_v43  ;;  %v1299_v30 = vmul.f32 %v1292_v52, %v1287_v39  ;;  %v1297_v29 = vpop.permute.xlu2 %1296 }
 0x27b   : > { %v3060_v8 = vpop.eup %3059  ;;  %v1284_v32 = vadd.f32 %v1282_v53, %v1146_v55  ;;  %v1268_v22 = vadd.f32 %v3058_v4, %v1267_v60  ;;  %v2758_v60 = vld [vmem:[%s3540_s20 + $0x40] sm:$0xff] }
 0x27c   : > { %v1301_v14 = vsub.f32 %v3060_v8, %v3888_v35 }
 0x27d   : > { %3061 = vtanh.f32 %v1284_v32  ;;  %v1272_v17 = vsel %vm1271_vm2, %v3058_v4, %v1268_v22  ;;  %v1528_v32 = vpack.c.bf16 %v2759_v42, %v2758_v60 }
 0x27e   : > { %v1277_v19 = vsel %vm1274_vm3, %v1276_v10, %v1272_v17  ;;  %v1303_v1 = vmul.f32 %v1301_v14, %v1299_v30 }
 0x27f   : > { %v1288_v21 = vsub.f32 1.0, %v1277_v19  ;;  %2760 = vmatmul.msk.bf16.vlgmr.msra.gmra.mxu1 %vm555_vm0, %v1528_v32 }
 0x280   : > { %v3961_v56 = vadd.f32 %v1303_v1, %v3888_v35  ;;  %1611 = vmatpush.bf16.msra.mxu1 %v3592_v45 }
 0x281   : > { %v1300_v31 = vmul.f32 %v1297_v29, %v1288_v21 }
 0x282   : > { %v1307_v41 = vpack.c.bf16 %v3961_v56, %v3961_v56 }
 0x283   : > { %v3062_v2 = vpop.eup %3061 }
 0x284   : > { %v1302_v58 = vsub.f32 %v3062_v2, %v3894_v38  ;;  %v1366_v35 = vunpack.c.l.b16 %v1307_v41  ;;  %1612 = vmatpush.bf16.msra.mxu1 %v3602_v54 }
 0x286   : > { %v1304_v57 = vmul.f32 %v1302_v58, %v1300_v31 }
 0x288   : > { %v3966_v4 = vadd.f32 %v1304_v57, %v3894_v38  ;;  %v1328_v38 = vpop.f32.mrf.mxu0  ;;  %1613 = vmatpush.bf16.msra.mxu1 %v3619_v7 }
 0x289   : > { %v1329_v53 = vadd.f32 %v1328_v38, %v3698_v0 }
 0x28a   : > { %v2865_v47 = vpack.c.bf16 %v3966_v4, %v3961_v56  ;;  %v1308_v50 = vpack.c.bf16 %v3966_v4, %v3966_v4 }
 0x28c   : > { %2893 = vst [vmem:[%s3547_s12 + $0x10] sm:$0xff] %v2865_v47   ;;  %v1367_v43 = vunpack.c.l.b16 %v1308_v50  ;;  %1614 = vmatpush.bf16.msra.mxu1 %v3629_v20 }
 0x28e   : > { %v1368_v55 = vpack.c.b16 %v1367_v43, %v1366_v35 }
 0x28f   : > { %2761 = vmatmul.msk.bf16.vlgmr.msrb.gmra.mxu1 %vm555_vm0, %v1528_v32 }
 0x290   : > { %1378 = vmatmul.bf16.vlgmr.msrb.gmra.mxu2 %v1368_v55  ;;  %1392 = vmatmul.bf16.vlgmr.msrb.gmra.mxu3 %v1368_v55  ;;  %v1330_v3 = vpop.f32.mrf.mxu0 }
 0x291   : > { %1406 = vmatmul.bf16.vlgmr.msrb.gmra.mxu0 %v1368_v55  ;;  %1751 = vmatpush.bf16.msrb.mxu2 %v3556_v5  ;;  %v1331_v1 = vadd.f32 %v1330_v3, %v3698_v0 }
 0x292   : > { %1796 = vmatpush.bf16.msrb.mxu0 %v3558_v9  ;;  %1779 = vmatpush.bf16.msrb.mxu3 %v3604_v59 }
 0x293   : > { %1615 = vmatpush.bf16.msra.mxu1 %v3646_v34 }
 0x295   : > { %1752 = vmatpush.bf16.msrb.mxu2 %v3561_v13 }
 0x296   : > { %1797 = vmatpush.bf16.msrb.mxu0 %v3564_v15  ;;  %1780 = vmatpush.bf16.msrb.mxu3 %v3616_v6 }
 0x297   : > { %1616 = vmatpush.bf16.msra.mxu1 %v3658_v27 }
 0x298   : > { %v1342_v25 = vpop.f32.mrf.mxu0 }
 0x299   : > { %v1343_v52 = vadd.f32 %v1342_v25, %v3696_v61 }
 0x29a   : > { %1798 = vmatpush.bf16.msrb.mxu0 %v3573_v23 }
 0x29b   : > { %1617 = vmatpush.bf16.msra.mxu1 %v3665_v46 }
 0x29e   : > { %1799 = vmatpush.bf16.msrb.mxu0 %v3585_v36 }
 0x29f   : > { %1618 = vmatpush.bf16.msra.mxu1 %v3671_v51 }
 0x2a0   : > { %2762 = vmatmul.msk.bf16.vlgmr.msra.gmra.mxu2 %vm555_vm0, %v1528_v32  ;;  %v1344_v30 = vpop.f32.mrf.mxu0 }
 0x2a1   : > { %1765 = vmatpush.bf16.msra.mxu2 %v3581_v33  ;;  %v1345_v19 = vadd.f32 %v1344_v30, %v3696_v61 }
 0x2a2   : > { %1800 = vmatpush.bf16.msrb.mxu0 %v3596_v48 }
 0x2a3   : > { %1810 = vmatpush.bf16.msrb.mxu1 %v3566_v16 }
 0x2a5   : > { %1766 = vmatpush.bf16.msra.mxu2 %v3590_v44 }
 0x2a6   : > { %1801 = vmatpush.bf16.msrb.mxu0 %v3609_v62 }
 0x2a7   : > { %1811 = vmatpush.bf16.msrb.mxu1 %v3575_v24 }
 0x2aa   : > { %1802 = vmatpush.bf16.msrb.mxu0 %v3623_v11 }
 0x2ab   : > { %1812 = vmatpush.bf16.msrb.mxu1 %v3587_v37 }
 0x2ae   : > { %1803 = vmatpush.bf16.msrb.mxu0 %v3635_v26 }
 0x2af   : > { %1813 = vmatpush.bf16.msrb.mxu1 %v3598_v49 }
 0x2b3   : > { %1814 = vmatpush.bf16.msrb.mxu1 %v3611_v63 }
 0x2b7   : > { %1815 = vmatpush.bf16.msrb.mxu1 %v3625_v12 }
 0x2bb   : > { %1816 = vmatpush.bf16.msrb.mxu1 %v3637_v28 }
 0x2bf   : > { %1817 = vmatpush.bf16.msrb.mxu1 %v3653_v40 }
 0x30e   : > { %v1407_v25 = vpop.f32.mrf.mxu0 }
 0x313   : > { %v1379_v39 = vpop.f32.mrf.mxu2  ;;  %v1393_v8 = vpop.f32.mrf.mxu3 }
 0x314   : > { %v1412_v22 = vadd.f32 %v1379_v39, %v1329_v53  ;;  %v1413_v14 = vadd.f32 %v1393_v8, %v1343_v52 }
 0x316   : > { %v2752_v10 = vmul.f32 -1.442695, %v1412_v22  ;;  %v2753_v17 = vmul.f32 -1.442695, %v1413_v14  ;;  %v1356_v14 = vpop.f32.mrf.mxu1 }
 0x318   : > { %3063 = vpow2.f32 %v2752_v10 }
 0x319   : > { %3065 = vpow2.f32 %v2753_v17 }
 0x31b   : > { %v1381_v21 = vpop.f32.mrf.mxu2  ;;  %v1395_v2 = vpop.f32.mrf.mxu3 }
 0x31c   : > { %v1414_v29 = vadd.f32 %v1381_v21, %v1331_v1  ;;  %v1415_v31 = vadd.f32 %v1395_v2, %v1345_v19  ;;  %v4024_v1 = vld [vmem:[%s4395_s6] ss:$0 sm:$0xff] }
 0x31d   : > { %v1492_v21 = vadd.f32 %v4024_v1, %v1407_v25 }
 0x31e   : > { %v3064_v58 = vpop.eup %3063  ;;  %v2754_v57 = vmul.f32 -1.442695, %v1414_v29  ;;  %v2755_v50 = vmul.f32 -1.442695, %v1415_v31  ;;  %v1357_v29 = vadd.f32 %v1356_v14, %v3735_v18 }
 0x31f   : > { %v3066_v41 = vpop.eup %3065  ;;  %v1428_v47 = vadd.f32 1.0, %v3064_v58 }
 0x320   : > { %v4002_v35 = vadd.f32 1.0, %v3066_v41  ;;  %3067 = vpow2.f32 %v2754_v57 }
 0x321   : > { %3069 = vrcp.f32 %v1428_v47  ;;  %v1443_v32 = vand.u32 2147483648, %v1428_v47  ;;  %v1441_v17 = vand.u32 2147483647, %v1428_v47  ;;  %vm1437_vm5 = vweird.f32 %v1428_v47 }
 0x322   : > { %3071 = vrcp.f32 %v4002_v35  ;;  %vm1452_vm9 = vweird.f32 %v4002_v35 }
 0x323   : > { %3073 = vpow2.f32 %v2755_v50  ;;  %v1444_v31 = vor.u32 1.1754944e-38, %v1443_v32  ;;  %vm1442_vm8 = vcmp.eq.f32.partialorder %v1441_v17, 8.507059e+37  ;;  %v1458_v50 = vand.u32 2147483648, %v4002_v35 }
 0x325   : > { %v1459_v17 = vor.u32 1.1754944e-38, %v1458_v50 }
 0x326   : > { %v3068_v43 = vpop.eup %3067 }
 0x327   : > { %v3070_v55 = vpop.eup %3069  ;;  %v4008_v38 = vadd.f32 1.0, %v3068_v43  ;;  %v1409_v43 = vpop.f32.mrf.mxu0 }
 0x328   : > { %v4010_v3 = vpop.eup %3071  ;;  %v1433_v52 = vmul.f32 %v3070_v55, %v1428_v47  ;;  %vm1438_vm4 = vweird.f32 %v3070_v55  ;;  %v1456_v47 = vand.u32 2147483647, %v4002_v35 }
 0x329   : > { %v3074_v53 = vpop.eup %3073  ;;  %v1448_v60 = vmul.f32 %v4010_v3, %v4002_v35  ;;  %3075 = vrcp.f32 %v4008_v38  ;;  %vm1439_vm6 = vmor %vm1437_vm5, %vm1438_vm4  ;;  %vm1453_vm7 = vweird.f32 %v4010_v3  ;;  %v1471_v32 = vand.u32 2147483647, %v4008_v38 }
 0x32a   : > { %v4015_v42 = vadd.f32 1.0, %v3074_v53  ;;  %v1434_v39 = vsub.f32 1.0, %v1433_v52  ;;  %vm4040_vm10 = vmor %vm1452_vm9, %vm1453_vm7  ;;  %vm1457_vm12 = vcmp.eq.f32.partialorder %v1456_v47, 8.507059e+37  ;;  %vm1467_vm13 = vweird.f32 %v4008_v38 }
 0x32b   : > { %v1449_v8 = vsub.f32 1.0, %v1448_v60  ;;  %vm1472_vm1 = vcmp.eq.f32.partialorder %v1471_v32, 8.507059e+37 }
 0x32c   : > { %3077 = vrcp.f32 %v4015_v42  ;;  %v1435_v10 = vmul.f32 %v3070_v55, %v1434_v39  ;;  %v1473_v39 = vand.u32 2147483648, %v4008_v38  ;;  %vm1482_vm2 = vweird.f32 %v4015_v42 }
 0x32d   : > { %v1450_v22 = vmul.f32 %v4010_v3, %v1449_v8 }
 0x32e   : > { %v1436_v19 = vadd.f32 %v3070_v55, %v1435_v10 }
 0x32f   : > { %v3076_v30 = vpop.eup %3075  ;;  %v1451_v58 = vadd.f32 %v4010_v3, %v1450_v22  ;;  %v1493_v22 = vadd.f32 %v4024_v1, %v1409_v43 }
 0x330   : > { %v1463_v2 = vmul.f32 %v3076_v30, %v4008_v38  ;;  %v1440_v57 = vsel %vm1439_vm6, %v3070_v55, %v1436_v19  ;;  %vm1468_vm11 = vweird.f32 %v3076_v30 }
 0x331   : > { %v1445_v52 = vsel %vm1442_vm8, %v1444_v31, %v1440_v57  ;;  %v1455_v14 = vsel %vm4040_vm10, %v4010_v3, %v1451_v58  ;;  %vm1469_vm15 = vmor %vm1467_vm13, %vm1468_vm11  ;;  %v1474_v31 = vor.u32 1.1754944e-38, %v1473_v39  ;;  %v1488_v57 = vand.u32 2147483648, %v4015_v42 }
 0x332   : > { %v3078_v41 = vpop.eup %3077  ;;  %v1464_v25 = vsub.f32 1.0, %v1463_v2  ;;  %v1494_v60 = vmul.f32 %v1492_v21, %v1445_v52  ;;  %v1358_v2 = vpop.f32.mrf.mxu1  ;;  %v1460_v43 = vsel %vm1457_vm12, %v1459_v17, %v1455_v14 }
 0x333   : > { %v1478_v53 = vmul.f32 %v3078_v41, %v4015_v42  ;;  %vm1483_vm14 = vweird.f32 %v3078_v41  ;;  %v1359_v38 = vadd.f32 %v1358_v2, %v3735_v18  ;;  %v1500_v50 = vsub.f32 1.0, %v1460_v43 }
 0x334   : > { %v1465_v8 = vmul.f32 %v3076_v30, %v1464_v25  ;;  %v1496_v10 = vadd.f32 %v1494_v60, %v1357_v29  ;;  %v1486_v29 = vand.u32 2147483647, %v4015_v42  ;;  %vm1484_vm3 = vmor %vm1482_vm2, %vm1483_vm14 }
 0x335   : > { %v1479_v35 = vsub.f32 1.0, %v1478_v53  ;;  %v1489_v53 = vor.u32 1.1754944e-38, %v1488_v57 }
 0x336   : > { %v1466_v19 = vadd.f32 %v3076_v30, %v1465_v8  ;;  %3079 = vtanh.f32 %v1496_v10  ;;  %vm1487_vm4 = vcmp.eq.f32.partialorder %v1486_v29, 8.507059e+37 }
 0x337   : > { %v1480_v21 = vmul.f32 %v3078_v41, %v1479_v35 }
 0x338   : > { %v1470_v52 = vsel %vm1469_vm15, %v3076_v30, %v1466_v19  ;;  %v1505_v30 = vpop.permute.xlu0 %1504 }
 0x339   : > { %v1481_v3 = vadd.f32 %v3078_v41, %v1480_v21  ;;  %v1475_v58 = vsel %vm1472_vm1, %v1474_v31, %v1470_v52  ;;  %v1512_v32 = vmul.f32 %v1505_v30, %v1500_v50  ;;  %v2772_v30 = vld [vmem:[%s3540_s20 + $0x58] sm:$0xff] }
 0x33a   : > { %v1495_v47 = vmul.f32 %v1493_v22, %v1475_v58  ;;  %v1510_v22 = vpop.permute.xlu1 %1509 }
 0x33b   : > { %v1485_v25 = vsel %vm1484_vm3, %v3078_v41, %v1481_v3 }
 0x33c   : > { %v1497_v60 = vadd.f32 %v1495_v47, %v1359_v38  ;;  %v3080_v39 = vpop.eup %3079  ;;  %v1490_v8 = vsel %vm1487_vm4, %v1489_v53, %v1485_v25 }
 0x33d   : > { %v1514_v55 = vsub.f32 %v3080_v39, %v3961_v56  ;;  %v1501_v35 = vsub.f32 1.0, %v1490_v8  ;;  %v2771_v39 = vld [vmem:[%s3540_s20 + $0x50] sm:$0xff] }
 0x33e   : > { %3081 = vtanh.f32 %v1497_v60  ;;  %v1741_v8 = vpack.c.bf16 %v2772_v30, %v2771_v39 }
 0x33f   : > { %v1516_v42 = vmul.f32 %v1514_v55, %v1512_v32  ;;  %v1513_v10 = vmul.f32 %v1510_v22, %v1501_v35 }
 0x340   : > { %2773 = vmatmul.msk.bf16.vlgmr.msrb.gmra.mxu2 %vm555_vm0, %v1741_v8 }
 0x341   : > { %v4060_v14 = vadd.f32 %v1516_v42, %v3961_v56  ;;  %1824 = vmatpush.bf16.msrb.mxu2 %v3592_v45 }
 0x343   : > { %v1520_v2 = vpack.c.bf16 %v4060_v14, %v4060_v14 }
 0x344   : > { %v3082_v41 = vpop.eup %3081 }
 0x345   : > { %v1515_v17 = vsub.f32 %v3082_v41, %v3966_v4  ;;  %v1579_v56 = vunpack.c.l.b16 %v1520_v2  ;;  %1825 = vmatpush.bf16.msrb.mxu2 %v3602_v54 }
 0x347   : > { %v1517_v19 = vmul.f32 %v1515_v17, %v1513_v10 }
 0x349   : > { %v4065_v21 = vadd.f32 %v1517_v19, %v3966_v4  ;;  %v1541_v4 = vpop.f32.mrf.mxu1  ;;  %1826 = vmatpush.bf16.msrb.mxu2 %v3619_v7 }
 0x34a   : > { %v1542_v53 = vadd.f32 %v1541_v4, %v3698_v0 }
 0x34b   : > { %v2870_v31 = vpack.c.bf16 %v4065_v21, %v4060_v14  ;;  %v1521_v57 = vpack.c.bf16 %v4065_v21, %v4065_v21 }
 0x34d   : > { %2894 = vst [vmem:[%s3547_s12 + $0x18] sm:$0xff] %v2870_v31   ;;  %v1580_v43 = vunpack.c.l.b16 %v1521_v57  ;;  %1827 = vmatpush.bf16.msrb.mxu2 %v3629_v20 }
 0x34f   : > { %v1581_v52 = vpack.c.b16 %v1580_v43, %v1579_v56 }
 0x350   : > { %2774 = vmatmul.msk.bf16.vlgmr.msra.gmra.mxu2 %vm555_vm0, %v1741_v8 }
 0x351   : > { %1591 = vmatmul.bf16.vlgmr.msra.gmra.mxu3 %v1581_v52  ;;  %1605 = vmatmul.bf16.vlgmr.msra.gmra.mxu0 %v1581_v52  ;;  %v1543_v3 = vpop.f32.mrf.mxu1 }
 0x352   : > { %1619 = vmatmul.bf16.vlgmr.msra.gmra.mxu1 %v1581_v52  ;;  %1964 = vmatpush.bf16.msra.mxu3 %v3556_v5  ;;  %v1544_v19 = vadd.f32 %v1543_v3, %v3698_v0 }
 0x353   : > { %2009 = vmatpush.bf16.msra.mxu1 %v3558_v9  ;;  %1992 = vmatpush.bf16.msra.mxu0 %v3604_v59 }
 0x354   : > { %1828 = vmatpush.bf16.msrb.mxu2 %v3646_v34 }
 0x356   : > { %1965 = vmatpush.bf16.msra.mxu3 %v3561_v13 }
 0x357   : > { %2010 = vmatpush.bf16.msra.mxu1 %v3564_v15  ;;  %1993 = vmatpush.bf16.msra.mxu0 %v3616_v6 }
 0x358   : > { %1829 = vmatpush.bf16.msrb.mxu2 %v3658_v27 }
 0x359   : > { %v1555_v29 = vpop.f32.mrf.mxu1 }
 0x35a   : > { %v1556_v58 = vadd.f32 %v1555_v29, %v3696_v61 }
 0x35b   : > { %2011 = vmatpush.bf16.msra.mxu1 %v3573_v23 }
 0x35c   : > { %1830 = vmatpush.bf16.msrb.mxu2 %v3665_v46 }
 0x35f   : > { %2012 = vmatpush.bf16.msra.mxu1 %v3585_v36 }
 0x360   : > { %1831 = vmatpush.bf16.msrb.mxu2 %v3671_v51 }
 0x361   : > { %v1557_v25 = vpop.f32.mrf.mxu1  ;;  %2775 = vmatmul.msk.bf16.vlgmr.msrb.gmra.mxu3 %vm555_vm0, %v1741_v8 }
 0x362   : > { %v1558_v60 = vadd.f32 %v1557_v25, %v3696_v61  ;;  %1978 = vmatpush.bf16.msrb.mxu3 %v3581_v33 }
 0x363   : > { %2013 = vmatpush.bf16.msra.mxu1 %v3596_v48 }
 0x364   : > { %2023 = vmatpush.bf16.msra.mxu2 %v3566_v16 }
 0x366   : > { %1979 = vmatpush.bf16.msrb.mxu3 %v3590_v44 }
 0x367   : > { %2014 = vmatpush.bf16.msra.mxu1 %v3609_v62 }
 0x368   : > { %2024 = vmatpush.bf16.msra.mxu2 %v3575_v24 }
 0x36b   : > { %2015 = vmatpush.bf16.msra.mxu1 %v3623_v11 }
 0x36c   : > { %2025 = vmatpush.bf16.msra.mxu2 %v3587_v37 }
 0x36f   : > { %2016 = vmatpush.bf16.msra.mxu1 %v3635_v26 }
 0x370   : > { %2026 = vmatpush.bf16.msra.mxu2 %v3598_v49 }
 0x374   : > { %2027 = vmatpush.bf16.msra.mxu2 %v3611_v63 }
 0x378   : > { %2028 = vmatpush.bf16.msra.mxu2 %v3625_v12 }
 0x37c   : > { %2029 = vmatpush.bf16.msra.mxu2 %v3637_v28 }
 0x380   : > { %2030 = vmatpush.bf16.msra.mxu2 %v3653_v40 }
 0x3ce   : > { %v1606_v38 = vpop.f32.mrf.mxu0 }
 0x3cf   : > { %v1626_v47 = vadd.f32 %v1606_v38, %v1556_v58 }
 0x3d1   : > { %v2766_v50 = vmul.f32 -1.442695, %v1626_v47 }
 0x3d3   : > { %3083 = vpow2.f32 %v2766_v50  ;;  %v1620_v50 = vpop.f32.mrf.mxu1 }
 0x3d4   : > { %v1592_v55 = vpop.f32.mrf.mxu3 }
 0x3d5   : > { %v1625_v32 = vadd.f32 %v1592_v55, %v1542_v53 }
 0x3d6   : > { %v1608_v42 = vpop.f32.mrf.mxu0 }
 0x3d7   : > { %v2765_v35 = vmul.f32 -1.442695, %v1625_v32  ;;  %v1628_v41 = vadd.f32 %v1608_v42, %v1558_v60 }
 0x3d9   : > { %v3084_v22 = vpop.eup %3083  ;;  %3085 = vpow2.f32 %v2765_v35  ;;  %v2768_v10 = vmul.f32 -1.442695, %v1628_v41  ;;  %v1569_v35 = vpop.f32.mrf.mxu2 }
 0x3da   : > { %v4097_v17 = vadd.f32 1.0, %v3084_v22 }
 0x3db   : > { %3087 = vpow2.f32 %v2768_v10  ;;  %v1705_v10 = vadd.f32 %v4024_v1, %v1620_v50 }
 0x3dc   : > { %v1594_v2 = vpop.f32.mrf.mxu3  ;;  %3089 = vrcp.f32 %v4097_v17  ;;  %vm1665_vm10 = vweird.f32 %v4097_v17  ;;  %v1669_v50 = vand.u32 2147483647, %v4097_v17 }
 0x3dd   : > { %v1627_v31 = vadd.f32 %v1594_v2, %v1544_v19 }
 0x3de   : > { %vm1670_vm14 = vcmp.eq.f32.partialorder %v1669_v50, 8.507059e+37 }
 0x3df   : > { %v3086_v57 = vpop.eup %3085  ;;  %v2767_v56 = vmul.f32 -1.442695, %v1627_v31 }
 0x3e0   : > { %v1641_v43 = vadd.f32 1.0, %v3086_v57  ;;  %v1570_v57 = vadd.f32 %v1569_v35, %v3735_v18 }
 0x3e1   : > { %v3088_v52 = vpop.eup %3087  ;;  %3091 = vpow2.f32 %v2767_v56 }
 0x3e2   : > { %3093 = vrcp.f32 %v1641_v43  ;;  %v4104_v4 = vadd.f32 1.0, %v3088_v52  ;;  %v4106_v3 = vpop.eup %3089  ;;  %v1656_v55 = vand.u32 2147483648, %v1641_v43  ;;  %v1654_v8 = vand.u32 2147483647, %v1641_v43 }
 0x3e3   : > { %v1661_v29 = vmul.f32 %v4106_v3, %v4097_v17  ;;  %vm1650_vm6 = vweird.f32 %v1641_v43  ;;  %vm1666_vm9 = vweird.f32 %v4106_v3 }
 0x3e4   : > { %3095 = vrcp.f32 %v4104_v4  ;;  %v1657_v2 = vor.u32 1.1754944e-38, %v1656_v55  ;;  %vm1655_vm8 = vcmp.eq.f32.partialorder %v1654_v8, 8.507059e+37  ;;  %vm4131_vm11 = vmor %vm1665_vm10, %vm1666_vm9  ;;  %vm1695_vm3 = vweird.f32 %v4104_v4 }
 0x3e5   : > { %v1662_v60 = vsub.f32 1.0, %v1661_v29 }
 0x3e7   : > { %v3092_v58 = vpop.eup %3091  ;;  %v1663_v42 = vmul.f32 %v4106_v3, %v1662_v60 }
 0x3e8   : > { %v3094_v38 = vpop.eup %3093  ;;  %v1643_v47 = vadd.f32 1.0, %v3092_v58  ;;  %v1622_v58 = vpop.f32.mrf.mxu1 }
 0x3e9   : > { %v1646_v25 = vmul.f32 %v3094_v38, %v1641_v43  ;;  %vm1651_vm5 = vweird.f32 %v3094_v38  ;;  %v1664_v52 = vadd.f32 %v4106_v3, %v1663_v42  ;;  %v1671_v43 = vand.u32 2147483648, %v4097_v17 }
 0x3ea   : > { %v4114_v53 = vpop.eup %3095  ;;  %3097 = vrcp.f32 %v1643_v47  ;;  %vm1652_vm7 = vmor %vm1650_vm6, %vm1651_vm5  ;;  %v1684_v8 = vand.u32 2147483647, %v1643_v47  ;;  %v1706_v42 = vadd.f32 %v4024_v1, %v1622_v58  ;;  %vm1680_vm13 = vweird.f32 %v1643_v47 }
 0x3eb   : > { %v1647_v39 = vsub.f32 1.0, %v1646_v25  ;;  %v1691_v30 = vmul.f32 %v4114_v53, %v4104_v4  ;;  %v1668_v35 = vsel %vm4131_vm11, %v4106_v3, %v1664_v52  ;;  %v1672_v17 = vor.u32 1.1754944e-38, %v1671_v43 }
 0x3ec   : > { %vm1696_vm15 = vweird.f32 %v4114_v53  ;;  %vm1685_vm2 = vcmp.eq.f32.partialorder %v1684_v8, 8.507059e+37  ;;  %v1699_v3 = vand.u32 2147483647, %v4104_v4 }
 0x3ed   : > { %v1648_v32 = vmul.f32 %v3094_v38, %v1647_v39  ;;  %v1692_v19 = vsub.f32 1.0, %v1691_v30  ;;  %vm1697_vm4 = vmor %vm1695_vm3, %vm1696_vm15 }
 0x3ee   : > { %vm1700_vm5 = vcmp.eq.f32.partialorder %v1699_v3, 8.507059e+37 }
 0x3ef   : > { %v1649_v41 = vadd.f32 %v3094_v38, %v1648_v32  ;;  %v1693_v39 = vmul.f32 %v4114_v53, %v1692_v19  ;;  %v1571_v19 = vpop.f32.mrf.mxu2 }
 0x3f0   : > { %v3098_v22 = vpop.eup %3097  ;;  %v1572_v52 = vadd.f32 %v1571_v19, %v3735_v18 }
 0x3f1   : > { %v1676_v31 = vmul.f32 %v3098_v22, %v1643_v47  ;;  %v1653_v56 = vsel %vm1652_vm7, %v3094_v38, %v1649_v41  ;;  %v1686_v38 = vand.u32 2147483648, %v1643_v47  ;;  %vm1681_vm12 = vweird.f32 %v3098_v22 }
 0x3f2   : > { %v1658_v29 = vsel %vm1655_vm8, %v1657_v2, %v1653_v56  ;;  %vm1682_vm1 = vmor %vm1680_vm13, %vm1681_vm12 }
 0x3f3   : > { %v1707_v25 = vmul.f32 %v1705_v10, %v1658_v29  ;;  %v1677_v60 = vsub.f32 1.0, %v1676_v31  ;;  %v1694_v10 = vadd.f32 %v4114_v53, %v1693_v39  ;;  %v1687_v2 = vor.u32 1.1754944e-38, %v1686_v38  ;;  %v1718_v39 = vpop.permute.xlu2 %1717 }
 0x3f4   : > { %v1701_v31 = vand.u32 2147483648, %v4104_v4 }
 0x3f5   : > { %v1709_v55 = vadd.f32 %v1707_v25, %v1570_v57  ;;  %v1678_v32 = vmul.f32 %v3098_v22, %v1677_v60  ;;  %v1673_v57 = vsel %vm1670_vm14, %v1672_v17, %v1668_v35  ;;  %v1698_v58 = vsel %vm1697_vm4, %v4114_v53, %v1694_v10 }
 0x3f6   : > { %v1713_v43 = vsub.f32 1.0, %v1673_v57  ;;  %v1702_v60 = vor.u32 1.1754944e-38, %v1701_v31 }
 0x3f7   : > { %3099 = vtanh.f32 %v1709_v55  ;;  %v1679_v41 = vadd.f32 %v3098_v22, %v1678_v32  ;;  %v1723_v32 = vpop.permute.xlu0 %1722 }
 0x3f8   : > { %v1703_v38 = vsel %vm1700_vm5, %v1702_v60, %v1698_v58  ;;  %v1725_v4 = vmul.f32 %v1718_v39, %v1713_v43 }
 0x3f9   : > { %v1683_v56 = vsel %vm1682_vm1, %v3098_v22, %v1679_v41  ;;  %v1714_v55 = vsub.f32 1.0, %v1703_v38 }
 0x3fa   : > { %v1688_v47 = vsel %vm1685_vm2, %v1687_v2, %v1683_v56 }
 0x3fb   : > { %v1708_v29 = vmul.f32 %v1706_v42, %v1688_v47  ;;  %v1726_v42 = vmul.f32 %v1723_v32, %v1714_v55 }
 0x3fd   : > { %v3100_v25 = vpop.eup %3099  ;;  %v1710_v50 = vadd.f32 %v1708_v29, %v1572_v52 }
 0x3fe   : > { %v1727_v22 = vsub.f32 %v3100_v25, %v4060_v14 }
 0x3ff   : > { %3101 = vtanh.f32 %v1710_v50 }
 0x400   : > { %v1729_v30 = vmul.f32 %v1727_v22, %v1725_v4 }
 0x402   : > { %v4152_v8 = vadd.f32 %v1729_v30, %v4060_v14 }
 0x404   : > { %v1733_v10 = vpack.c.bf16 %v4152_v8, %v4152_v8 }
 0x405   : > { %v3102_v53 = vpop.eup %3101 }
 0x406   : > { %v1728_v35 = vsub.f32 %v3102_v53, %v4065_v21  ;;  %v1792_v14 = vunpack.c.l.b16 %v1733_v10 }
 0x408   : > { %v1730_v17 = vmul.f32 %v1728_v35, %v1726_v42 }
 0x40a   : > { %v4157_v41 = vadd.f32 %v1730_v17, %v4065_v21  ;;  %v2785_v21 = vld [vmem:[%s3540_s20 + $0x68] sm:$0xff] }
 0x40c   : > { %v2875_v19 = vpack.c.bf16 %v4157_v41, %v4152_v8  ;;  %v1734_v2 = vpack.c.bf16 %v4157_v41, %v4157_v41 }
 0x40e   : > { %2895 = vst [vmem:[%s3547_s12 + $0x20] sm:$0xff] %v2875_v19   ;;  %v1793_v31 = vunpack.c.l.b16 %v1734_v2 }
 0x410   : > { %v1794_v57 = vpack.c.b16 %v1793_v31, %v1792_v14 }
 0x412   : > { %1804 = vmatmul.bf16.vlgmr.msrb.gmra.mxu0 %v1794_v57  ;;  %1818 = vmatmul.bf16.vlgmr.msrb.gmra.mxu1 %v1794_v57 }
 0x413   : > { %1832 = vmatmul.bf16.vlgmr.msrb.gmra.mxu2 %v1794_v57  ;;  %2177 = vmatpush.bf16.msrb.mxu0 %v3556_v5  ;;  %v1754_v5 = vpop.f32.mrf.mxu2 }
 0x414   : > { %2222 = vmatpush.bf16.msrb.mxu2 %v3558_v9  ;;  %2205 = vmatpush.bf16.msrb.mxu1 %v3604_v59 }
 0x417   : > { %2178 = vmatpush.bf16.msrb.mxu0 %v3561_v13 }
 0x418   : > { %2223 = vmatpush.bf16.msrb.mxu2 %v3564_v15  ;;  %2206 = vmatpush.bf16.msrb.mxu1 %v3616_v6  ;;  %v1755_v15 = vadd.f32 %v1754_v5, %v3698_v0  ;;  %v2784_v6 = vld [vmem:[%s3540_s20 + $0x60] sm:$0xff]  ;;  %v1782_v5 = vpop.f32.mrf.mxu3 }
 0x41b   : > { %v1756_v9 = vpop.f32.mrf.mxu2 }
 0x41c   : > { %2224 = vmatpush.bf16.msrb.mxu2 %v3573_v23  ;;  %v1757_v52 = vadd.f32 %v1756_v9, %v3698_v0 }
 0x420   : > { %2225 = vmatpush.bf16.msrb.mxu2 %v3585_v36  ;;  %v1954_v36 = vpack.c.bf16 %v2785_v21, %v2784_v6 }
 0x422   : > { %2786 = vmatmul.msk.bf16.vlgmr.msra.gmra.mxu3 %vm555_vm0, %v1954_v36  ;;  %2788 = vmatmul.msk.bf16.vlgmr.msra.gmra.mxu0 %vm555_vm0, %v1954_v36 }
 0x423   : > { %v1768_v59 = vpop.f32.mrf.mxu2  ;;  %2037 = vmatpush.bf16.msra.mxu3 %v3592_v45  ;;  %2191 = vmatpush.bf16.msra.mxu0 %v3581_v33 }
 0x424   : > { %2226 = vmatpush.bf16.msrb.mxu2 %v3596_v48  ;;  %v1769_v13 = vadd.f32 %v1768_v59, %v3696_v61 }
 0x427   : > { %2038 = vmatpush.bf16.msra.mxu3 %v3602_v54  ;;  %2192 = vmatpush.bf16.msra.mxu0 %v3590_v44 }
 0x428   : > { %2227 = vmatpush.bf16.msrb.mxu2 %v3609_v62 }
 0x42b   : > { %2039 = vmatpush.bf16.msra.mxu3 %v3619_v7 }
 0x42c   : > { %2228 = vmatpush.bf16.msrb.mxu2 %v3623_v11 }
 0x42f   : > { %2040 = vmatpush.bf16.msra.mxu3 %v3629_v20 }
 0x430   : > { %2229 = vmatpush.bf16.msrb.mxu2 %v3635_v26  ;;  %v1770_v26 = vpop.f32.mrf.mxu2 }
 0x431   : > { %v1771_v47 = vadd.f32 %v1770_v26, %v3696_v61 }
 0x432   : > { %2787 = vmatmul.msk.bf16.vlgmr.msrb.gmra.mxu3 %vm555_vm0, %v1954_v36 }
 0x433   : > { %2041 = vmatpush.bf16.msra.mxu3 %v3646_v34 }
 0x437   : > { %2042 = vmatpush.bf16.msra.mxu3 %v3658_v27 }
 0x43b   : > { %2043 = vmatpush.bf16.msra.mxu3 %v3665_v46 }
 0x43f   : > { %2044 = vmatpush.bf16.msra.mxu3 %v3671_v51 }
 0x443   : > { %2236 = vmatpush.bf16.msrb.mxu3 %v3566_v16 }
 0x447   : > { %2237 = vmatpush.bf16.msrb.mxu3 %v3575_v24 }
 0x44b   : > { %2238 = vmatpush.bf16.msrb.mxu3 %v3587_v37 }
 0x44f   : > { %2239 = vmatpush.bf16.msrb.mxu3 %v3598_v49 }
 0x453   : > { %2240 = vmatpush.bf16.msrb.mxu3 %v3611_v63 }
 0x457   : > { %2241 = vmatpush.bf16.msrb.mxu3 %v3625_v12 }
 0x45b   : > { %2242 = vmatpush.bf16.msrb.mxu3 %v3637_v28 }
 0x45f   : > { %2243 = vmatpush.bf16.msrb.mxu3 %v3653_v40 }
 0x48f   : > { %v1805_v23 = vpop.f32.mrf.mxu0  ;;  %v1819_v56 = vpop.f32.mrf.mxu1 }
 0x490   : > { %v1838_v3 = vadd.f32 %v1805_v23, %v1755_v15  ;;  %v1839_v48 = vadd.f32 %v1819_v56, %v1769_v13  ;;  %v1783_v15 = vadd.f32 %v1782_v5, %v3735_v18 }
 0x492   : > { %v2778_v62 = vmul.f32 -1.442695, %v1838_v3  ;;  %v2779_v11 = vmul.f32 -1.442695, %v1839_v48 }
 0x494   : > { %3103 = vpow2.f32 %v2778_v62 }
 0x495   : > { %3105 = vpow2.f32 %v2779_v11 }
 0x496   : > { %v1833_v53 = vpop.f32.mrf.mxu2 }
 0x497   : > { %v1807_v29 = vpop.f32.mrf.mxu0  ;;  %v1821_v43 = vpop.f32.mrf.mxu1  ;;  %v1918_v21 = vadd.f32 %v4024_v1, %v1833_v53 }
 0x498   : > { %v1840_v58 = vadd.f32 %v1807_v29, %v1757_v52  ;;  %v1841_v25 = vadd.f32 %v1821_v43, %v1771_v47 }
 0x49a   : > { %v3104_v60 = vpop.eup %3103  ;;  %v2780_v50 = vmul.f32 -1.442695, %v1840_v58  ;;  %v2781_v39 = vmul.f32 -1.442695, %v1841_v25 }
 0x49b   : > { %v3106_v33 = vpop.eup %3105  ;;  %v1854_v22 = vadd.f32 1.0, %v3104_v60 }
 0x49c   : > { %v4193_v38 = vadd.f32 1.0, %v3106_v33  ;;  %3107 = vpow2.f32 %v2780_v50 }
 0x49d   : > { %3109 = vrcp.f32 %v1854_v22  ;;  %v1869_v2 = vand.u32 2147483648, %v1854_v22  ;;  %v1867_v31 = vand.u32 2147483647, %v1854_v22  ;;  %vm1863_vm7 = vweird.f32 %v1854_v22 }
 0x49e   : > { %3111 = vrcp.f32 %v4193_v38  ;;  %v1884_v48 = vand.u32 2147483648, %v4193_v38  ;;  %v1835_v11 = vpop.f32.mrf.mxu2  ;;  %vm1878_vm11 = vweird.f32 %v4193_v38  ;;  %v1882_v47 = vand.u32 2147483647, %v4193_v38 }
 0x49f   : > { %3113 = vpow2.f32 %v2781_v39  ;;  %v1870_v13 = vor.u32 1.1754944e-38, %v1869_v2  ;;  %vm1868_vm9 = vcmp.eq.f32.partialorder %v1867_v31, 8.507059e+37  ;;  %v1919_v33 = vadd.f32 %v4024_v1, %v1835_v11 }
 0x4a0   : > { %v1885_v39 = vor.u32 1.1754944e-38, %v1884_v48  ;;  %vm1883_vm15 = vcmp.eq.f32.partialorder %v1882_v47, 8.507059e+37  ;;  %v2797_v47 = vld [vmem:[%s3540_s20 + $0x70] sm:$0xff] }
 0x4a2   : > { %v3108_v44 = vpop.eup %3107 }
 0x4a3   : > { %v3110_v4 = vpop.eup %3109  ;;  %v4199_v30 = vadd.f32 1.0, %v3108_v44 }
 0x4a4   : > { %v4201_v55 = vpop.eup %3111  ;;  %v1859_v32 = vmul.f32 %v3110_v4, %v1854_v22  ;;  %vm1864_vm6 = vweird.f32 %v3110_v4 }
 0x4a5   : > { %v3114_v42 = vpop.eup %3113  ;;  %v1874_v35 = vmul.f32 %v4201_v55, %v4193_v38  ;;  %3115 = vrcp.f32 %v4199_v30  ;;  %vm1865_vm8 = vmor %vm1863_vm7, %vm1864_vm6  ;;  %vm1879_vm10 = vweird.f32 %v4201_v55  ;;  %v1899_v29 = vand.u32 2147483648, %v4199_v30 }
 0x4a6   : > { %v1860_v17 = vsub.f32 1.0, %v1859_v32  ;;  %v4206_v10 = vadd.f32 1.0, %v3114_v42  ;;  %vm4224_vm12 = vmor %vm1878_vm11, %vm1879_vm10  ;;  %v1897_v25 = vand.u32 2147483647, %v4199_v30  ;;  %vm1893_vm14 = vweird.f32 %v4199_v30 }
 0x4a7   : > { %v1875_v19 = vsub.f32 1.0, %v1874_v35  ;;  %v1900_v44 = vor.u32 1.1754944e-38, %v1899_v29 }
 0x4a8   : > { %v1861_v14 = vmul.f32 %v3110_v4, %v1860_v17  ;;  %3117 = vrcp.f32 %v4206_v10  ;;  %v1914_v53 = vand.u32 2147483648, %v4206_v10  ;;  %vm1898_vm3 = vcmp.eq.f32.partialorder %v1897_v25, 8.507059e+37 }
 0x4a9   : > { %v1876_v57 = vmul.f32 %v4201_v55, %v1875_v19  ;;  %vm1908_vm4 = vweird.f32 %v4206_v10 }
 0x4aa   : > { %v1862_v9 = vadd.f32 %v3110_v4, %v1861_v14  ;;  %v1915_v31 = vor.u32 1.1754944e-38, %v1914_v53 }
 0x4ab   : > { %v3116_v59 = vpop.eup %3115  ;;  %v1877_v56 = vadd.f32 %v4201_v55, %v1876_v57 }
 0x4ac   : > { %v1866_v6 = vsel %vm1865_vm8, %v3110_v4, %v1862_v9  ;;  %v1889_v23 = vmul.f32 %v3116_v59, %v4199_v30  ;;  %vm1894_vm13 = vweird.f32 %v3116_v59  ;;  %v1784_v4 = vpop.f32.mrf.mxu3  ;;  %v1931_v9 = vpop.permute.xlu1 %1930 }
 0x4ad   : > { %v1871_v36 = vsel %vm1868_vm9, %v1870_v13, %v1866_v6  ;;  %v1881_v22 = vsel %vm4224_vm12, %v4201_v55, %v1877_v56  ;;  %vm1895_vm2 = vmor %vm1893_vm14, %vm1894_vm13  ;;  %v1912_v55 = vand.u32 2147483647, %v4206_v10  ;;  %v1785_v19 = vadd.f32 %v1784_v4, %v3735_v18 }
 0x4ae   : > { %v3118_v3 = vpop.eup %3117  ;;  %v1920_v62 = vmul.f32 %v1918_v21, %v1871_v36  ;;  %v1890_v26 = vsub.f32 1.0, %v1889_v23  ;;  %v1886_v42 = vsel %vm1883_vm15, %v1885_v39, %v1881_v22  ;;  %v1936_v21 = vpop.permute.xlu2 %1935 }
 0x4af   : > { %v1904_v52 = vmul.f32 %v3118_v3, %v4206_v10  ;;  %vm1909_vm1 = vweird.f32 %v3118_v3  ;;  %v1926_v2 = vsub.f32 1.0, %v1886_v42  ;;  %vm1913_vm6 = vcmp.eq.f32.partialorder %v1912_v55, 8.507059e+37 }
 0x4b0   : > { %v1891_v58 = vmul.f32 %v3116_v59, %v1890_v26  ;;  %v1922_v60 = vadd.f32 %v1920_v62, %v1783_v15  ;;  %vm1910_vm5 = vmor %vm1908_vm4, %vm1909_vm1 }
 0x4b1   : > { %v1905_v50 = vsub.f32 1.0, %v1904_v52  ;;  %v1938_v13 = vmul.f32 %v1931_v9, %v1926_v2  ;;  %v2798_v52 = vld [vmem:[%s3540_s20 + $0x78] sm:$0xff] }
 0x4b2   : > { %v1892_v38 = vadd.f32 %v3116_v59, %v1891_v58  ;;  %3119 = vtanh.f32 %v1922_v60  ;;  %v2167_v43 = vpack.c.bf16 %v2798_v52, %v2797_v47 }
 0x4b3   : > { %v1906_v16 = vmul.f32 %v3118_v3, %v1905_v50 }
 0x4b4   : > { %v1896_v32 = vsel %vm1895_vm2, %v3116_v59, %v1892_v38  ;;  %2799 = vmatmul.msk.bf16.vlgmr.msrb.gmra.mxu0 %vm555_vm0, %v2167_v43 }
 0x4b5   : > { %v1907_v35 = vadd.f32 %v3118_v3, %v1906_v16  ;;  %v1901_v30 = vsel %vm1898_vm3, %v1900_v44, %v1896_v32  ;;  %2250 = vmatpush.bf16.msrb.mxu0 %v3592_v45 }
 0x4b6   : > { %v1921_v17 = vmul.f32 %v1919_v33, %v1901_v30 }
 0x4b7   : > { %v1911_v14 = vsel %vm1910_vm5, %v3118_v3, %v1907_v35 }
 0x4b8   : > { %v3120_v24 = vpop.eup %3119  ;;  %v1923_v57 = vadd.f32 %v1921_v17, %v1785_v19  ;;  %v1916_v59 = vsel %vm1913_vm6, %v1915_v31, %v1911_v14 }
 0x4b9   : > { %v1940_v5 = vsub.f32 %v3120_v24, %v4152_v8  ;;  %v1927_v15 = vsub.f32 1.0, %v1916_v59  ;;  %2251 = vmatpush.bf16.msrb.mxu0 %v3602_v54 }
 0x4ba   : > { %3121 = vtanh.f32 %v1923_v57 }
 0x4bb   : > { %v1942_v10 = vmul.f32 %v1940_v5, %v1938_v13  ;;  %v1939_v23 = vmul.f32 %v1936_v21, %v1927_v15 }
 0x4bd   : > { %v4244_v37 = vadd.f32 %v1942_v10, %v4152_v8  ;;  %2252 = vmatpush.bf16.msrb.mxu0 %v3619_v7 }
 0x4bf   : > { %v1946_v49 = vpack.c.bf16 %v4244_v37, %v4244_v37 }
 0x4c0   : > { %v3122_v6 = vpop.eup %3121 }
 0x4c1   : > { %v1941_v56 = vsub.f32 %v3122_v6, %v4157_v41  ;;  %v2005_v48 = vunpack.c.l.b16 %v1946_v49  ;;  %2253 = vmatpush.bf16.msrb.mxu0 %v3629_v20 }
 0x4c3   : > { %v1943_v36 = vmul.f32 %v1941_v56, %v1939_v23 }
 0x4c4   : > { %2800 = vmatmul.msk.bf16.vlgmr.msra.gmra.mxu0 %vm555_vm0, %v2167_v43 }
 0x4c5   : > { %v4249_v3 = vadd.f32 %v1943_v36, %v4157_v41  ;;  %v1967_v41 = vpop.f32.mrf.mxu3  ;;  %2254 = vmatpush.bf16.msrb.mxu0 %v3646_v34  ;;  %v1995_v34 = vpop.f32.mrf.mxu0 }
 0x4c6   : > { %v1968_v26 = vadd.f32 %v1967_v41, %v3698_v0 }
 0x4c7   : > { %v2880_v63 = vpack.c.bf16 %v4249_v3, %v4244_v37  ;;  %v1947_v8 = vpack.c.bf16 %v4249_v3, %v4249_v3 }
 0x4c9   : > { %2896 = vst [vmem:[%s3547_s12 + $0x28] sm:$0xff] %v2880_v63   ;;  %v2006_v62 = vunpack.c.l.b16 %v1947_v8  ;;  %2255 = vmatpush.bf16.msrb.mxu0 %v3658_v27  ;;  %v1996_v27 = vadd.f32 %v1995_v34, %v3735_v18 }
 0x4cb   : > { %v2007_v12 = vpack.c.b16 %v2006_v62, %v2005_v48 }
 0x4cd   : > { %2017 = vmatmul.bf16.vlgmr.msra.gmra.mxu1 %v2007_v12  ;;  %2031 = vmatmul.bf16.vlgmr.msra.gmra.mxu2 %v2007_v12  ;;  %v1969_v11 = vpop.f32.mrf.mxu3 }
 0x4ce   : > { %2045 = vmatmul.bf16.vlgmr.msra.gmra.mxu3 %v2007_v12  ;;  %v1970_v50 = vadd.f32 %v1969_v11, %v3698_v0  ;;  %2256 = vmatpush.bf16.msrb.mxu0 %v3665_v46 }
 0x4d2   : > { %2257 = vmatpush.bf16.msrb.mxu0 %v3671_v51 }
 0x4d5   : > { %v1981_v25 = vpop.f32.mrf.mxu3 }
 0x4d6   : > { %v1982_v28 = vadd.f32 %v1981_v25, %v3696_v61 }
 0x4dd   : > { %2801 = vmatmul.msk.bf16.vlgmr.msrb.gmra.mxu1 %vm555_vm0, %v2167_v43  ;;  %v1983_v4 = vpop.f32.mrf.mxu3 }
 0x4de   : > { %v1984_v32 = vadd.f32 %v1983_v4, %v3696_v61 }
 0x54a   : > { %v2018_v29 = vpop.f32.mrf.mxu1 }
 0x54b   : > { %v2051_v58 = vadd.f32 %v2018_v29, %v1968_v26 }
 0x54d   : > { %v2791_v40 = vmul.f32 -1.442695, %v2051_v58 }
 0x54f   : > { %3123 = vpow2.f32 %v2791_v40  ;;  %v4292_v40 = vld [vmem:[%s4395_s6] ss:$0 sm:$0xff] }
 0x550   : > { %v2032_v60 = vpop.f32.mrf.mxu2 }
 0x551   : > { %v2052_v33 = vadd.f32 %v2032_v60, %v1982_v28  ;;  %v2046_v14 = vpop.f32.mrf.mxu3 }
 0x552   : > { %v2020_v22 = vpop.f32.mrf.mxu1  ;;  %v2131_v23 = vadd.f32 %v4024_v1, %v2046_v14 }
 0x553   : > { %v2792_v39 = vmul.f32 -1.442695, %v2052_v33  ;;  %v2053_v38 = vadd.f32 %v2020_v22, %v1970_v50  ;;  %v1997_v50 = vpop.f32.mrf.mxu0 }
 0x555   : > { %v3124_v16 = vpop.eup %3123  ;;  %3125 = vpow2.f32 %v2792_v39  ;;  %v2793_v44 = vmul.f32 -1.442695, %v2053_v38 }
 0x556   : > { %v2067_v53 = vadd.f32 1.0, %v3124_v16 }
 0x557   : > { %3127 = vpow2.f32 %v2793_v44 }
 0x558   : > { %3129 = vrcp.f32 %v2067_v53  ;;  %v2034_v45 = vpop.f32.mrf.mxu2  ;;  %v2082_v24 = vand.u32 2147483648, %v2067_v53  ;;  %v2080_v57 = vand.u32 2147483647, %v2067_v53  ;;  %vm2076_vm0 = vweird.f32 %v2067_v53 }
 0x559   : > { %v2054_v42 = vadd.f32 %v2034_v45, %v1984_v32  ;;  %v2048_v1 = vpop.f32.mrf.mxu3 }
 0x55a   : > { %v2083_v10 = vor.u32 1.1754944e-38, %v2082_v24  ;;  %vm2081_vm9 = vcmp.eq.f32.partialorder %v2080_v57, 8.507059e+37  ;;  %v2132_v60 = vadd.f32 %v4292_v40, %v2048_v1 }
 0x55b   : > { %v3126_v35 = vpop.eup %3125  ;;  %v2794_v54 = vmul.f32 -1.442695, %v2054_v42 }
 0x55c   : > { %v2068_v55 = vadd.f32 1.0, %v3126_v35 }
 0x55d   : > { %v3128_v30 = vpop.eup %3127  ;;  %3131 = vpow2.f32 %v2794_v54 }
 0x55e   : > { %v3130_v7 = vpop.eup %3129  ;;  %3133 = vrcp.f32 %v2068_v55  ;;  %v2069_v19 = vadd.f32 1.0, %v3128_v30  ;;  %vm2091_vm11 = vweird.f32 %v2068_v55  ;;  %v2097_v46 = vand.u32 2147483648, %v2068_v55 }
 0x55f   : > { %v2072_v17 = vmul.f32 %v3130_v7, %v2067_v53  ;;  %vm2077_vm7 = vweird.f32 %v3130_v7  ;;  %v2095_v62 = vand.u32 2147483647, %v2068_v55  ;;  %v1998_v53 = vadd.f32 %v1997_v50, %v3735_v18 }
 0x560   : > { %3135 = vrcp.f32 %v2069_v19  ;;  %vm2078_vm8 = vmor %vm2076_vm0, %vm2077_vm7  ;;  %v2112_v12 = vand.u32 2147483648, %v2069_v19  ;;  %v2110_v52 = vand.u32 2147483647, %v2069_v19  ;;  %v2098_v43 = vor.u32 1.1754944e-38, %v2097_v46 }
 0x561   : > { %v2073_v2 = vsub.f32 1.0, %v2072_v17  ;;  %vm2106_vm14 = vweird.f32 %v2069_v19  ;;  %vm2096_vm15 = vcmp.eq.f32.partialorder %v2095_v62, 8.507059e+37 }
 0x562   : > { %v2113_v28 = vor.u32 1.1754944e-38, %v2112_v12  ;;  %vm2111_vm2 = vcmp.eq.f32.partialorder %v2110_v52, 8.507059e+37 }
 0x563   : > { %v3132_v20 = vpop.eup %3131  ;;  %v2074_v31 = vmul.f32 %v3130_v7, %v2073_v2 }
 0x564   : > { %v3134_v5 = vpop.eup %3133  ;;  %v4275_v9 = vadd.f32 1.0, %v3132_v20  ;;  %v2149_v20 = vpop.permute.xlu1 %2148 }
 0x565   : > { %v2087_v59 = vmul.f32 %v3134_v5, %v2068_v55  ;;  %v2075_v13 = vadd.f32 %v3130_v7, %v2074_v31  ;;  %vm2092_vm10 = vweird.f32 %v3134_v5 }
 0x566   : > { %3137 = vrcp.f32 %v4275_v9  ;;  %v3136_v15 = vpop.eup %3135  ;;  %vm4282_vm12 = vmor %vm2091_vm11, %vm2092_vm10  ;;  %v2127_v33 = vand.u32 2147483648, %v4275_v9  ;;  %v2125_v16 = vand.u32 2147483647, %v4275_v9  ;;  %vm2121_vm4 = vweird.f32 %v4275_v9 }
 0x567   : > { %v2088_v6 = vsub.f32 1.0, %v2087_v59  ;;  %v2079_v21 = vsel %vm2078_vm8, %v3130_v7, %v2075_v13  ;;  %v2102_v36 = vmul.f32 %v3136_v15, %v2069_v19  ;;  %vm2107_vm13 = vweird.f32 %v3136_v15  ;;  %v2144_v7 = vpop.permute.xlu0 %2143 }
 0x568   : > { %v2084_v56 = vsel %vm2081_vm9, %v2083_v10, %v2079_v21  ;;  %vm2108_vm1 = vmor %vm2106_vm14, %vm2107_vm13  ;;  %v2128_v35 = vor.u32 1.1754944e-38, %v2127_v33  ;;  %vm2126_vm6 = vcmp.eq.f32.partialorder %v2125_v16, 8.507059e+37 }
 0x569   : > { %v2089_v49 = vmul.f32 %v3134_v5, %v2088_v6  ;;  %v2133_v63 = vmul.f32 %v2131_v23, %v2084_v56  ;;  %v2103_v8 = vsub.f32 1.0, %v2102_v36  ;;  %v2180_v6 = vpop.f32.mrf.mxu0 }
 0x56a   : > { %v2181_v56 = vadd.f32 %v2180_v6, %v3698_v0 }
 0x56b   : > { %v2090_v48 = vadd.f32 %v3134_v5, %v2089_v49  ;;  %v2135_v41 = vadd.f32 %v2133_v63, %v1996_v27  ;;  %v2104_v47 = vmul.f32 %v3136_v15, %v2103_v8 }
 0x56c   : > { %v3138_v11 = vpop.eup %3137 }
 0x56d   : > { %v2117_v29 = vmul.f32 %v3138_v11, %v4275_v9  ;;  %v2094_v51 = vsel %vm4282_vm12, %v3134_v5, %v2090_v48  ;;  %3139 = vtanh.f32 %v2135_v41  ;;  %v2105_v58 = vadd.f32 %v3136_v15, %v2104_v47 }
 0x56e   : > { %v2099_v39 = vsel %vm2096_vm15, %v2098_v43, %v2094_v51  ;;  %vm2122_vm3 = vweird.f32 %v3138_v11 }
 0x56f   : > { %v2118_v25 = vsub.f32 1.0, %v2117_v29  ;;  %v2109_v22 = vsel %vm2108_vm1, %v3136_v15, %v2105_v58  ;;  %v2139_v42 = vsub.f32 1.0, %v2099_v39  ;;  %vm2123_vm5 = vmor %vm2121_vm4, %vm2122_vm3 }
 0x570   : > { %v2114_v44 = vsel %vm2111_vm2, %v2113_v28, %v2109_v22 }
 0x571   : > { %v2119_v38 = vmul.f32 %v3138_v11, %v2118_v25  ;;  %v2134_v4 = vmul.f32 %v2132_v60, %v2114_v44  ;;  %v2151_v19 = vmul.f32 %v2144_v7, %v2139_v42  ;;  %v2182_v21 = vpop.f32.mrf.mxu0 }
 0x572   : > { %v2183_v41 = vadd.f32 %v2182_v21, %v3698_v0 }
 0x573   : > { %v3140_v32 = vpop.eup %3139  ;;  %v2120_v45 = vadd.f32 %v3138_v11, %v2119_v38  ;;  %v2136_v54 = vadd.f32 %v2134_v4, %v1998_v53 }
 0x574   : > { %v2153_v55 = vsub.f32 %v3140_v32, %v4244_v37  ;;  %v2208_v32 = vpop.f32.mrf.mxu1 }
 0x575   : > { %v2124_v30 = vsel %vm2123_vm5, %v3138_v11, %v2120_v45  ;;  %3141 = vtanh.f32 %v2136_v54 }
 0x576   : > { %v2129_v17 = vsel %vm2126_vm6, %v2128_v35, %v2124_v30  ;;  %v2155_v2 = vmul.f32 %v2153_v55, %v2151_v19  ;;  %v2209_v55 = vadd.f32 %v2208_v32, %v3735_v18 }
 0x577   : > { %v2140_v14 = vsub.f32 1.0, %v2129_v17 }
 0x578   : > { %v4301_v31 = vadd.f32 %v2155_v2, %v4244_v37 }
 0x579   : > { %v2152_v57 = vmul.f32 %v2149_v20, %v2140_v14 }
 0x57a   : > { %v2159_v13 = vpack.c.bf16 %v4301_v31, %v4301_v31 }
 0x57b   : > { %v3142_v24 = vpop.eup %3141 }
 0x57c   : > { %v2154_v5 = vsub.f32 %v3142_v24, %v4249_v3  ;;  %v2218_v27 = vunpack.c.l.b16 %v2159_v13 }
 0x57e   : > { %v2156_v9 = vmul.f32 %v2154_v5, %v2152_v57 }
 0x580   : > { %v4305_v59 = vadd.f32 %v2156_v9, %v4249_v3  ;;  %v2194_v3 = vpop.f32.mrf.mxu0 }
 0x581   : > { %v2195_v23 = vadd.f32 %v2194_v3, %v3696_v61 }
 0x582   : > { %v2885_v34 = vpack.c.bf16 %v4305_v59, %v4301_v31  ;;  %v2160_v10 = vpack.c.bf16 %v4305_v59, %v4305_v59 }
 0x584   : > { %2897 = vst [vmem:[%s3547_s12 + $0x30] sm:$0xff] %v2885_v34   ;;  %v2219_v37 = vunpack.c.l.b16 %v2160_v10 }
 0x586   : > { %v2220_v15 = vpack.c.b16 %v2219_v37, %v2218_v27 }
 0x588   : > { %2230 = vmatmul.bf16.vlgmr.msrb.gmra.mxu2 %v2220_v15  ;;  %2244 = vmatmul.bf16.vlgmr.msrb.gmra.mxu3 %v2220_v15  ;;  %v2196_v62 = vpop.f32.mrf.mxu0 }
 0x589   : > { %2258 = vmatmul.bf16.vlgmr.msrb.gmra.mxu0 %v2220_v15  ;;  %v2197_v12 = vadd.f32 %v2196_v62, %v3696_v61 }
 0x606   : > { %v2259_v16 = vpop.f32.mrf.mxu0 }
 0x607   : > { %v2344_v54 = vadd.f32 %v4292_v40, %v2259_v16 }
 0x60b   : > { %v2231_v36 = vpop.f32.mrf.mxu2  ;;  %v2245_v49 = vpop.f32.mrf.mxu3 }
 0x60c   : > { %v2264_v63 = vadd.f32 %v2231_v36, %v2181_v56  ;;  %v2265_v46 = vadd.f32 %v2245_v49, %v2195_v23 }
 0x60e   : > { %v2804_v8 = vmul.f32 -1.442695, %v2264_v63  ;;  %v2805_v48 = vmul.f32 -1.442695, %v2265_v46  ;;  %v2261_v21 = vpop.f32.mrf.mxu0  ;;  %v2210_v46 = vpop.f32.mrf.mxu1 }
 0x610   : > { %3143 = vpow2.f32 %v2804_v8  ;;  %v2345_v8 = vadd.f32 %v4292_v40, %v2261_v21 }
 0x611   : > { %3145 = vpow2.f32 %v2805_v48 }
 0x613   : > { %v2233_v11 = vpop.f32.mrf.mxu2  ;;  %v2247_v26 = vpop.f32.mrf.mxu3 }
 0x614   : > { %v2266_v1 = vadd.f32 %v2233_v11, %v2183_v41  ;;  %v2267_v47 = vadd.f32 %v2247_v26, %v2197_v12 }
 0x616   : > { %v3144_v52 = vpop.eup %3143  ;;  %v2806_v29 = vmul.f32 -1.442695, %v2266_v1  ;;  %v2807_v58 = vmul.f32 -1.442695, %v2267_v47  ;;  %v2211_v1 = vadd.f32 %v2210_v46, %v3735_v18  ;;  %v2362_v18 = vpop.permute.xlu0 %2361 }
 0x617   : > { %v3146_v51 = vpop.eup %3145  ;;  %v2280_v43 = vadd.f32 1.0, %v3144_v52 }
 0x618   : > { %v2281_v25 = vadd.f32 1.0, %v3146_v51  ;;  %3147 = vpow2.f32 %v2806_v29 }
 0x619   : > { %3149 = vrcp.f32 %v2280_v43  ;;  %v2295_v4 = vand.u32 2147483648, %v2280_v43  ;;  %v2293_v42 = vand.u32 2147483647, %v2280_v43  ;;  %vm2289_vm0 = vweird.f32 %v2280_v43 }
 0x61a   : > { %3151 = vrcp.f32 %v2281_v25  ;;  %vm2304_vm10 = vweird.f32 %v2281_v25  ;;  %v2310_v2 = vand.u32 2147483648, %v2281_v25  ;;  %v2308_v20 = vand.u32 2147483647, %v2281_v25 }
 0x61b   : > { %3153 = vpow2.f32 %v2807_v58  ;;  %v2296_v19 = vor.u32 1.1754944e-38, %v2295_v4  ;;  %vm2294_vm11 = vcmp.eq.f32.partialorder %v2293_v42, 8.507059e+37 }
 0x61c   : > { %v2311_v6 = vor.u32 1.1754944e-38, %v2310_v2  ;;  %vm2309_vm14 = vcmp.eq.f32.partialorder %v2308_v20, 8.507059e+37 }
 0x61e   : > { %v3148_v28 = vpop.eup %3147 }
 0x61f   : > { %v3150_v61 = vpop.eup %3149  ;;  %v2282_v60 = vadd.f32 1.0, %v3148_v28 }
 0x620   : > { %v3152_v50 = vpop.eup %3151  ;;  %v2285_v33 = vmul.f32 %v3150_v61, %v2280_v43  ;;  %vm2290_vm7 = vweird.f32 %v3150_v61  ;;  %v2357_v43 = vpop.permute.xlu2 %2356 }
 0x621   : > { %v3154_v0 = vpop.eup %3153  ;;  %v2300_v22 = vmul.f32 %v3152_v50, %v2281_v25  ;;  %3155 = vrcp.f32 %v2282_v60  ;;  %vm2305_vm8 = vweird.f32 %v3152_v50  ;;  %vm2291_vm9 = vmor %vm2289_vm0, %vm2290_vm7  ;;  %v2325_v9 = vand.u32 2147483648, %v2282_v60 }
 0x622   : > { %v4318_v39 = vadd.f32 1.0, %v3154_v0  ;;  %v2286_v38 = vsub.f32 1.0, %v2285_v33  ;;  %vm4323_vm12 = vmor %vm2304_vm10, %vm2305_vm8  ;;  %v2323_v15 = vand.u32 2147483647, %v2282_v60  ;;  %vm2319_vm15 = vweird.f32 %v2282_v60 }
 0x623   : > { %v2301_v44 = vsub.f32 1.0, %v2300_v22  ;;  %v2326_v36 = vor.u32 1.1754944e-38, %v2325_v9 }
 0x624   : > { %3157 = vrcp.f32 %v4318_v39  ;;  %v2287_v45 = vmul.f32 %v3150_v61, %v2286_v38  ;;  %v2340_v48 = vand.u32 2147483648, %v4318_v39  ;;  %vm2324_vm3 = vcmp.eq.f32.partialorder %v2323_v15, 8.507059e+37 }
 0x625   : > { %v2302_v53 = vmul.f32 %v3152_v50, %v2301_v44  ;;  %vm2334_vm4 = vweird.f32 %v4318_v39  ;;  %v2338_v41 = vand.u32 2147483647, %v4318_v39 }
 0x626   : > { %v2288_v30 = vadd.f32 %v3150_v61, %v2287_v45  ;;  %v2341_v29 = vor.u32 1.1754944e-38, %v2340_v48 }
 0x627   : > { %v3156_v35 = vpop.eup %3155  ;;  %v2303_v7 = vadd.f32 %v3152_v50, %v2302_v53  ;;  %vm2339_vm6 = vcmp.eq.f32.partialorder %v2338_v41, 8.507059e+37 }
 0x628   : > { %v2315_v17 = vmul.f32 %v3156_v35, %v2282_v60  ;;  %v2292_v14 = vsel %vm2291_vm9, %v3150_v61, %v2288_v30  ;;  %vm2320_vm13 = vweird.f32 %v3156_v35 }
 0x629   : > { %v2297_v57 = vsel %vm2294_vm11, %v2296_v19, %v2292_v14  ;;  %v2307_v27 = vsel %vm4323_vm12, %v3152_v50, %v2303_v7  ;;  %vm2321_vm2 = vmor %vm2319_vm15, %vm2320_vm13 }
 0x62a   : > { %v3158_v24 = vpop.eup %3157  ;;  %v2316_v5 = vsub.f32 1.0, %v2315_v17  ;;  %v2346_v10 = vmul.f32 %v2344_v54, %v2297_v57  ;;  %v2312_v63 = vsel %vm2309_vm14, %v2311_v6, %v2307_v27 }
 0x62b   : > { %v2330_v34 = vmul.f32 %v3158_v24, %v4318_v39  ;;  %vm2335_vm1 = vweird.f32 %v3158_v24  ;;  %v2352_v26 = vsub.f32 1.0, %v2312_v63 }
 0x62c   : > { %v2317_v37 = vmul.f32 %v3156_v35, %v2316_v5  ;;  %v2348_v23 = vadd.f32 %v2346_v10, %v2209_v55  ;;  %vm2336_vm5 = vmor %vm2334_vm4, %vm2335_vm1 }
 0x62d   : > { %v2331_v3 = vsub.f32 1.0, %v2330_v34  ;;  %v2364_v58 = vmul.f32 %v2357_v43, %v2352_v26 }
 0x62e   : > { %v2318_v56 = vadd.f32 %v3156_v35, %v2317_v37  ;;  %3159 = vtanh.f32 %v2348_v23 }
 0x62f   : > { %v2332_v49 = vmul.f32 %v3158_v24, %v2331_v3 }
 0x630   : > { %v2322_v62 = vsel %vm2321_vm2, %v3156_v35, %v2318_v56 }
 0x631   : > { %v2333_v12 = vadd.f32 %v3158_v24, %v2332_v49  ;;  %v2327_v11 = vsel %vm2324_vm3, %v2326_v36, %v2322_v62 }
 0x632   : > { %v2347_v47 = vmul.f32 %v2345_v8, %v2327_v11 }
 0x633   : > { %v2337_v52 = vsel %vm2336_vm5, %v3158_v24, %v2333_v12 }
 0x634   : > { %v2349_v51 = vadd.f32 %v2347_v47, %v2211_v1  ;;  %v3160_v40 = vpop.eup %3159  ;;  %v2342_v28 = vsel %vm2339_vm6, %v2341_v29, %v2337_v52 }
 0x635   : > { %v2366_v25 = vsub.f32 %v3160_v40, %v4301_v31  ;;  %v2353_v60 = vsub.f32 1.0, %v2342_v28 }
 0x636   : > { %3161 = vtanh.f32 %v2349_v51 }
 0x637   : > { %v2368_v61 = vmul.f32 %v2366_v25, %v2364_v58  ;;  %v2365_v0 = vmul.f32 %v2362_v18, %v2353_v60 }
 0x639   : > { %v2370_v50 = vadd.f32 %v2368_v61, %v4301_v31 }
 0x63b   : > { %2377 = vst [vmem:[#allocation9] sm:$0xff] %v2370_v50 }
 0x63c   : > { %v3162_v33 = vpop.eup %3161 }
 0x63d   : > { %v2367_v22 = vsub.f32 %v3162_v33, %v4305_v59 }
 0x63f   : > { %v2369_v31 = vmul.f32 %v2367_v22, %v2365_v0 }
 0x641   : > { %v2371_v39 = vadd.f32 %v2369_v31, %v4305_v59 }
 0x643   : > { %v2890_v38 = vpack.c.bf16 %v2371_v39, %v2370_v50  ;;  %2378 = vst [vmem:[#allocation9 + $0x8] sm:$0xff] %v2371_v39 }
 0x644   : > { %2913 = dma.vmem_to_hbm [thread:$0]  (%p3467_p2), %s2413_s11, 256, %s2415_s30, [#allocation10], %s3382_s25, %s3382_s25, %s3383_s29  }
 0x645   : > { %2898 = vst [vmem:[%s3547_s12 + $0x38] sm:$0xff] %v2890_v38  }
 0x646   : > { %3310 = shalt.err (!%p3307_p11)
}
 0x647   : > { %s3384_s4 = smov 64   ;;  %s3385_s12 = smov 4  }
 0x648   : > { %2911 = dma.vmem_to_hbm [thread:$0]  (%p3477_p4), %s2396_s22, 1024, %s2398_s23, %s2380_s9, %s3384_s4, %s3384_s4, %s3385_s12  }
 0x649   : > { %3344 = dma.done.wait (%p3467_p2), [#allocation10], 256  }
 0x64a   : > { %3346 = vsyncadd (%p3467_p2), [#allocation10], 4294967040 }
 0x64b PF: > { %p2939_p12 = scmp.ge.s32.totalorder %s3373_s10, 2  ;;  %s2434_s14 = sand.u32 1, %s3353_s27  }
 0x64c   : > { %s2435_s17 = scalar_lea.sflag [#allocation4], %s2434_s14 }
 0x64d   : > { %p2928_p13 = pnand %p2939_p12, %p3484_p8 }
 0x64f   : > { %p2929_p0 = pneg %p2928_p13 }
 0x651   : > { %3348 = dma.done.wait (%p2929_p0), %s2435_s17, 1024  }
 0x652   : > { %3350 = vsyncadd (%p2929_p0), %s2435_s17, 4294966272  ;;  %s25_s10 = sadd.s32 1, %s3373_s10   ;;  %s4430_s16 = sld [smem:[#allocation15_spill]] }
 0x653   : > { %p22_p4 = scmp.ge.s32.totalorder %s25_s10, 5   ;;  %s4431_s29 = sld [smem:[#allocation19_spill]] }
 0x654   : > { %s4432_s30 = sld [smem:[#allocation16_spill]]  ;;  %s4434_s27 = smov %s3357_s28 }
 0x655   : > { %s4433_s9 = sld [smem:[#allocation17_spill]]  ;;  %24 = sbr.rel (!%p22_p4) target bundleno = 9 (0x9), region = 136 }
 0x658   : > { %s4435_s28 = smov %s4430_s16 }
 0x65a   :  { %2441 = vsyncpa [#allocation3], 1 }
 0x65b   :  { %2443 = vsyncpa [#allocation3 + $0x1], 1 }
 0x65c   :  { %2444 = vsyncpa [#allocation6], 1 }
 0x65d   :  { %2445 = vsyncpa [#allocation4], 1 }
 0x65e   :  { %2447 = vsyncpa [#allocation4 + $0x1], 1 }
 0x65f   :  { %2448 = vsyncpa [#allocation10], 1 }

</bundles_post_ra>
